<compile_context>
chip_gen: v6e
topology: v6e:2x2x1
jax: 0.10.0
libtpu: 0.0.40
codegen_flags: <defaults>
</compile_context>

<pallas_src>
import functools

import jax
import jax.numpy as jnp
from jax.experimental import pallas as pl
from jax.experimental.pallas import tpu as pltpu


# ----------------------------- in-kernel math helpers -----------------------

def _gelu(x):
    # tanh-approx GELU (BERT's gelu_new), f32 math.
    return 0.5 * x * (1.0 + jnp.tanh(0.7978845608028654 *
                                     (x + 0.044715 * x * x * x)))


def _layernorm(x, g, b, eps):
    mu = jnp.mean(x, axis=-1, keepdims=True)
    xc = x - mu
    var = jnp.mean(xc * xc, axis=-1, keepdims=True)
    return xc * jax.lax.rsqrt(var + eps) * g + b


# ----------------------------- fused encoder layer kernel -------------------

def _encoder_layer_kernel(*refs, n_heads, head_dim, scale, eps, G, S,
                          fuse_emb, fuse_cls):
    it = iter(refs)
    x_ref = next(it)                    # (G, S, H) f32
    bias_ref = next(it)                 # (G, 1, S) f32 additive key mask (0 / -1e9)
    if fuse_emb:
        pt_ref = next(it)               # (1, S, H) pos+type embedding
        eg_ref = next(it)               # (1, H) emb LN gamma
        eb_ref = next(it)               # (1, H) emb LN beta
    wqkv_ref = next(it); bqkv_ref = next(it)
    wo_ref = next(it); bo_ref = next(it)
    ln1g_ref = next(it); ln1b_ref = next(it)
    w1_ref = next(it); b1_ref = next(it)
    w2_ref = next(it); b2_ref = next(it)
    ln2g_ref = next(it); ln2b_ref = next(it)
    if fuse_cls:
        cw_ref = next(it); cb_ref = next(it)
    out_ref = next(it)

    H = n_heads * head_dim
    M = G * S

    x3 = x_ref[...]                                     # (G, S, H)
    if fuse_emb:
        # embeddings: LayerNorm(word + pos + type), fused into the first layer.
        x3 = _layernorm(x3 + pt_ref[...], eg_ref[...], eb_ref[...], eps)

    x = x3.reshape(M, H)                                # (G*S, H) slab for big matmuls
    x_bf = x.astype(jnp.bfloat16)
    bias = bias_ref[...]                                # (G, 1, S)

    # Fused QKV projection (bf16 MXU inputs, f32 accumulation).
    qkv = jnp.dot(x_bf, wqkv_ref[...], preferred_element_type=jnp.float32)
    qkv = qkv + bqkv_ref[...]                           # (M, 3H) f32

    # Cast once per slab; fold the 1/sqrt(dh) scale into q.
    q = (qkv[:, 0:H].reshape(G, S, H) * scale).astype(jnp.bfloat16)
    k = qkv[:, H:2 * H].reshape(G, S, H).astype(jnp.bfloat16)
    v = qkv[:, 2 * H:3 * H].reshape(G, S, H).astype(jnp.bfloat16)

    # Per-head attention, batched over the G sequences in this block.  Context
    # tiles stay in registers and are lane-concatenated into the merged layout.
    ctx_heads = []
    for h in range(n_heads):
        lo = h * head_dim
        hi = lo + head_dim
        qh = q[:, :, lo:hi]                             # (G, S, dh) bf16
        kh = k[:, :, lo:hi]
        vh = v[:, :, lo:hi]
        # scores = qh @ kh^T per sequence  ('bqd,bkd->bqk')
        s = jax.lax.dot_general(qh, kh, (((2,), (2,)), ((0,), (0,))),
                                preferred_element_type=jnp.float32)   # (G, S, S)
        s = s + bias
        s = s - jnp.max(s, axis=-1, keepdims=True)
        p = jnp.exp(s)
        p = p * pl.reciprocal(jnp.sum(p, axis=-1, keepdims=True), approx=True)
        # context = p @ vh per sequence  ('bqk,bkd->bqd')
        ctx_heads.append(jax.lax.dot_general(
            p.astype(jnp.bfloat16), vh, (((2,), (1,)), ((0,), (0,))),
            preferred_element_type=jnp.float32))        # (G, S, dh) f32
    ctx = jnp.concatenate(ctx_heads, axis=-1).reshape(M, H)   # merged heads, (M, H)

    # Output projection + residual + LayerNorm 1
    attn = jnp.dot(ctx.astype(jnp.bfloat16), wo_ref[...],
                   preferred_element_type=jnp.float32) + bo_ref[...]
    x1 = _layernorm(x + attn, ln1g_ref[...], ln1b_ref[...], eps)

    # FFN (GELU) + residual + LayerNorm 2
    ffn = jnp.dot(x1.astype(jnp.bfloat16), w1_ref[...],
                  preferred_element_type=jnp.float32) + b1_ref[...]
    ffn = _gelu(ffn)
    ffn = jnp.dot(ffn.astype(jnp.bfloat16), w2_ref[...],
                  preferred_element_type=jnp.float32) + b2_ref[...]
    x2 = _layernorm(x1 + ffn, ln2g_ref[...], ln2b_ref[...], eps)

    if fuse_cls:
        # Lane-dense classifier (tags padded to a multiple of 128), fused here.
        ner = jnp.dot(x2.astype(jnp.bfloat16), cw_ref[...],
                      preferred_element_type=jnp.float32) + cb_ref[...]
        out_ref[...] = ner.reshape(G, S, -1)
    else:
        out_ref[...] = x2.reshape(G, S, H)


def encoder_layer(x, mask_bias, lw, *, n_heads, G, emb=None, cls=None, eps=1e-12):
    B, S, H = x.shape
    dh = H // n_heads
    inter = lw["w1"].shape[1]
    scale = 1.0 / (dh ** 0.5)
    assert B % G == 0 and S % 8 == 0 and H % 128 == 0
    nb = B // G

    kern = functools.partial(
        _encoder_layer_kernel, n_heads=n_heads, head_dim=dh, scale=scale, eps=eps,
        G=G, S=S, fuse_emb=emb is not None, fuse_cls=cls is not None)

    def full(shape):
        # constant index_map => weights stay resident in VMEM across the grid
        return pl.BlockSpec(shape, lambda i: (0,) * len(shape))

    x_spec = pl.BlockSpec((G, S, H), lambda i: (i, 0, 0))
    in_specs = [x_spec, pl.BlockSpec((G, 1, S), lambda i: (i, 0, 0))]
    args = [x, mask_bias]
    if emb is not None:
        in_specs += [full((1, S, H)), full((1, H)), full((1, H))]
        args += [emb["pos_type"], emb["ln_g"], emb["ln_b"]]
    in_specs += [
        full((H, 3 * H)), full((1, 3 * H)),     # wqkv, bqkv
        full((H, H)), full((1, H)),             # wo, bo
        full((1, H)), full((1, H)),             # ln1
        full((H, inter)), full((1, inter)),     # w1, b1
        full((inter, H)), full((1, H)),         # w2, b2
        full((1, H)), full((1, H)),             # ln2
    ]
    args += [lw["wqkv"], lw["bqkv"], lw["wo"], lw["bo"],
             lw["ln1_g"], lw["ln1_b"], lw["w1"], lw["b1"],
             lw["w2"], lw["b2"], lw["ln2_g"], lw["ln2_b"]]
    if cls is not None:
        ntp = cls["w"].shape[1]
        in_specs += [full((H, ntp)), full((1, ntp))]
        args += [cls["w"], cls["b"]]
        out_shape = jax.ShapeDtypeStruct((B, S, ntp), jnp.float32)
        out_specs = pl.BlockSpec((G, S, ntp), lambda i: (i, 0, 0))
    else:
        out_shape = jax.ShapeDtypeStruct((B, S, H), jnp.float32)
        out_specs = x_spec

    # TODO(synk): at BERT-base scale (H=768, inter=3072) set vmem_limit_bytes and/or
    # slice the FFN weights over an extra "arbitrary" grid axis to fit v7x's 64 MiB VMEM.
    return pl.pallas_call(
        kern,
        out_shape=out_shape,
        grid=(nb,),
        in_specs=in_specs,
        out_specs=out_specs,
        compiler_params=pltpu.CompilerParams(dimension_semantics=("parallel",)),
    )(*args)


def _pick_group(B, S, target_rows=128):
    # Process G batch elements per grid step so G*S approaches the MXU row width.
    G = max(1, min(B, (target_rows + S - 1) // S))
    while B % G:
        G -= 1
    return G


# ----------------------------- parameters -----------------------------------

def init_params(key, *, vocab, max_pos, hidden, n_layers, n_heads, intermediate, n_tags):
    del n_heads
    keys = jax.random.split(key, 4 + n_layers)
    std = 0.02
    p = {
        "word_emb": std * jax.random.normal(keys[0], (vocab, hidden), jnp.float32),
        "pos_emb":  std * jax.random.normal(keys[1], (max_pos, hidden), jnp.float32),
        "type_emb": std * jax.random.normal(keys[2], (2, hidden), jnp.float32),
        "emb_ln_g": jnp.ones((hidden,), jnp.float32),
        "emb_ln_b": jnp.zeros((hidden,), jnp.float32),
        "cls_w":    std * jax.random.normal(keys[3], (hidden, n_tags), jnp.float32),
        "cls_b":    jnp.zeros((n_tags,), jnp.float32),
        "layers":   [],
    }
    for l in range(n_layers):
        lk = jax.random.split(keys[4 + l], 6)
        p["layers"].append({
            "wq": std * jax.random.normal(lk[0], (hidden, hidden), jnp.float32),
            "bq": jnp.zeros((hidden,), jnp.float32),
            "wk": std * jax.random.normal(lk[1], (hidden, hidden), jnp.float32),
            "bk": jnp.zeros((hidden,), jnp.float32),
            "wv": std * jax.random.normal(lk[2], (hidden, hidden), jnp.float32),
            "bv": jnp.zeros((hidden,), jnp.float32),
            "wo": std * jax.random.normal(lk[3], (hidden, hidden), jnp.float32),
            "bo": jnp.zeros((hidden,), jnp.float32),
            "ln1_g": jnp.ones((hidden,), jnp.float32),
            "ln1_b": jnp.zeros((hidden,), jnp.float32),
            "w1": std * jax.random.normal(lk[4], (hidden, intermediate), jnp.float32),
            "b1": jnp.zeros((intermediate,), jnp.float32),
            "w2": std * jax.random.normal(lk[5], (intermediate, hidden), jnp.float32),
            "b2": jnp.zeros((hidden,), jnp.float32),
            "ln2_g": jnp.ones((hidden,), jnp.float32),
            "ln2_b": jnp.zeros((hidden,), jnp.float32),
        })
    return p


def prepare_params(params):
    """One-time weight packing (QKV concat, bf16 casts, classifier lane padding)."""
    H = params["word_emb"].shape[1]
    n_tags = params["cls_w"].shape[1]
    ntp = ((n_tags + 127) // 128) * 128
    packed = {
        "word_emb": params["word_emb"],
        "pos_type": params["pos_emb"] + params["type_emb"][0][None, :],   # (max_pos, H)
        "emb_ln_g": params["emb_ln_g"].reshape(1, H),
        "emb_ln_b": params["emb_ln_b"].reshape(1, H),
        "cls_w": jnp.zeros((H, ntp), jnp.bfloat16).at[:, :n_tags].set(
            params["cls_w"].astype(jnp.bfloat16)),
        "cls_b": jnp.zeros((1, ntp), jnp.float32).at[0, :n_tags].set(params["cls_b"]),
        "layers": [],
    }
    for lp in params["layers"]:
        inter = lp["w1"].shape[1]
        packed["layers"].append({
            "wqkv": jnp.concatenate([lp["wq"], lp["wk"], lp["wv"]],
                                    axis=1).astype(jnp.bfloat16),
            "bqkv": jnp.concatenate([lp["bq"], lp["bk"], lp["bv"]]).reshape(1, 3 * H),
            "wo": lp["wo"].astype(jnp.bfloat16), "bo": lp["bo"].reshape(1, H),
            "ln1_g": lp["ln1_g"].reshape(1, H), "ln1_b": lp["ln1_b"].reshape(1, H),
            "w1": lp["w1"].astype(jnp.bfloat16), "b1": lp["b1"].reshape(1, inter),
            "w2": lp["w2"].astype(jnp.bfloat16), "b2": lp["b2"].reshape(1, H),
            "ln2_g": lp["ln2_g"].reshape(1, H), "ln2_b": lp["ln2_b"].reshape(1, H),
        })
    return packed


# ----------------------------- forward pass ----------------------------------

def bert_crf_forward(packed, sentence, *, n_heads, n_tags):
    B, S = sentence.shape
    H = packed["word_emb"].shape[1]
    n_layers = len(packed["layers"])

    # input_mask = sentence != 0 -> per-batch additive attention bias (B, 1, S)
    mask_bias = ((sentence == 0).astype(jnp.float32) * -1e9).reshape(B, 1, S)

    # embedding gather is glue; the add+LayerNorm is fused into the first layer kernel.
    word = jnp.take(packed["word_emb"], sentence, axis=0)     # (B, S, H)
    pos_type = packed["pos_type"][:S][None]                   # (1, S, H)

    # TODO(synk): for S beyond the toy size, pad S to a multiple of 128 (mask padded
    # keys with -1e9) so attention score tiles / softmax reductions are lane-dense.
    G = _pick_group(B, S)

    x = word
    for li, lw in enumerate(packed["layers"]):
        emb = ({"pos_type": pos_type, "ln_g": packed["emb_ln_g"],
                "ln_b": packed["emb_ln_b"]} if li == 0 else None)
        cls = ({"w": packed["cls_w"], "b": packed["cls_b"]}
               if li == n_layers - 1 else None)
        x = encoder_layer(x, mask_bias, lw, n_heads=n_heads, G=G, emb=emb, cls=cls)

    # x: (B, S, ntp) logits from the fused classifier; slice off [CLS]/[SEP] and padding tags.
    return x[:, 1:-1, :n_tags]


# ----------------------------- main -------------------------------------------

if __name__ == "__main__":
    B, S = 2, 8
    H, NH, INTER, NL = 128, 4, 512, 2
    VOCAB, MAXPOS, NTAGS = 64, 16, 9

    key = jax.random.PRNGKey(0)
    pkey, skey = jax.random.split(key)

    params = init_params(pkey, vocab=VOCAB, max_pos=MAXPOS, hidden=H,
                         n_layers=NL, n_heads=NH, intermediate=INTER, n_tags=NTAGS)
    packed = prepare_params(params)   # one-time packing, outside the jitted forward

    sentence = jax.random.randint(skey, (B, S), 1, VOCAB, dtype=jnp.int32)
    sentence = sentence.at[1, -2:].set(0)   # padding tokens -> masked via (sentence != 0)

    fwd = jax.jit(functools.partial(bert_crf_forward, n_heads=NH, n_tags=NTAGS))
    out = fwd(packed, sentence)
    jax.block_until_ready(out)

    assert out.shape == (B, S - 2, NTAGS), out.shape
    assert out.dtype == jnp.float32
    print("KERNEL_OK")
</pallas_src>

<mosaic_0001>
module attributes {stable_mosaic.version = 11 : i64} {
  func.func @_encoder_layer_kernel(%arg0: i32, %arg1: memref<2x8x128xf32, #tpu.memory_space<vmem>>, %arg2: memref<2x1x8xf32, #tpu.memory_space<vmem>>, %arg3: memref<1x8x128xf32, #tpu.memory_space<vmem>>, %arg4: memref<1x128xf32, #tpu.memory_space<vmem>>, %arg5: memref<1x128xf32, #tpu.memory_space<vmem>>, %arg6: memref<128x384xbf16, #tpu.memory_space<vmem>>, %arg7: memref<1x384xf32, #tpu.memory_space<vmem>>, %arg8: memref<128x128xbf16, #tpu.memory_space<vmem>>, %arg9: memref<1x128xf32, #tpu.memory_space<vmem>>, %arg10: memref<1x128xf32, #tpu.memory_space<vmem>>, %arg11: memref<1x128xf32, #tpu.memory_space<vmem>>, %arg12: memref<128x512xbf16, #tpu.memory_space<vmem>>, %arg13: memref<1x512xf32, #tpu.memory_space<vmem>>, %arg14: memref<512x128xbf16, #tpu.memory_space<vmem>>, %arg15: memref<1x128xf32, #tpu.memory_space<vmem>>, %arg16: memref<1x128xf32, #tpu.memory_space<vmem>>, %arg17: memref<1x128xf32, #tpu.memory_space<vmem>>, %arg18: memref<2x8x128xf32, #tpu.memory_space<vmem>>) attributes {dimension_semantics = [#tpu.dimension_semantics<parallel>], iteration_bounds = array<i64: 1>, scalar_prefetch = 0 : i64, scratch_operands = 0 : i64, tpu.core_type = #tpu.core_type<tc>, window_params = [{transform_indices = @transform_0, window_bounds = array<i64: 2, 8, 128>}, {transform_indices = @transform_1, window_bounds = array<i64: 2, 1, 8>}, {pipeline_mode = #tpu.pipeline_mode<synchronous>, transform_indices = @transform_2, window_bounds = array<i64: 1, 8, 128>}, {pipeline_mode = #tpu.pipeline_mode<synchronous>, transform_indices = @transform_3, window_bounds = array<i64: 1, 128>}, {pipeline_mode = #tpu.pipeline_mode<synchronous>, transform_indices = @transform_4, window_bounds = array<i64: 1, 128>}, {pipeline_mode = #tpu.pipeline_mode<synchronous>, transform_indices = @transform_5, window_bounds = array<i64: 128, 384>}, {pipeline_mode = #tpu.pipeline_mode<synchronous>, transform_indices = @transform_6, window_bounds = array<i64: 1, 384>}, {pipeline_mode = #tpu.pipeline_mode<synchronous>, transform_indices = @transform_7, window_bounds = array<i64: 128, 128>}, {pipeline_mode = #tpu.pipeline_mode<synchronous>, transform_indices = @transform_8, window_bounds = array<i64: 1, 128>}, {pipeline_mode = #tpu.pipeline_mode<synchronous>, transform_indices = @transform_9, window_bounds = array<i64: 1, 128>}, {pipeline_mode = #tpu.pipeline_mode<synchronous>, transform_indices = @transform_10, window_bounds = array<i64: 1, 128>}, {pipeline_mode = #tpu.pipeline_mode<synchronous>, transform_indices = @transform_11, window_bounds = array<i64: 128, 512>}, {pipeline_mode = #tpu.pipeline_mode<synchronous>, transform_indices = @transform_12, window_bounds = array<i64: 1, 512>}, {pipeline_mode = #tpu.pipeline_mode<synchronous>, transform_indices = @transform_13, window_bounds = array<i64: 512, 128>}, {pipeline_mode = #tpu.pipeline_mode<synchronous>, transform_indices = @transform_14, window_bounds = array<i64: 1, 128>}, {pipeline_mode = #tpu.pipeline_mode<synchronous>, transform_indices = @transform_15, window_bounds = array<i64: 1, 128>}, {pipeline_mode = #tpu.pipeline_mode<synchronous>, transform_indices = @transform_16, window_bounds = array<i64: 1, 128>}, {transform_indices = @transform_17, window_bounds = array<i64: 2, 8, 128>}]} {
    %c0 = arith.constant 0 : index
    %c0_0 = arith.constant 0 : index
    %c0_1 = arith.constant 0 : index
    %0 = vector.load %arg1[%c0, %c0_0, %c0_1] : memref<2x8x128xf32, #tpu.memory_space<vmem>>, vector<2x8x128xf32>
    %c0_2 = arith.constant 0 : index
    %c0_3 = arith.constant 0 : index
    %c0_4 = arith.constant 0 : index
    %1 = vector.load %arg3[%c0_2, %c0_3, %c0_4] : memref<1x8x128xf32, #tpu.memory_space<vmem>>, vector<1x8x128xf32>
    %2 = vector.broadcast %1 : vector<1x8x128xf32> to vector<2x8x128xf32>
    %3 = arith.addf %0, %2 : vector<2x8x128xf32>
    %c0_5 = arith.constant 0 : index
    %c0_6 = arith.constant 0 : index
    %4 = vector.load %arg4[%c0_5, %c0_6] : memref<1x128xf32, #tpu.memory_space<vmem>>, vector<1x128xf32>
    %c0_7 = arith.constant 0 : index
    %c0_8 = arith.constant 0 : index
    %5 = vector.load %arg5[%c0_7, %c0_8] : memref<1x128xf32, #tpu.memory_space<vmem>>, vector<1x128xf32>
    %cst = arith.constant dense<0.000000e+00> : vector<2x8xf32>
    %6 = vector.multi_reduction <add>, %3, %cst [2] : vector<2x8x128xf32> to vector<2x8xf32>
    %7 = vector.shape_cast %6 : vector<2x8xf32> to vector<2x8x1xf32>
    %cst_9 = arith.constant 1.280000e+02 : f32
    %8 = vector.broadcast %cst_9 : f32 to vector<2x8x1xf32>
    %9 = arith.divf %7, %8 : vector<2x8x1xf32>
    %10 = vector.broadcast %9 : vector<2x8x1xf32> to vector<2x8x128xf32>
    %11 = arith.subf %3, %10 : vector<2x8x128xf32>
    %12 = arith.mulf %11, %11 : vector<2x8x128xf32>
    %cst_10 = arith.constant dense<0.000000e+00> : vector<2x8xf32>
    %13 = vector.multi_reduction <add>, %12, %cst_10 [2] : vector<2x8x128xf32> to vector<2x8xf32>
    %14 = vector.shape_cast %13 : vector<2x8xf32> to vector<2x8x1xf32>
    %cst_11 = arith.constant 1.280000e+02 : f32
    %15 = vector.broadcast %cst_11 : f32 to vector<2x8x1xf32>
    %16 = arith.divf %14, %15 : vector<2x8x1xf32>
    %cst_12 = arith.constant 9.99999996E-13 : f32
    %17 = vector.broadcast %cst_12 : f32 to vector<2x8x1xf32>
    %18 = arith.addf %16, %17 : vector<2x8x1xf32>
    %19 = math.rsqrt %18 : vector<2x8x1xf32>
    %20 = vector.broadcast %19 : vector<2x8x1xf32> to vector<2x8x128xf32>
    %21 = arith.mulf %11, %20 : vector<2x8x128xf32>
    %22 = vector.shape_cast %4 : vector<1x128xf32> to vector<1x1x128xf32>
    %23 = vector.broadcast %22 : vector<1x1x128xf32> to vector<2x8x128xf32>
    %24 = arith.mulf %21, %23 : vector<2x8x128xf32>
    %25 = vector.shape_cast %5 : vector<1x128xf32> to vector<1x1x128xf32>
    %26 = vector.broadcast %25 : vector<1x1x128xf32> to vector<2x8x128xf32>
    %27 = arith.addf %24, %26 : vector<2x8x128xf32>
    %28 = vector.shape_cast %27 : vector<2x8x128xf32> to vector<16x128xf32>
    %29 = arith.truncf %28 : vector<16x128xf32> to vector<16x128xbf16>
    %c0_13 = arith.constant 0 : index
    %c0_14 = arith.constant 0 : index
    %c0_15 = arith.constant 0 : index
    %30 = vector.load %arg2[%c0_13, %c0_14, %c0_15] : memref<2x1x8xf32, #tpu.memory_space<vmem>>, vector<2x1x8xf32>
    %c0_16 = arith.constant 0 : index
    %c0_17 = arith.constant 0 : index
    %31 = vector.load %arg6[%c0_16, %c0_17] : memref<128x384xbf16, #tpu.memory_space<vmem>>, vector<128x384xbf16>
    %cst_18 = arith.constant dense<0.000000e+00> : vector<16x384xf32>
    %32 = tpu.matmul %29, %31, %cst_18 {dimension_numbers = #tpu.dot_dimension_numbers<[1], [0], [0], [1], [0, 0, 1, 1], [], []>} : vector<16x128xbf16>, vector<128x384xbf16>, vector<16x384xf32> -> vector<16x384xf32>
    %c0_19 = arith.constant 0 : index
    %c0_20 = arith.constant 0 : index
    %33 = vector.load %arg7[%c0_19, %c0_20] : memref<1x384xf32, #tpu.memory_space<vmem>>, vector<1x384xf32>
    %34 = vector.broadcast %33 : vector<1x384xf32> to vector<16x384xf32>
    %35 = arith.addf %32, %34 : vector<16x384xf32>
    %36 = vector.extract_strided_slice %35 {offsets = [0, 0], sizes = [16, 128], strides = [1, 1]} : vector<16x384xf32> to vector<16x128xf32>
    %37 = vector.shape_cast %36 : vector<16x128xf32> to vector<2x8x128xf32>
    %cst_21 = arith.constant 0.176776692 : f32
    %38 = vector.broadcast %cst_21 : f32 to vector<2x8x128xf32>
    %39 = arith.mulf %37, %38 : vector<2x8x128xf32>
    %40 = arith.truncf %39 : vector<2x8x128xf32> to vector<2x8x128xbf16>
    %41 = vector.extract_strided_slice %35 {offsets = [0, 128], sizes = [16, 128], strides = [1, 1]} : vector<16x384xf32> to vector<16x128xf32>
    %42 = vector.shape_cast %41 : vector<16x128xf32> to vector<2x8x128xf32>
    %43 = arith.truncf %42 : vector<2x8x128xf32> to vector<2x8x128xbf16>
    %44 = vector.extract_strided_slice %35 {offsets = [0, 256], sizes = [16, 128], strides = [1, 1]} : vector<16x384xf32> to vector<16x128xf32>
    %45 = vector.shape_cast %44 : vector<16x128xf32> to vector<2x8x128xf32>
    %46 = arith.truncf %45 : vector<2x8x128xf32> to vector<2x8x128xbf16>
    %47 = vector.extract_strided_slice %40 {offsets = [0, 0, 0], sizes = [2, 8, 32], strides = [1, 1, 1]} : vector<2x8x128xbf16> to vector<2x8x32xbf16>
    %48 = vector.extract_strided_slice %43 {offsets = [0, 0, 0], sizes = [2, 8, 32], strides = [1, 1, 1]} : vector<2x8x128xbf16> to vector<2x8x32xbf16>
    %49 = vector.extract_strided_slice %46 {offsets = [0, 0, 0], sizes = [2, 8, 32], strides = [1, 1, 1]} : vector<2x8x128xbf16> to vector<2x8x32xbf16>
    %cst_22 = arith.constant dense<0.000000e+00> : vector<2x8x8xf32>
    %50 = tpu.matmul %47, %48, %cst_22 {dimension_numbers = #tpu.dot_dimension_numbers<[2], [2], [1], [1], [0, 0, 0, 1, 1, 1], [0], [0]>} : vector<2x8x32xbf16>, vector<2x8x32xbf16>, vector<2x8x8xf32> -> vector<2x8x8xf32>
    %51 = vector.broadcast %30 : vector<2x1x8xf32> to vector<2x8x8xf32>
    %52 = arith.addf %50, %51 : vector<2x8x8xf32>
    %cst_23 = arith.constant dense<0xFF800000> : vector<2x8xf32>
    %53 = vector.multi_reduction <maximumf>, %52, %cst_23 [2] : vector<2x8x8xf32> to vector<2x8xf32>
    %54 = vector.shape_cast %53 : vector<2x8xf32> to vector<2x8x1xf32>
    %55 = vector.broadcast %54 : vector<2x8x1xf32> to vector<2x8x8xf32>
    %56 = arith.subf %52, %55 : vector<2x8x8xf32>
    %57 = math.exp %56 : vector<2x8x8xf32>
    %cst_24 = arith.constant dense<0.000000e+00> : vector<2x8xf32>
    %58 = vector.multi_reduction <add>, %57, %cst_24 [2] : vector<2x8x8xf32> to vector<2x8xf32>
    %59 = vector.shape_cast %58 : vector<2x8xf32> to vector<2x8x1xf32>
    %60 = tpu.reciprocal %59 {approx = true} : vector<2x8x1xf32> -> vector<2x8x1xf32>
    %61 = vector.broadcast %60 : vector<2x8x1xf32> to vector<2x8x8xf32>
    %62 = arith.mulf %57, %61 : vector<2x8x8xf32>
    %63 = arith.truncf %62 : vector<2x8x8xf32> to vector<2x8x8xbf16>
    %cst_25 = arith.constant dense<0.000000e+00> : vector<2x8x32xf32>
    %64 = tpu.matmul %63, %49, %cst_25 {dimension_numbers = #tpu.dot_dimension_numbers<[2], [1], [1], [2], [0, 0, 0, 1, 1, 2], [0], [0]>} : vector<2x8x8xbf16>, vector<2x8x32xbf16>, vector<2x8x32xf32> -> vector<2x8x32xf32>
    %65 = vector.extract_strided_slice %40 {offsets = [0, 0, 32], sizes = [2, 8, 32], strides = [1, 1, 1]} : vector<2x8x128xbf16> to vector<2x8x32xbf16>
    %66 = vector.extract_strided_slice %43 {offsets = [0, 0, 32], sizes = [2, 8, 32], strides = [1, 1, 1]} : vector<2x8x128xbf16> to vector<2x8x32xbf16>
    %67 = vector.extract_strided_slice %46 {offsets = [0, 0, 32], sizes = [2, 8, 32], strides = [1, 1, 1]} : vector<2x8x128xbf16> to vector<2x8x32xbf16>
    %cst_26 = arith.constant dense<0.000000e+00> : vector<2x8x8xf32>
    %68 = tpu.matmul %65, %66, %cst_26 {dimension_numbers = #tpu.dot_dimension_numbers<[2], [2], [1], [1], [0, 0, 0, 1, 1, 1], [0], [0]>} : vector<2x8x32xbf16>, vector<2x8x32xbf16>, vector<2x8x8xf32> -> vector<2x8x8xf32>
    %69 = vector.broadcast %30 : vector<2x1x8xf32> to vector<2x8x8xf32>
    %70 = arith.addf %68, %69 : vector<2x8x8xf32>
    %cst_27 = arith.constant dense<0xFF800000> : vector<2x8xf32>
    %71 = vector.multi_reduction <maximumf>, %70, %cst_27 [2] : vector<2x8x8xf32> to vector<2x8xf32>
    %72 = vector.shape_cast %71 : vector<2x8xf32> to vector<2x8x1xf32>
    %73 = vector.broadcast %72 : vector<2x8x1xf32> to vector<2x8x8xf32>
    %74 = arith.subf %70, %73 : vector<2x8x8xf32>
    %75 = math.exp %74 : vector<2x8x8xf32>
    %cst_28 = arith.constant dense<0.000000e+00> : vector<2x8xf32>
    %76 = vector.multi_reduction <add>, %75, %cst_28 [2] : vector<2x8x8xf32> to vector<2x8xf32>
    %77 = vector.shape_cast %76 : vector<2x8xf32> to vector<2x8x1xf32>
    %78 = tpu.reciprocal %77 {approx = true} : vector<2x8x1xf32> -> vector<2x8x1xf32>
    %79 = vector.broadcast %78 : vector<2x8x1xf32> to vector<2x8x8xf32>
    %80 = arith.mulf %75, %79 : vector<2x8x8xf32>
    %81 = arith.truncf %80 : vector<2x8x8xf32> to vector<2x8x8xbf16>
    %cst_29 = arith.constant dense<0.000000e+00> : vector<2x8x32xf32>
    %82 = tpu.matmul %81, %67, %cst_29 {dimension_numbers = #tpu.dot_dimension_numbers<[2], [1], [1], [2], [0, 0, 0, 1, 1, 2], [0], [0]>} : vector<2x8x8xbf16>, vector<2x8x32xbf16>, vector<2x8x32xf32> -> vector<2x8x32xf32>
    %83 = vector.extract_strided_slice %40 {offsets = [0, 0, 64], sizes = [2, 8, 32], strides = [1, 1, 1]} : vector<2x8x128xbf16> to vector<2x8x32xbf16>
    %84 = vector.extract_strided_slice %43 {offsets = [0, 0, 64], sizes = [2, 8, 32], strides = [1, 1, 1]} : vector<2x8x128xbf16> to vector<2x8x32xbf16>
    %85 = vector.extract_strided_slice %46 {offsets = [0, 0, 64], sizes = [2, 8, 32], strides = [1, 1, 1]} : vector<2x8x128xbf16> to vector<2x8x32xbf16>
    %cst_30 = arith.constant dense<0.000000e+00> : vector<2x8x8xf32>
    %86 = tpu.matmul %83, %84, %cst_30 {dimension_numbers = #tpu.dot_dimension_numbers<[2], [2], [1], [1], [0, 0, 0, 1, 1, 1], [0], [0]>} : vector<2x8x32xbf16>, vector<2x8x32xbf16>, vector<2x8x8xf32> -> vector<2x8x8xf32>
    %87 = vector.broadcast %30 : vector<2x1x8xf32> to vector<2x8x8xf32>
    %88 = arith.addf %86, %87 : vector<2x8x8xf32>
    %cst_31 = arith.constant dense<0xFF800000> : vector<2x8xf32>
    %89 = vector.multi_reduction <maximumf>, %88, %cst_31 [2] : vector<2x8x8xf32> to vector<2x8xf32>
    %90 = vector.shape_cast %89 : vector<2x8xf32> to vector<2x8x1xf32>
    %91 = vector.broadcast %90 : vector<2x8x1xf32> to vector<2x8x8xf32>
    %92 = arith.subf %88, %91 : vector<2x8x8xf32>
    %93 = math.exp %92 : vector<2x8x8xf32>
    %cst_32 = arith.constant dense<0.000000e+00> : vector<2x8xf32>
    %94 = vector.multi_reduction <add>, %93, %cst_32 [2] : vector<2x8x8xf32> to vector<2x8xf32>
    %95 = vector.shape_cast %94 : vector<2x8xf32> to vector<2x8x1xf32>
    %96 = tpu.reciprocal %95 {approx = true} : vector<2x8x1xf32> -> vector<2x8x1xf32>
    %97 = vector.broadcast %96 : vector<2x8x1xf32> to vector<2x8x8xf32>
    %98 = arith.mulf %93, %97 : vector<2x8x8xf32>
    %99 = arith.truncf %98 : vector<2x8x8xf32> to vector<2x8x8xbf16>
    %cst_33 = arith.constant dense<0.000000e+00> : vector<2x8x32xf32>
    %100 = tpu.matmul %99, %85, %cst_33 {dimension_numbers = #tpu.dot_dimension_numbers<[2], [1], [1], [2], [0, 0, 0, 1, 1, 2], [0], [0]>} : vector<2x8x8xbf16>, vector<2x8x32xbf16>, vector<2x8x32xf32> -> vector<2x8x32xf32>
    %101 = vector.extract_strided_slice %40 {offsets = [0, 0, 96], sizes = [2, 8, 32], strides = [1, 1, 1]} : vector<2x8x128xbf16> to vector<2x8x32xbf16>
    %102 = vector.extract_strided_slice %43 {offsets = [0, 0, 96], sizes = [2, 8, 32], strides = [1, 1, 1]} : vector<2x8x128xbf16> to vector<2x8x32xbf16>
    %103 = vector.extract_strided_slice %46 {offsets = [0, 0, 96], sizes = [2, 8, 32], strides = [1, 1, 1]} : vector<2x8x128xbf16> to vector<2x8x32xbf16>
    %cst_34 = arith.constant dense<0.000000e+00> : vector<2x8x8xf32>
    %104 = tpu.matmul %101, %102, %cst_34 {dimension_numbers = #tpu.dot_dimension_numbers<[2], [2], [1], [1], [0, 0, 0, 1, 1, 1], [0], [0]>} : vector<2x8x32xbf16>, vector<2x8x32xbf16>, vector<2x8x8xf32> -> vector<2x8x8xf32>
    %105 = vector.broadcast %30 : vector<2x1x8xf32> to vector<2x8x8xf32>
    %106 = arith.addf %104, %105 : vector<2x8x8xf32>
    %cst_35 = arith.constant dense<0xFF800000> : vector<2x8xf32>
    %107 = vector.multi_reduction <maximumf>, %106, %cst_35 [2] : vector<2x8x8xf32> to vector<2x8xf32>
    %108 = vector.shape_cast %107 : vector<2x8xf32> to vector<2x8x1xf32>
    %109 = vector.broadcast %108 : vector<2x8x1xf32> to vector<2x8x8xf32>
    %110 = arith.subf %106, %109 : vector<2x8x8xf32>
    %111 = math.exp %110 : vector<2x8x8xf32>
    %cst_36 = arith.constant dense<0.000000e+00> : vector<2x8xf32>
    %112 = vector.multi_reduction <add>, %111, %cst_36 [2] : vector<2x8x8xf32> to vector<2x8xf32>
    %113 = vector.shape_cast %112 : vector<2x8xf32> to vector<2x8x1xf32>
    %114 = tpu.reciprocal %113 {approx = true} : vector<2x8x1xf32> -> vector<2x8x1xf32>
    %115 = vector.broadcast %114 : vector<2x8x1xf32> to vector<2x8x8xf32>
    %116 = arith.mulf %111, %115 : vector<2x8x8xf32>
    %117 = arith.truncf %116 : vector<2x8x8xf32> to vector<2x8x8xbf16>
    %cst_37 = arith.constant dense<0.000000e+00> : vector<2x8x32xf32>
    %118 = tpu.matmul %117, %103, %cst_37 {dimension_numbers = #tpu.dot_dimension_numbers<[2], [1], [1], [2], [0, 0, 0, 1, 1, 2], [0], [0]>} : vector<2x8x8xbf16>, vector<2x8x32xbf16>, vector<2x8x32xf32> -> vector<2x8x32xf32>
    %119 = tpu.concatenate %64, %82, %100, %118 in 2 : vector<2x8x32xf32>, vector<2x8x32xf32>, vector<2x8x32xf32>, vector<2x8x32xf32> -> vector<2x8x128xf32>
    %120 = vector.shape_cast %119 : vector<2x8x128xf32> to vector<16x128xf32>
    %121 = arith.truncf %120 : vector<16x128xf32> to vector<16x128xbf16>
    %c0_38 = arith.constant 0 : index
    %c0_39 = arith.constant 0 : index
    %122 = vector.load %arg8[%c0_38, %c0_39] : memref<128x128xbf16, #tpu.memory_space<vmem>>, vector<128x128xbf16>
    %cst_40 = arith.constant dense<0.000000e+00> : vector<16x128xf32>
    %123 = tpu.matmul %121, %122, %cst_40 {dimension_numbers = #tpu.dot_dimension_numbers<[1], [0], [0], [1], [0, 0, 1, 1], [], []>} : vector<16x128xbf16>, vector<128x128xbf16>, vector<16x128xf32> -> vector<16x128xf32>
    %c0_41 = arith.constant 0 : index
    %c0_42 = arith.constant 0 : index
    %124 = vector.load %arg9[%c0_41, %c0_42] : memref<1x128xf32, #tpu.memory_space<vmem>>, vector<1x128xf32>
    %125 = vector.broadcast %124 : vector<1x128xf32> to vector<16x128xf32>
    %126 = arith.addf %123, %125 : vector<16x128xf32>
    %127 = arith.addf %28, %126 : vector<16x128xf32>
    %c0_43 = arith.constant 0 : index
    %c0_44 = arith.constant 0 : index
    %128 = vector.load %arg10[%c0_43, %c0_44] : memref<1x128xf32, #tpu.memory_space<vmem>>, vector<1x128xf32>
    %c0_45 = arith.constant 0 : index
    %c0_46 = arith.constant 0 : index
    %129 = vector.load %arg11[%c0_45, %c0_46] : memref<1x128xf32, #tpu.memory_space<vmem>>, vector<1x128xf32>
    %cst_47 = arith.constant dense<0.000000e+00> : vector<16xf32>
    %130 = vector.multi_reduction <add>, %127, %cst_47 [1] : vector<16x128xf32> to vector<16xf32>
    %131 = vector.shape_cast %130 : vector<16xf32> to vector<16x1xf32>
    %cst_48 = arith.constant 1.280000e+02 : f32
    %132 = vector.broadcast %cst_48 : f32 to vector<16x1xf32>
    %133 = arith.divf %131, %132 : vector<16x1xf32>
    %134 = vector.broadcast %133 : vector<16x1xf32> to vector<16x128xf32>
    %135 = arith.subf %127, %134 : vector<16x128xf32>
    %136 = arith.mulf %135, %135 : vector<16x128xf32>
    %cst_49 = arith.constant dense<0.000000e+00> : vector<16xf32>
    %137 = vector.multi_reduction <add>, %136, %cst_49 [1] : vector<16x128xf32> to vector<16xf32>
    %138 = vector.shape_cast %137 : vector<16xf32> to vector<16x1xf32>
    %cst_50 = arith.constant 1.280000e+02 : f32
    %139 = vector.broadcast %cst_50 : f32 to vector<16x1xf32>
    %140 = arith.divf %138, %139 : vector<16x1xf32>
    %cst_51 = arith.constant 9.99999996E-13 : f32
    %141 = vector.broadcast %cst_51 : f32 to vector<16x1xf32>
    %142 = arith.addf %140, %141 : vector<16x1xf32>
    %143 = math.rsqrt %142 : vector<16x1xf32>
    %144 = vector.broadcast %143 : vector<16x1xf32> to vector<16x128xf32>
    %145 = arith.mulf %135, %144 : vector<16x128xf32>
    %146 = vector.broadcast %128 : vector<1x128xf32> to vector<16x128xf32>
    %147 = arith.mulf %145, %146 : vector<16x128xf32>
    %148 = vector.broadcast %129 : vector<1x128xf32> to vector<16x128xf32>
    %149 = arith.addf %147, %148 : vector<16x128xf32>
    %150 = arith.truncf %149 : vector<16x128xf32> to vector<16x128xbf16>
    %c0_52 = arith.constant 0 : index
    %c0_53 = arith.constant 0 : index
    %151 = vector.load %arg12[%c0_52, %c0_53] : memref<128x512xbf16, #tpu.memory_space<vmem>>, vector<128x512xbf16>
    %cst_54 = arith.constant dense<0.000000e+00> : vector<16x512xf32>
    %152 = tpu.matmul %150, %151, %cst_54 {dimension_numbers = #tpu.dot_dimension_numbers<[1], [0], [0], [1], [0, 0, 1, 1], [], []>} : vector<16x128xbf16>, vector<128x512xbf16>, vector<16x512xf32> -> vector<16x512xf32>
    %c0_55 = arith.constant 0 : index
    %c0_56 = arith.constant 0 : index
    %153 = vector.load %arg13[%c0_55, %c0_56] : memref<1x512xf32, #tpu.memory_space<vmem>>, vector<1x512xf32>
    %154 = vector.broadcast %153 : vector<1x512xf32> to vector<16x512xf32>
    %155 = arith.addf %152, %154 : vector<16x512xf32>
    %cst_57 = arith.constant 5.000000e-01 : f32
    %156 = vector.broadcast %cst_57 : f32 to vector<16x512xf32>
    %157 = arith.mulf %156, %155 : vector<16x512xf32>
    %cst_58 = arith.constant 4.471500e-02 : f32
    %158 = vector.broadcast %cst_58 : f32 to vector<16x512xf32>
    %159 = arith.mulf %158, %155 : vector<16x512xf32>
    %160 = arith.mulf %159, %155 : vector<16x512xf32>
    %161 = arith.mulf %160, %155 : vector<16x512xf32>
    %162 = arith.addf %155, %161 : vector<16x512xf32>
    %cst_59 = arith.constant 0.797884583 : f32
    %163 = vector.broadcast %cst_59 : f32 to vector<16x512xf32>
    %164 = arith.mulf %163, %162 : vector<16x512xf32>
    %165 = math.tanh %164 : vector<16x512xf32>
    %cst_60 = arith.constant 1.000000e+00 : f32
    %166 = vector.broadcast %cst_60 : f32 to vector<16x512xf32>
    %167 = arith.addf %166, %165 : vector<16x512xf32>
    %168 = arith.mulf %157, %167 : vector<16x512xf32>
    %169 = arith.truncf %168 : vector<16x512xf32> to vector<16x512xbf16>
    %c0_61 = arith.constant 0 : index
    %c0_62 = arith.constant 0 : index
    %170 = vector.load %arg14[%c0_61, %c0_62] : memref<512x128xbf16, #tpu.memory_space<vmem>>, vector<512x128xbf16>
    %cst_63 = arith.constant dense<0.000000e+00> : vector<16x128xf32>
    %171 = tpu.matmul %169, %170, %cst_63 {dimension_numbers = #tpu.dot_dimension_numbers<[1], [0], [0], [1], [0, 0, 1, 1], [], []>} : vector<16x512xbf16>, vector<512x128xbf16>, vector<16x128xf32> -> vector<16x128xf32>
    %c0_64 = arith.constant 0 : index
    %c0_65 = arith.constant 0 : index
    %172 = vector.load %arg15[%c0_64, %c0_65] : memref<1x128xf32, #tpu.memory_space<vmem>>, vector<1x128xf32>
    %173 = vector.broadcast %172 : vector<1x128xf32> to vector<16x128xf32>
    %174 = arith.addf %171, %173 : vector<16x128xf32>
    %175 = arith.addf %149, %174 : vector<16x128xf32>
    %c0_66 = arith.constant 0 : index
    %c0_67 = arith.constant 0 : index
    %176 = vector.load %arg16[%c0_66, %c0_67] : memref<1x128xf32, #tpu.memory_space<vmem>>, vector<1x128xf32>
    %c0_68 = arith.constant 0 : index
    %c0_69 = arith.constant 0 : index
    %177 = vector.load %arg17[%c0_68, %c0_69] : memref<1x128xf32, #tpu.memory_space<vmem>>, vector<1x128xf32>
    %cst_70 = arith.constant dense<0.000000e+00> : vector<16xf32>
    %178 = vector.multi_reduction <add>, %175, %cst_70 [1] : vector<16x128xf32> to vector<16xf32>
    %179 = vector.shape_cast %178 : vector<16xf32> to vector<16x1xf32>
    %cst_71 = arith.constant 1.280000e+02 : f32
    %180 = vector.broadcast %cst_71 : f32 to vector<16x1xf32>
    %181 = arith.divf %179, %180 : vector<16x1xf32>
    %182 = vector.broadcast %181 : vector<16x1xf32> to vector<16x128xf32>
    %183 = arith.subf %175, %182 : vector<16x128xf32>
    %184 = arith.mulf %183, %183 : vector<16x128xf32>
    %cst_72 = arith.constant dense<0.000000e+00> : vector<16xf32>
    %185 = vector.multi_reduction <add>, %184, %cst_72 [1] : vector<16x128xf32> to vector<16xf32>
    %186 = vector.shape_cast %185 : vector<16xf32> to vector<16x1xf32>
    %cst_73 = arith.constant 1.280000e+02 : f32
    %187 = vector.broadcast %cst_73 : f32 to vector<16x1xf32>
    %188 = arith.divf %186, %187 : vector<16x1xf32>
    %cst_74 = arith.constant 9.99999996E-13 : f32
    %189 = vector.broadcast %cst_74 : f32 to vector<16x1xf32>
    %190 = arith.addf %188, %189 : vector<16x1xf32>
    %191 = math.rsqrt %190 : vector<16x1xf32>
    %192 = vector.broadcast %191 : vector<16x1xf32> to vector<16x128xf32>
    %193 = arith.mulf %183, %192 : vector<16x128xf32>
    %194 = vector.broadcast %176 : vector<1x128xf32> to vector<16x128xf32>
    %195 = arith.mulf %193, %194 : vector<16x128xf32>
    %196 = vector.broadcast %177 : vector<1x128xf32> to vector<16x128xf32>
    %197 = arith.addf %195, %196 : vector<16x128xf32>
    %198 = vector.shape_cast %197 : vector<16x128xf32> to vector<2x8x128xf32>
    %c0_75 = arith.constant 0 : index
    %c0_76 = arith.constant 0 : index
    %c0_77 = arith.constant 0 : index
    %199 = vector.load %arg18[%c0_75, %c0_76, %c0_77] : memref<2x8x128xf32, #tpu.memory_space<vmem>>, vector<2x8x128xf32>
    tpu.vector_store %arg18[%c0_75, %c0_76, %c0_77], %198 {strides = array<i32>} : memref<2x8x128xf32, #tpu.memory_space<vmem>>, vector<2x8x128xf32>,
    return
  }
  func.func @transform_0(%arg0: i32) -> (i32, i32, i32) {
    %c0_i32 = arith.constant 0 : i32
    %c0_i32_0 = arith.constant 0 : i32
    %c0_i32_1 = arith.constant 0 : i32
    return %arg0, %c0_i32, %c0_i32_0 : i32, i32, i32
  }
  func.func @transform_1(%arg0: i32) -> (i32, i32, i32) {
    %c0_i32 = arith.constant 0 : i32
    %c0_i32_0 = arith.constant 0 : i32
    %c0_i32_1 = arith.constant 0 : i32
    return %arg0, %c0_i32, %c0_i32_0 : i32, i32, i32
  }
  func.func @transform_2(%arg0: i32) -> (i32, i32, i32) {
    %c0_i32 = arith.constant 0 : i32
    %c0_i32_0 = arith.constant 0 : i32
    %c0_i32_1 = arith.constant 0 : i32
    %c0_i32_2 = arith.constant 0 : i32
    return %c0_i32, %c0_i32_0, %c0_i32_1 : i32, i32, i32
  }
  func.func @transform_3(%arg0: i32) -> (i32, i32) {
    %c0_i32 = arith.constant 0 : i32
    %c0_i32_0 = arith.constant 0 : i32
    %c0_i32_1 = arith.constant 0 : i32
    return %c0_i32, %c0_i32_0 : i32, i32
  }
  func.func @transform_4(%arg0: i32) -> (i32, i32) {
    %c0_i32 = arith.constant 0 : i32
    %c0_i32_0 = arith.constant 0 : i32
    %c0_i32_1 = arith.constant 0 : i32
    return %c0_i32, %c0_i32_0 : i32, i32
  }
  func.func @transform_5(%arg0: i32) -> (i32, i32) {
    %c0_i32 = arith.constant 0 : i32
    %c0_i32_0 = arith.constant 0 : i32
    %c0_i32_1 = arith.constant 0 : i32
    return %c0_i32, %c0_i32_0 : i32, i32
  }
  func.func @transform_6(%arg0: i32) -> (i32, i32) {
    %c0_i32 = arith.constant 0 : i32
    %c0_i32_0 = arith.constant 0 : i32
    %c0_i32_1 = arith.constant 0 : i32
    return %c0_i32, %c0_i32_0 : i32, i32
  }
  func.func @transform_7(%arg0: i32) -> (i32, i32) {
    %c0_i32 = arith.constant 0 : i32
    %c0_i32_0 = arith.constant 0 : i32
    %c0_i32_1 = arith.constant 0 : i32
    return %c0_i32, %c0_i32_0 : i32, i32
  }
  func.func @transform_8(%arg0: i32) -> (i32, i32) {
    %c0_i32 = arith.constant 0 : i32
    %c0_i32_0 = arith.constant 0 : i32
    %c0_i32_1 = arith.constant 0 : i32
    return %c0_i32, %c0_i32_0 : i32, i32
  }
  func.func @transform_9(%arg0: i32) -> (i32, i32) {
    %c0_i32 = arith.constant 0 : i32
    %c0_i32_0 = arith.constant 0 : i32
    %c0_i32_1 = arith.constant 0 : i32
    return %c0_i32, %c0_i32_0 : i32, i32
  }
  func.func @transform_10(%arg0: i32) -> (i32, i32) {
    %c0_i32 = arith.constant 0 : i32
    %c0_i32_0 = arith.constant 0 : i32
    %c0_i32_1 = arith.constant 0 : i32
    return %c0_i32, %c0_i32_0 : i32, i32
  }
  func.func @transform_11(%arg0: i32) -> (i32, i32) {
    %c0_i32 = arith.constant 0 : i32
    %c0_i32_0 = arith.constant 0 : i32
    %c0_i32_1 = arith.constant 0 : i32
    return %c0_i32, %c0_i32_0 : i32, i32
  }
  func.func @transform_12(%arg0: i32) -> (i32, i32) {
    %c0_i32 = arith.constant 0 : i32
    %c0_i32_0 = arith.constant 0 : i32
    %c0_i32_1 = arith.constant 0 : i32
    return %c0_i32, %c0_i32_0 : i32, i32
  }
  func.func @transform_13(%arg0: i32) -> (i32, i32) {
    %c0_i32 = arith.constant 0 : i32
    %c0_i32_0 = arith.constant 0 : i32
    %c0_i32_1 = arith.constant 0 : i32
    return %c0_i32, %c0_i32_0 : i32, i32
  }
  func.func @transform_14(%arg0: i32) -> (i32, i32) {
    %c0_i32 = arith.constant 0 : i32
    %c0_i32_0 = arith.constant 0 : i32
    %c0_i32_1 = arith.constant 0 : i32
    return %c0_i32, %c0_i32_0 : i32, i32
  }
  func.func @transform_15(%arg0: i32) -> (i32, i32) {
    %c0_i32 = arith.constant 0 : i32
    %c0_i32_0 = arith.constant 0 : i32
    %c0_i32_1 = arith.constant 0 : i32
    return %c0_i32, %c0_i32_0 : i32, i32
  }
  func.func @transform_16(%arg0: i32) -> (i32, i32) {
    %c0_i32 = arith.constant 0 : i32
    %c0_i32_0 = arith.constant 0 : i32
    %c0_i32_1 = arith.constant 0 : i32
    return %c0_i32, %c0_i32_0 : i32, i32
  }
  func.func @transform_17(%arg0: i32) -> (i32, i32, i32) {
    %c0_i32 = arith.constant 0 : i32
    %c0_i32_0 = arith.constant 0 : i32
    %c0_i32_1 = arith.constant 0 : i32
    return %arg0, %c0_i32, %c0_i32_0 : i32, i32, i32
  }
}

module attributes {stable_mosaic.version = 11 : i64} {
  func.func @_encoder_layer_kernel(%arg0: i32, %arg1: memref<2x8x128xf32, #tpu.memory_space<vmem>>, %arg2: memref<2x1x8xf32, #tpu.memory_space<vmem>>, %arg3: memref<128x384xbf16, #tpu.memory_space<vmem>>, %arg4: memref<1x384xf32, #tpu.memory_space<vmem>>, %arg5: memref<128x128xbf16, #tpu.memory_space<vmem>>, %arg6: memref<1x128xf32, #tpu.memory_space<vmem>>, %arg7: memref<1x128xf32, #tpu.memory_space<vmem>>, %arg8: memref<1x128xf32, #tpu.memory_space<vmem>>, %arg9: memref<128x512xbf16, #tpu.memory_space<vmem>>, %arg10: memref<1x512xf32, #tpu.memory_space<vmem>>, %arg11: memref<512x128xbf16, #tpu.memory_space<vmem>>, %arg12: memref<1x128xf32, #tpu.memory_space<vmem>>, %arg13: memref<1x128xf32, #tpu.memory_space<vmem>>, %arg14: memref<1x128xf32, #tpu.memory_space<vmem>>, %arg15: memref<128x128xbf16, #tpu.memory_space<vmem>>, %arg16: memref<1x128xf32, #tpu.memory_space<vmem>>, %arg17: memref<2x8x128xf32, #tpu.memory_space<vmem>>) attributes {dimension_semantics = [#tpu.dimension_semantics<parallel>], iteration_bounds = array<i64: 1>, scalar_prefetch = 0 : i64, scratch_operands = 0 : i64, tpu.core_type = #tpu.core_type<tc>, window_params = [{transform_indices = @transform_0, window_bounds = array<i64: 2, 8, 128>}, {transform_indices = @transform_1, window_bounds = array<i64: 2, 1, 8>}, {pipeline_mode = #tpu.pipeline_mode<synchronous>, transform_indices = @transform_2, window_bounds = array<i64: 128, 384>}, {pipeline_mode = #tpu.pipeline_mode<synchronous>, transform_indices = @transform_3, window_bounds = array<i64: 1, 384>}, {pipeline_mode = #tpu.pipeline_mode<synchronous>, transform_indices = @transform_4, window_bounds = array<i64: 128, 128>}, {pipeline_mode = #tpu.pipeline_mode<synchronous>, transform_indices = @transform_5, window_bounds = array<i64: 1, 128>}, {pipeline_mode = #tpu.pipeline_mode<synchronous>, transform_indices = @transform_6, window_bounds = array<i64: 1, 128>}, {pipeline_mode = #tpu.pipeline_mode<synchronous>, transform_indices = @transform_7, window_bounds = array<i64: 1, 128>}, {pipeline_mode = #tpu.pipeline_mode<synchronous>, transform_indices = @transform_8, window_bounds = array<i64: 128, 512>}, {pipeline_mode = #tpu.pipeline_mode<synchronous>, transform_indices = @transform_9, window_bounds = array<i64: 1, 512>}, {pipeline_mode = #tpu.pipeline_mode<synchronous>, transform_indices = @transform_10, window_bounds = array<i64: 512, 128>}, {pipeline_mode = #tpu.pipeline_mode<synchronous>, transform_indices = @transform_11, window_bounds = array<i64: 1, 128>}, {pipeline_mode = #tpu.pipeline_mode<synchronous>, transform_indices = @transform_12, window_bounds = array<i64: 1, 128>}, {pipeline_mode = #tpu.pipeline_mode<synchronous>, transform_indices = @transform_13, window_bounds = array<i64: 1, 128>}, {pipeline_mode = #tpu.pipeline_mode<synchronous>, transform_indices = @transform_14, window_bounds = array<i64: 128, 128>}, {pipeline_mode = #tpu.pipeline_mode<synchronous>, transform_indices = @transform_15, window_bounds = array<i64: 1, 128>}, {transform_indices = @transform_16, window_bounds = array<i64: 2, 8, 128>}]} {
    %c0 = arith.constant 0 : index
    %c0_0 = arith.constant 0 : index
    %c0_1 = arith.constant 0 : index
    %0 = vector.load %arg1[%c0, %c0_0, %c0_1] : memref<2x8x128xf32, #tpu.memory_space<vmem>>, vector<2x8x128xf32>
    %1 = vector.shape_cast %0 : vector<2x8x128xf32> to vector<16x128xf32>
    %2 = arith.truncf %1 : vector<16x128xf32> to vector<16x128xbf16>
    %c0_2 = arith.constant 0 : index
    %c0_3 = arith.constant 0 : index
    %c0_4 = arith.constant 0 : index
    %3 = vector.load %arg2[%c0_2, %c0_3, %c0_4] : memref<2x1x8xf32, #tpu.memory_space<vmem>>, vector<2x1x8xf32>
    %c0_5 = arith.constant 0 : index
    %c0_6 = arith.constant 0 : index
    %4 = vector.load %arg3[%c0_5, %c0_6] : memref<128x384xbf16, #tpu.memory_space<vmem>>, vector<128x384xbf16>
    %cst = arith.constant dense<0.000000e+00> : vector<16x384xf32>
    %5 = tpu.matmul %2, %4, %cst {dimension_numbers = #tpu.dot_dimension_numbers<[1], [0], [0], [1], [0, 0, 1, 1], [], []>} : vector<16x128xbf16>, vector<128x384xbf16>, vector<16x384xf32> -> vector<16x384xf32>
    %c0_7 = arith.constant 0 : index
    %c0_8 = arith.constant 0 : index
    %6 = vector.load %arg4[%c0_7, %c0_8] : memref<1x384xf32, #tpu.memory_space<vmem>>, vector<1x384xf32>
    %7 = vector.broadcast %6 : vector<1x384xf32> to vector<16x384xf32>
    %8 = arith.addf %5, %7 : vector<16x384xf32>
    %9 = vector.extract_strided_slice %8 {offsets = [0, 0], sizes = [16, 128], strides = [1, 1]} : vector<16x384xf32> to vector<16x128xf32>
    %10 = vector.shape_cast %9 : vector<16x128xf32> to vector<2x8x128xf32>
    %cst_9 = arith.constant 0.176776692 : f32
    %11 = vector.broadcast %cst_9 : f32 to vector<2x8x128xf32>
    %12 = arith.mulf %10, %11 : vector<2x8x128xf32>
    %13 = arith.truncf %12 : vector<2x8x128xf32> to vector<2x8x128xbf16>
    %14 = vector.extract_strided_slice %8 {offsets = [0, 128], sizes = [16, 128], strides = [1, 1]} : vector<16x384xf32> to vector<16x128xf32>
    %15 = vector.shape_cast %14 : vector<16x128xf32> to vector<2x8x128xf32>
    %16 = arith.truncf %15 : vector<2x8x128xf32> to vector<2x8x128xbf16>
    %17 = vector.extract_strided_slice %8 {offsets = [0, 256], sizes = [16, 128], strides = [1, 1]} : vector<16x384xf32> to vector<16x128xf32>
    %18 = vector.shape_cast %17 : vector<16x128xf32> to vector<2x8x128xf32>
    %19 = arith.truncf %18 : vector<2x8x128xf32> to vector<2x8x128xbf16>
    %20 = vector.extract_strided_slice %13 {offsets = [0, 0, 0], sizes = [2, 8, 32], strides = [1, 1, 1]} : vector<2x8x128xbf16> to vector<2x8x32xbf16>
    %21 = vector.extract_strided_slice %16 {offsets = [0, 0, 0], sizes = [2, 8, 32], strides = [1, 1, 1]} : vector<2x8x128xbf16> to vector<2x8x32xbf16>
    %22 = vector.extract_strided_slice %19 {offsets = [0, 0, 0], sizes = [2, 8, 32], strides = [1, 1, 1]} : vector<2x8x128xbf16> to vector<2x8x32xbf16>
    %cst_10 = arith.constant dense<0.000000e+00> : vector<2x8x8xf32>
    %23 = tpu.matmul %20, %21, %cst_10 {dimension_numbers = #tpu.dot_dimension_numbers<[2], [2], [1], [1], [0, 0, 0, 1, 1, 1], [0], [0]>} : vector<2x8x32xbf16>, vector<2x8x32xbf16>, vector<2x8x8xf32> -> vector<2x8x8xf32>
    %24 = vector.broadcast %3 : vector<2x1x8xf32> to vector<2x8x8xf32>
    %25 = arith.addf %23, %24 : vector<2x8x8xf32>
    %cst_11 = arith.constant dense<0xFF800000> : vector<2x8xf32>
    %26 = vector.multi_reduction <maximumf>, %25, %cst_11 [2] : vector<2x8x8xf32> to vector<2x8xf32>
    %27 = vector.shape_cast %26 : vector<2x8xf32> to vector<2x8x1xf32>
    %28 = vector.broadcast %27 : vector<2x8x1xf32> to vector<2x8x8xf32>
    %29 = arith.subf %25, %28 : vector<2x8x8xf32>
    %30 = math.exp %29 : vector<2x8x8xf32>
    %cst_12 = arith.constant dense<0.000000e+00> : vector<2x8xf32>
    %31 = vector.multi_reduction <add>, %30, %cst_12 [2] : vector<2x8x8xf32> to vector<2x8xf32>
    %32 = vector.shape_cast %31 : vector<2x8xf32> to vector<2x8x1xf32>
    %33 = tpu.reciprocal %32 {approx = true} : vector<2x8x1xf32> -> vector<2x8x1xf32>
    %34 = vector.broadcast %33 : vector<2x8x1xf32> to vector<2x8x8xf32>
    %35 = arith.mulf %30, %34 : vector<2x8x8xf32>
    %36 = arith.truncf %35 : vector<2x8x8xf32> to vector<2x8x8xbf16>
    %cst_13 = arith.constant dense<0.000000e+00> : vector<2x8x32xf32>
    %37 = tpu.matmul %36, %22, %cst_13 {dimension_numbers = #tpu.dot_dimension_numbers<[2], [1], [1], [2], [0, 0, 0, 1, 1, 2], [0], [0]>} : vector<2x8x8xbf16>, vector<2x8x32xbf16>, vector<2x8x32xf32> -> vector<2x8x32xf32>
    %38 = vector.extract_strided_slice %13 {offsets = [0, 0, 32], sizes = [2, 8, 32], strides = [1, 1, 1]} : vector<2x8x128xbf16> to vector<2x8x32xbf16>
    %39 = vector.extract_strided_slice %16 {offsets = [0, 0, 32], sizes = [2, 8, 32], strides = [1, 1, 1]} : vector<2x8x128xbf16> to vector<2x8x32xbf16>
    %40 = vector.extract_strided_slice %19 {offsets = [0, 0, 32], sizes = [2, 8, 32], strides = [1, 1, 1]} : vector<2x8x128xbf16> to vector<2x8x32xbf16>
    %cst_14 = arith.constant dense<0.000000e+00> : vector<2x8x8xf32>
    %41 = tpu.matmul %38, %39, %cst_14 {dimension_numbers = #tpu.dot_dimension_numbers<[2], [2], [1], [1], [0, 0, 0, 1, 1, 1], [0], [0]>} : vector<2x8x32xbf16>, vector<2x8x32xbf16>, vector<2x8x8xf32> -> vector<2x8x8xf32>
    %42 = vector.broadcast %3 : vector<2x1x8xf32> to vector<2x8x8xf32>
    %43 = arith.addf %41, %42 : vector<2x8x8xf32>
    %cst_15 = arith.constant dense<0xFF800000> : vector<2x8xf32>
    %44 = vector.multi_reduction <maximumf>, %43, %cst_15 [2] : vector<2x8x8xf32> to vector<2x8xf32>
    %45 = vector.shape_cast %44 : vector<2x8xf32> to vector<2x8x1xf32>
    %46 = vector.broadcast %45 : vector<2x8x1xf32> to vector<2x8x8xf32>
    %47 = arith.subf %43, %46 : vector<2x8x8xf32>
    %48 = math.exp %47 : vector<2x8x8xf32>
    %cst_16 = arith.constant dense<0.000000e+00> : vector<2x8xf32>
    %49 = vector.multi_reduction <add>, %48, %cst_16 [2] : vector<2x8x8xf32> to vector<2x8xf32>
    %50 = vector.shape_cast %49 : vector<2x8xf32> to vector<2x8x1xf32>
    %51 = tpu.reciprocal %50 {approx = true} : vector<2x8x1xf32> -> vector<2x8x1xf32>
    %52 = vector.broadcast %51 : vector<2x8x1xf32> to vector<2x8x8xf32>
    %53 = arith.mulf %48, %52 : vector<2x8x8xf32>
    %54 = arith.truncf %53 : vector<2x8x8xf32> to vector<2x8x8xbf16>
    %cst_17 = arith.constant dense<0.000000e+00> : vector<2x8x32xf32>
    %55 = tpu.matmul %54, %40, %cst_17 {dimension_numbers = #tpu.dot_dimension_numbers<[2], [1], [1], [2], [0, 0, 0, 1, 1, 2], [0], [0]>} : vector<2x8x8xbf16>, vector<2x8x32xbf16>, vector<2x8x32xf32> -> vector<2x8x32xf32>
    %56 = vector.extract_strided_slice %13 {offsets = [0, 0, 64], sizes = [2, 8, 32], strides = [1, 1, 1]} : vector<2x8x128xbf16> to vector<2x8x32xbf16>
    %57 = vector.extract_strided_slice %16 {offsets = [0, 0, 64], sizes = [2, 8, 32], strides = [1, 1, 1]} : vector<2x8x128xbf16> to vector<2x8x32xbf16>
    %58 = vector.extract_strided_slice %19 {offsets = [0, 0, 64], sizes = [2, 8, 32], strides = [1, 1, 1]} : vector<2x8x128xbf16> to vector<2x8x32xbf16>
    %cst_18 = arith.constant dense<0.000000e+00> : vector<2x8x8xf32>
    %59 = tpu.matmul %56, %57, %cst_18 {dimension_numbers = #tpu.dot_dimension_numbers<[2], [2], [1], [1], [0, 0, 0, 1, 1, 1], [0], [0]>} : vector<2x8x32xbf16>, vector<2x8x32xbf16>, vector<2x8x8xf32> -> vector<2x8x8xf32>
    %60 = vector.broadcast %3 : vector<2x1x8xf32> to vector<2x8x8xf32>
    %61 = arith.addf %59, %60 : vector<2x8x8xf32>
    %cst_19 = arith.constant dense<0xFF800000> : vector<2x8xf32>
    %62 = vector.multi_reduction <maximumf>, %61, %cst_19 [2] : vector<2x8x8xf32> to vector<2x8xf32>
    %63 = vector.shape_cast %62 : vector<2x8xf32> to vector<2x8x1xf32>
    %64 = vector.broadcast %63 : vector<2x8x1xf32> to vector<2x8x8xf32>
    %65 = arith.subf %61, %64 : vector<2x8x8xf32>
    %66 = math.exp %65 : vector<2x8x8xf32>
    %cst_20 = arith.constant dense<0.000000e+00> : vector<2x8xf32>
    %67 = vector.multi_reduction <add>, %66, %cst_20 [2] : vector<2x8x8xf32> to vector<2x8xf32>
    %68 = vector.shape_cast %67 : vector<2x8xf32> to vector<2x8x1xf32>
    %69 = tpu.reciprocal %68 {approx = true} : vector<2x8x1xf32> -> vector<2x8x1xf32>
    %70 = vector.broadcast %69 : vector<2x8x1xf32> to vector<2x8x8xf32>
    %71 = arith.mulf %66, %70 : vector<2x8x8xf32>
    %72 = arith.truncf %71 : vector<2x8x8xf32> to vector<2x8x8xbf16>
    %cst_21 = arith.constant dense<0.000000e+00> : vector<2x8x32xf32>
    %73 = tpu.matmul %72, %58, %cst_21 {dimension_numbers = #tpu.dot_dimension_numbers<[2], [1], [1], [2], [0, 0, 0, 1, 1, 2], [0], [0]>} : vector<2x8x8xbf16>, vector<2x8x32xbf16>, vector<2x8x32xf32> -> vector<2x8x32xf32>
    %74 = vector.extract_strided_slice %13 {offsets = [0, 0, 96], sizes = [2, 8, 32], strides = [1, 1, 1]} : vector<2x8x128xbf16> to vector<2x8x32xbf16>
    %75 = vector.extract_strided_slice %16 {offsets = [0, 0, 96], sizes = [2, 8, 32], strides = [1, 1, 1]} : vector<2x8x128xbf16> to vector<2x8x32xbf16>
    %76 = vector.extract_strided_slice %19 {offsets = [0, 0, 96], sizes = [2, 8, 32], strides = [1, 1, 1]} : vector<2x8x128xbf16> to vector<2x8x32xbf16>
    %cst_22 = arith.constant dense<0.000000e+00> : vector<2x8x8xf32>
    %77 = tpu.matmul %74, %75, %cst_22 {dimension_numbers = #tpu.dot_dimension_numbers<[2], [2], [1], [1], [0, 0, 0, 1, 1, 1], [0], [0]>} : vector<2x8x32xbf16>, vector<2x8x32xbf16>, vector<2x8x8xf32> -> vector<2x8x8xf32>
    %78 = vector.broadcast %3 : vector<2x1x8xf32> to vector<2x8x8xf32>
    %79 = arith.addf %77, %78 : vector<2x8x8xf32>
    %cst_23 = arith.constant dense<0xFF800000> : vector<2x8xf32>
    %80 = vector.multi_reduction <maximumf>, %79, %cst_23 [2] : vector<2x8x8xf32> to vector<2x8xf32>
    %81 = vector.shape_cast %80 : vector<2x8xf32> to vector<2x8x1xf32>
    %82 = vector.broadcast %81 : vector<2x8x1xf32> to vector<2x8x8xf32>
    %83 = arith.subf %79, %82 : vector<2x8x8xf32>
    %84 = math.exp %83 : vector<2x8x8xf32>
    %cst_24 = arith.constant dense<0.000000e+00> : vector<2x8xf32>
    %85 = vector.multi_reduction <add>, %84, %cst_24 [2] : vector<2x8x8xf32> to vector<2x8xf32>
    %86 = vector.shape_cast %85 : vector<2x8xf32> to vector<2x8x1xf32>
    %87 = tpu.reciprocal %86 {approx = true} : vector<2x8x1xf32> -> vector<2x8x1xf32>
    %88 = vector.broadcast %87 : vector<2x8x1xf32> to vector<2x8x8xf32>
    %89 = arith.mulf %84, %88 : vector<2x8x8xf32>
    %90 = arith.truncf %89 : vector<2x8x8xf32> to vector<2x8x8xbf16>
    %cst_25 = arith.constant dense<0.000000e+00> : vector<2x8x32xf32>
    %91 = tpu.matmul %90, %76, %cst_25 {dimension_numbers = #tpu.dot_dimension_numbers<[2], [1], [1], [2], [0, 0, 0, 1, 1, 2], [0], [0]>} : vector<2x8x8xbf16>, vector<2x8x32xbf16>, vector<2x8x32xf32> -> vector<2x8x32xf32>
    %92 = tpu.concatenate %37, %55, %73, %91 in 2 : vector<2x8x32xf32>, vector<2x8x32xf32>, vector<2x8x32xf32>, vector<2x8x32xf32> -> vector<2x8x128xf32>
    %93 = vector.shape_cast %92 : vector<2x8x128xf32> to vector<16x128xf32>
    %94 = arith.truncf %93 : vector<16x128xf32> to vector<16x128xbf16>
    %c0_26 = arith.constant 0 : index
    %c0_27 = arith.constant 0 : index
    %95 = vector.load %arg5[%c0_26, %c0_27] : memref<128x128xbf16, #tpu.memory_space<vmem>>, vector<128x128xbf16>
    %cst_28 = arith.constant dense<0.000000e+00> : vector<16x128xf32>
    %96 = tpu.matmul %94, %95, %cst_28 {dimension_numbers = #tpu.dot_dimension_numbers<[1], [0], [0], [1], [0, 0, 1, 1], [], []>} : vector<16x128xbf16>, vector<128x128xbf16>, vector<16x128xf32> -> vector<16x128xf32>
    %c0_29 = arith.constant 0 : index
    %c0_30 = arith.constant 0 : index
    %97 = vector.load %arg6[%c0_29, %c0_30] : memref<1x128xf32, #tpu.memory_space<vmem>>, vector<1x128xf32>
    %98 = vector.broadcast %97 : vector<1x128xf32> to vector<16x128xf32>
    %99 = arith.addf %96, %98 : vector<16x128xf32>
    %100 = arith.addf %1, %99 : vector<16x128xf32>
    %c0_31 = arith.constant 0 : index
    %c0_32 = arith.constant 0 : index
    %101 = vector.load %arg7[%c0_31, %c0_32] : memref<1x128xf32, #tpu.memory_space<vmem>>, vector<1x128xf32>
    %c0_33 = arith.constant 0 : index
    %c0_34 = arith.constant 0 : index
    %102 = vector.load %arg8[%c0_33, %c0_34] : memref<1x128xf32, #tpu.memory_space<vmem>>, vector<1x128xf32>
    %cst_35 = arith.constant dense<0.000000e+00> : vector<16xf32>
    %103 = vector.multi_reduction <add>, %100, %cst_35 [1] : vector<16x128xf32> to vector<16xf32>
    %104 = vector.shape_cast %103 : vector<16xf32> to vector<16x1xf32>
    %cst_36 = arith.constant 1.280000e+02 : f32
    %105 = vector.broadcast %cst_36 : f32 to vector<16x1xf32>
    %106 = arith.divf %104, %105 : vector<16x1xf32>
    %107 = vector.broadcast %106 : vector<16x1xf32> to vector<16x128xf32>
    %108 = arith.subf %100, %107 : vector<16x128xf32>
    %109 = arith.mulf %108, %108 : vector<16x128xf32>
    %cst_37 = arith.constant dense<0.000000e+00> : vector<16xf32>
    %110 = vector.multi_reduction <add>, %109, %cst_37 [1] : vector<16x128xf32> to vector<16xf32>
    %111 = vector.shape_cast %110 : vector<16xf32> to vector<16x1xf32>
    %cst_38 = arith.constant 1.280000e+02 : f32
    %112 = vector.broadcast %cst_38 : f32 to vector<16x1xf32>
    %113 = arith.divf %111, %112 : vector<16x1xf32>
    %cst_39 = arith.constant 9.99999996E-13 : f32
    %114 = vector.broadcast %cst_39 : f32 to vector<16x1xf32>
    %115 = arith.addf %113, %114 : vector<16x1xf32>
    %116 = math.rsqrt %115 : vector<16x1xf32>
    %117 = vector.broadcast %116 : vector<16x1xf32> to vector<16x128xf32>
    %118 = arith.mulf %108, %117 : vector<16x128xf32>
    %119 = vector.broadcast %101 : vector<1x128xf32> to vector<16x128xf32>
    %120 = arith.mulf %118, %119 : vector<16x128xf32>
    %121 = vector.broadcast %102 : vector<1x128xf32> to vector<16x128xf32>
    %122 = arith.addf %120, %121 : vector<16x128xf32>
    %123 = arith.truncf %122 : vector<16x128xf32> to vector<16x128xbf16>
    %c0_40 = arith.constant 0 : index
    %c0_41 = arith.constant 0 : index
    %124 = vector.load %arg9[%c0_40, %c0_41] : memref<128x512xbf16, #tpu.memory_space<vmem>>, vector<128x512xbf16>
    %cst_42 = arith.constant dense<0.000000e+00> : vector<16x512xf32>
    %125 = tpu.matmul %123, %124, %cst_42 {dimension_numbers = #tpu.dot_dimension_numbers<[1], [0], [0], [1], [0, 0, 1, 1], [], []>} : vector<16x128xbf16>, vector<128x512xbf16>, vector<16x512xf32> -> vector<16x512xf32>
    %c0_43 = arith.constant 0 : index
    %c0_44 = arith.constant 0 : index
    %126 = vector.load %arg10[%c0_43, %c0_44] : memref<1x512xf32, #tpu.memory_space<vmem>>, vector<1x512xf32>
    %127 = vector.broadcast %126 : vector<1x512xf32> to vector<16x512xf32>
    %128 = arith.addf %125, %127 : vector<16x512xf32>
    %cst_45 = arith.constant 5.000000e-01 : f32
    %129 = vector.broadcast %cst_45 : f32 to vector<16x512xf32>
    %130 = arith.mulf %129, %128 : vector<16x512xf32>
    %cst_46 = arith.constant 4.471500e-02 : f32
    %131 = vector.broadcast %cst_46 : f32 to vector<16x512xf32>
    %132 = arith.mulf %131, %128 : vector<16x512xf32>
    %133 = arith.mulf %132, %128 : vector<16x512xf32>
    %134 = arith.mulf %133, %128 : vector<16x512xf32>
    %135 = arith.addf %128, %134 : vector<16x512xf32>
    %cst_47 = arith.constant 0.797884583 : f32
    %136 = vector.broadcast %cst_47 : f32 to vector<16x512xf32>
    %137 = arith.mulf %136, %135 : vector<16x512xf32>
    %138 = math.tanh %137 : vector<16x512xf32>
    %cst_48 = arith.constant 1.000000e+00 : f32
    %139 = vector.broadcast %cst_48 : f32 to vector<16x512xf32>
    %140 = arith.addf %139, %138 : vector<16x512xf32>
    %141 = arith.mulf %130, %140 : vector<16x512xf32>
    %142 = arith.truncf %141 : vector<16x512xf32> to vector<16x512xbf16>
    %c0_49 = arith.constant 0 : index
    %c0_50 = arith.constant 0 : index
    %143 = vector.load %arg11[%c0_49, %c0_50] : memref<512x128xbf16, #tpu.memory_space<vmem>>, vector<512x128xbf16>
    %cst_51 = arith.constant dense<0.000000e+00> : vector<16x128xf32>
    %144 = tpu.matmul %142, %143, %cst_51 {dimension_numbers = #tpu.dot_dimension_numbers<[1], [0], [0], [1], [0, 0, 1, 1], [], []>} : vector<16x512xbf16>, vector<512x128xbf16>, vector<16x128xf32> -> vector<16x128xf32>
    %c0_52 = arith.constant 0 : index
    %c0_53 = arith.constant 0 : index
    %145 = vector.load %arg12[%c0_52, %c0_53] : memref<1x128xf32, #tpu.memory_space<vmem>>, vector<1x128xf32>
    %146 = vector.broadcast %145 : vector<1x128xf32> to vector<16x128xf32>
    %147 = arith.addf %144, %146 : vector<16x128xf32>
    %148 = arith.addf %122, %147 : vector<16x128xf32>
    %c0_54 = arith.constant 0 : index
    %c0_55 = arith.constant 0 : index
    %149 = vector.load %arg13[%c0_54, %c0_55] : memref<1x128xf32, #tpu.memory_space<vmem>>, vector<1x128xf32>
    %c0_56 = arith.constant 0 : index
    %c0_57 = arith.constant 0 : index
    %150 = vector.load %arg14[%c0_56, %c0_57] : memref<1x128xf32, #tpu.memory_space<vmem>>, vector<1x128xf32>
    %cst_58 = arith.constant dense<0.000000e+00> : vector<16xf32>
    %151 = vector.multi_reduction <add>, %148, %cst_58 [1] : vector<16x128xf32> to vector<16xf32>
    %152 = vector.shape_cast %151 : vector<16xf32> to vector<16x1xf32>
    %cst_59 = arith.constant 1.280000e+02 : f32
    %153 = vector.broadcast %cst_59 : f32 to vector<16x1xf32>
    %154 = arith.divf %152, %153 : vector<16x1xf32>
    %155 = vector.broadcast %154 : vector<16x1xf32> to vector<16x128xf32>
    %156 = arith.subf %148, %155 : vector<16x128xf32>
    %157 = arith.mulf %156, %156 : vector<16x128xf32>
    %cst_60 = arith.constant dense<0.000000e+00> : vector<16xf32>
    %158 = vector.multi_reduction <add>, %157, %cst_60 [1] : vector<16x128xf32> to vector<16xf32>
    %159 = vector.shape_cast %158 : vector<16xf32> to vector<16x1xf32>
    %cst_61 = arith.constant 1.280000e+02 : f32
    %160 = vector.broadcast %cst_61 : f32 to vector<16x1xf32>
    %161 = arith.divf %159, %160 : vector<16x1xf32>
    %cst_62 = arith.constant 9.99999996E-13 : f32
    %162 = vector.broadcast %cst_62 : f32 to vector<16x1xf32>
    %163 = arith.addf %161, %162 : vector<16x1xf32>
    %164 = math.rsqrt %163 : vector<16x1xf32>
    %165 = vector.broadcast %164 : vector<16x1xf32> to vector<16x128xf32>
    %166 = arith.mulf %156, %165 : vector<16x128xf32>
    %167 = vector.broadcast %149 : vector<1x128xf32> to vector<16x128xf32>
    %168 = arith.mulf %166, %167 : vector<16x128xf32>
    %169 = vector.broadcast %150 : vector<1x128xf32> to vector<16x128xf32>
    %170 = arith.addf %168, %169 : vector<16x128xf32>
    %171 = arith.truncf %170 : vector<16x128xf32> to vector<16x128xbf16>
    %c0_63 = arith.constant 0 : index
    %c0_64 = arith.constant 0 : index
    %172 = vector.load %arg15[%c0_63, %c0_64] : memref<128x128xbf16, #tpu.memory_space<vmem>>, vector<128x128xbf16>
    %cst_65 = arith.constant dense<0.000000e+00> : vector<16x128xf32>
    %173 = tpu.matmul %171, %172, %cst_65 {dimension_numbers = #tpu.dot_dimension_numbers<[1], [0], [0], [1], [0, 0, 1, 1], [], []>} : vector<16x128xbf16>, vector<128x128xbf16>, vector<16x128xf32> -> vector<16x128xf32>
    %c0_66 = arith.constant 0 : index
    %c0_67 = arith.constant 0 : index
    %174 = vector.load %arg16[%c0_66, %c0_67] : memref<1x128xf32, #tpu.memory_space<vmem>>, vector<1x128xf32>
    %175 = vector.broadcast %174 : vector<1x128xf32> to vector<16x128xf32>
    %176 = arith.addf %173, %175 : vector<16x128xf32>
    %177 = vector.shape_cast %176 : vector<16x128xf32> to vector<2x8x128xf32>
    %c0_68 = arith.constant 0 : index
    %c0_69 = arith.constant 0 : index
    %c0_70 = arith.constant 0 : index
    %178 = vector.load %arg17[%c0_68, %c0_69, %c0_70] : memref<2x8x128xf32, #tpu.memory_space<vmem>>, vector<2x8x128xf32>
    tpu.vector_store %arg17[%c0_68, %c0_69, %c0_70], %177 {strides = array<i32>} : memref<2x8x128xf32, #tpu.memory_space<vmem>>, vector<2x8x128xf32>,
    return
  }
  func.func @transform_0(%arg0: i32) -> (i32, i32, i32) {
    %c0_i32 = arith.constant 0 : i32
    %c0_i32_0 = arith.constant 0 : i32
    %c0_i32_1 = arith.constant 0 : i32
    return %arg0, %c0_i32, %c0_i32_0 : i32, i32, i32
  }
  func.func @transform_1(%arg0: i32) -> (i32, i32, i32) {
    %c0_i32 = arith.constant 0 : i32
    %c0_i32_0 = arith.constant 0 : i32
    %c0_i32_1 = arith.constant 0 : i32
    return %arg0, %c0_i32, %c0_i32_0 : i32, i32, i32
  }
  func.func @transform_2(%arg0: i32) -> (i32, i32) {
    %c0_i32 = arith.constant 0 : i32
    %c0_i32_0 = arith.constant 0 : i32
    %c0_i32_1 = arith.constant 0 : i32
    return %c0_i32, %c0_i32_0 : i32, i32
  }
  func.func @transform_3(%arg0: i32) -> (i32, i32) {
    %c0_i32 = arith.constant 0 : i32
    %c0_i32_0 = arith.constant 0 : i32
    %c0_i32_1 = arith.constant 0 : i32
    return %c0_i32, %c0_i32_0 : i32, i32
  }
  func.func @transform_4(%arg0: i32) -> (i32, i32) {
    %c0_i32 = arith.constant 0 : i32
    %c0_i32_0 = arith.constant 0 : i32
    %c0_i32_1 = arith.constant 0 : i32
    return %c0_i32, %c0_i32_0 : i32, i32
  }
  func.func @transform_5(%arg0: i32) -> (i32, i32) {
    %c0_i32 = arith.constant 0 : i32
    %c0_i32_0 = arith.constant 0 : i32
    %c0_i32_1 = arith.constant 0 : i32
    return %c0_i32, %c0_i32_0 : i32, i32
  }
  func.func @transform_6(%arg0: i32) -> (i32, i32) {
    %c0_i32 = arith.constant 0 : i32
    %c0_i32_0 = arith.constant 0 : i32
    %c0_i32_1 = arith.constant 0 : i32
    return %c0_i32, %c0_i32_0 : i32, i32
  }
  func.func @transform_7(%arg0: i32) -> (i32, i32) {
    %c0_i32 = arith.constant 0 : i32
    %c0_i32_0 = arith.constant 0 : i32
    %c0_i32_1 = arith.constant 0 : i32
    return %c0_i32, %c0_i32_0 : i32, i32
  }
  func.func @transform_8(%arg0: i32) -> (i32, i32) {
    %c0_i32 = arith.constant 0 : i32
    %c0_i32_0 = arith.constant 0 : i32
    %c0_i32_1 = arith.constant 0 : i32
    return %c0_i32, %c0_i32_0 : i32, i32
  }
  func.func @transform_9(%arg0: i32) -> (i32, i32) {
    %c0_i32 = arith.constant 0 : i32
    %c0_i32_0 = arith.constant 0 : i32
    %c0_i32_1 = arith.constant 0 : i32
    return %c0_i32, %c0_i32_0 : i32, i32
  }
  func.func @transform_10(%arg0: i32) -> (i32, i32) {
    %c0_i32 = arith.constant 0 : i32
    %c0_i32_0 = arith.constant 0 : i32
    %c0_i32_1 = arith.constant 0 : i32
    return %c0_i32, %c0_i32_0 : i32, i32
  }
  func.func @transform_11(%arg0: i32) -> (i32, i32) {
    %c0_i32 = arith.constant 0 : i32
    %c0_i32_0 = arith.constant 0 : i32
    %c0_i32_1 = arith.constant 0 : i32
    return %c0_i32, %c0_i32_0 : i32, i32
  }
  func.func @transform_12(%arg0: i32) -> (i32, i32) {
    %c0_i32 = arith.constant 0 : i32
    %c0_i32_0 = arith.constant 0 : i32
    %c0_i32_1 = arith.constant 0 : i32
    return %c0_i32, %c0_i32_0 : i32, i32
  }
  func.func @transform_13(%arg0: i32) -> (i32, i32) {
    %c0_i32 = arith.constant 0 : i32
    %c0_i32_0 = arith.constant 0 : i32
    %c0_i32_1 = arith.constant 0 : i32
    return %c0_i32, %c0_i32_0 : i32, i32
  }
  func.func @transform_14(%arg0: i32) -> (i32, i32) {
    %c0_i32 = arith.constant 0 : i32
    %c0_i32_0 = arith.constant 0 : i32
    %c0_i32_1 = arith.constant 0 : i32
    return %c0_i32, %c0_i32_0 : i32, i32
  }
  func.func @transform_15(%arg0: i32) -> (i32, i32) {
    %c0_i32 = arith.constant 0 : i32
    %c0_i32_0 = arith.constant 0 : i32
    %c0_i32_1 = arith.constant 0 : i32
    return %c0_i32, %c0_i32_0 : i32, i32
  }
  func.func @transform_16(%arg0: i32) -> (i32, i32, i32) {
    %c0_i32 = arith.constant 0 : i32
    %c0_i32_0 = arith.constant 0 : i32
    %c0_i32_1 = arith.constant 0 : i32
    return %arg0, %c0_i32, %c0_i32_0 : i32, i32, i32
  }
}

</mosaic_0001>

<bundles_post_ra>
// kernel: bert_crf_forward.2
= control target key start
LH: loop header
LB: loop body
LE: loop exit
PB: predicated region body
PF: predicated region fallthrough
CT: control target
= control target key end

     0   :  { %s3416_s0 = inlined_call_operand.vmem [shape: f32[2,8,128], index: 0, kind: input, shape index: {}]   ;;  %s3417_s1 = inlined_call_operand.vmem [shape: f32[2,1,8], index: 1, kind: input, shape index: {}]   ;;  %s3418_s2 = inlined_call_operand.vmem [shape: f32[1,8,128], index: 2, kind: input, shape index: {}]   ;;  %s3419_s3 = inlined_call_operand.vmem [shape: f32[1,128], index: 3, kind: input, shape index: {}]   ;;  %s3420_s4 = inlined_call_operand.vmem [shape: f32[1,128], index: 4, kind: input, shape index: {}]   ;;  %s3421_s5 = inlined_call_operand.vmem [shape: bf16[128,384], index: 5, kind: input, shape index: {}]   ;;  %s3422_s6 = inlined_call_operand.vmem [shape: f32[1,384], index: 6, kind: input, shape index: {}]   ;;  %s3423_s7 = inlined_call_operand.hbm [shape: bf16[128,128], index: 7, kind: input, shape index: {}]   ;;  %s3424_s8 = inlined_call_operand.vmem [shape: f32[1,128], index: 8, kind: input, shape index: {}]   ;;  %s3425_s9 = inlined_call_operand.vmem [shape: f32[1,128], index: 9, kind: input, shape index: {}]   ;;  %s3426_s10 = inlined_call_operand.vmem [shape: f32[1,128], index: 10, kind: input, shape index: {}]   ;;  %s3427_s11 = inlined_call_operand.hbm [shape: bf16[128,512], index: 11, kind: input, shape index: {}]   ;;  %s3428_s12 = inlined_call_operand.vmem [shape: f32[1,512], index: 12, kind: input, shape index: {}]   ;;  %s3429_s13 = inlined_call_operand.hbm [shape: bf16[512,128], index: 13, kind: input, shape index: {}]   ;;  %s3430_s14 = inlined_call_operand.vmem [shape: f32[1,128], index: 14, kind: input, shape index: {}]   ;;  %s3431_s15 = inlined_call_operand.vmem [shape: f32[1,128], index: 15, kind: input, shape index: {}]   ;;  %s3432_s16 = inlined_call_operand.vmem [shape: f32[1,128], index: 16, kind: input, shape index: {}]   ;;  %s3433_s17 = inlined_call_operand.vmem [shape: f32[2,8,128], index: 17, kind: output, shape index: {}]  }
   0x1   :  { %3436 = sst [smem:[#allocation9_spill]] %s3416_s0 }
   0x2   :  { %3437 = sst [smem:[#allocation10_spill]] %s3417_s1 }
   0x3   :  { %22 = vsyncpa [#allocation3], 0 }
   0x4   :  { %23 = vsyncpa [#allocation5], 0  ;;  %s2887_s24 = smov [#allocation4]  }
   0x5   :  { %s61_s25 = sshll.u32 %s2887_s24, 4  ;;  %s62_s25 = int_to_ptr.vmem [resolvable:$true] %s61_s25 }
   0x6   :  { %s2831_s26 = scalar_lea.vmem %s62_s25, 4096  ;;  %p2836_p1 = scmp.lt.s32.totalorder %s62_s25, %s62_s25 }
   0x7   :  { %p2832_p0 = scmp.ne.s32.totalorder %s62_s25, %s2831_s26  ;;  %p2837_p2 = scmp.lt.s32.totalorder %s2831_s26, %s2831_s26 }
   0x9   :  { %p2838_p3 = por %p2837_p2, %p2836_p1 }
   0xb   :  { %p2839_p4 = pnand %p2838_p3, %p2832_p0 }
   0xd   :  { %2842 = shalt.err (!%p2839_p4)
}
   0xe   :  { %s2888_s27 = smov 256   ;;  %s2889_s28 = smov 16  }
   0xf   :  { %67 = dma.hbm_to_vmem [thread:$0]  %s3427_s11, 4096, %s62_s25, [#allocation5], %s2888_s27, %s2888_s27, %s2889_s28  }
  0x10   :  { %s2890_s30 = smov [#allocation2]  }
  0x11   :  { %s43_s18 = sshll.u32 %s2890_s30, 4  ;;  %s44_s18 = int_to_ptr.vmem [resolvable:$true] %s43_s18 }
  0x12   :  { %s2851_s19 = scalar_lea.vmem %s44_s18, 1024  ;;  %p2856_p6 = scmp.lt.s32.totalorder %s44_s18, %s44_s18 }
  0x13   :  { %p2852_p5 = scmp.ne.s32.totalorder %s44_s18, %s2851_s19  ;;  %p2857_p7 = scmp.lt.s32.totalorder %s2851_s19, %s2851_s19 }
  0x15   :  { %p2858_p8 = por %p2857_p7, %p2856_p6 }
  0x17   :  { %p2859_p9 = pnand %p2858_p8, %p2852_p5 }
  0x19   :  { %2862 = shalt.err (!%p2859_p9)
}
  0x1a   :  { %s2891_s1 = smov 64   ;;  %s2892_s20 = smov 4  }
  0x1b   :  { %49 = dma.hbm_to_vmem [thread:$0]  %s3423_s7, 1024, %s44_s18, [#allocation3], %s2891_s1, %s2891_s1, %s2892_s20  }
  0x1c   :  { %s2893_s23 = smov [#allocation6]  }
  0x1d   :  { %s75_s11 = sshll.u32 %s2893_s23, 4  ;;  %s76_s11 = int_to_ptr.vmem [resolvable:$true] %s75_s11 }
  0x1e   :  { %s2871_s24 = scalar_lea.vmem %s76_s11, 4096  ;;  %p2876_p11 = scmp.lt.s32.totalorder %s76_s11, %s76_s11 }
  0x1f   :  { %p2872_p10 = scmp.ne.s32.totalorder %s76_s11, %s2871_s24  ;;  %p2877_p12 = scmp.lt.s32.totalorder %s2871_s24, %s2871_s24 }
  0x21   :  { %p2878_p13 = por %p2877_p12, %p2876_p11 }
  0x23   :  { %p2879_p0 = pnand %p2878_p13, %p2872_p10 }
  0x25   :  { %2882 = shalt.err (!%p2879_p0)
}
  0x26   :  { %81 = dma.hbm_to_vmem [thread:$0]  %s3429_s13, 4096, %s76_s11, [#allocation5], %s2891_s1, %s2891_s1, %s2892_s20  }
  0x27   :  { %2883 = dma.done.wait [#allocation3], 1024  }
  0x28   :  { %2884 = vsyncadd [#allocation3], 4294966272 }
  0x29   :  { %2885 = dma.done.wait [#allocation5], 8192  }
  0x2a   :  { %2886 = vsyncadd [#allocation5], 4294959104  ;;  %s3438_s28 = sld [smem:[#allocation9_spill]]  ;;  %v100_v1 = vld [vmem:[%s3418_s2] sm:$0xff]  ;;  %v2643_v5 = vld [vmem:[%s3421_s5 + $0xac] ss:$12 sps:$4 sm:$0xff]   ;;  %v181_v56 = vlaneseq }
  0x2b   :  { %v2645_v6 = vld [vmem:[%s3421_s5 + $0xa8] ss:$12 sps:$4 sm:$0xff]   ;;  %v2894_v7 = vmov 0.0   ;;  %v2646_v8 = vld [vmem:[%s3421_s5 + $0xb0] ss:$12 sps:$4 sm:$0xff]   ;;  %324 = vmatprep.subr.bf16.mxu0 %v2643_v5  ;;  %v2895_v30 = vmov 0  }
  0x2c   :  { %2480 = vmatprep.subr.bf16.mxu1 %v2894_v7  ;;  %325 = vmatpush1.bf16.msra.mxu0 %v2645_v6  ;;  %v2647_v17 = vld [vmem:[%s3421_s5 + $0x94] ss:$12 sps:$4 sm:$0xff]   ;;  %v2649_v18 = vld [vmem:[%s3421_s5 + $0x90] ss:$12 sps:$4 sm:$0xff]   ;;  %v2650_v19 = vld [vmem:[%s3421_s5 + $0x98] ss:$12 sps:$4 sm:$0xff]  }
  0x2d   :  { %2481 = vmatpush3.bf16.msra.mxu1 %v2646_v8  ;;  %326 = vmatprep.subr.bf16.mxu0 %v2647_v17  ;;  %v2651_v20 = vld [vmem:[%s3421_s5 + $0x7c] ss:$12 sps:$4 sm:$0xff]   ;;  %v2653_v21 = vld [vmem:[%s3421_s5 + $0x78] ss:$12 sps:$4 sm:$0xff]   ;;  %v2654_v22 = vld [vmem:[%s3421_s5 + $0x80] ss:$12 sps:$4 sm:$0xff]  }
  0x2e   :  { %2482 = vmatprep.subr.bf16.mxu1 %v2894_v7  ;;  %v2655_v23 = vld [vmem:[%s3421_s5 + $0x64] ss:$12 sps:$4 sm:$0xff]   ;;  %v2657_v24 = vld [vmem:[%s3421_s5 + $0x60] ss:$12 sps:$4 sm:$0xff]   ;;  %v2658_v25 = vld [vmem:[%s3421_s5 + $0x68] ss:$12 sps:$4 sm:$0xff]   ;;  %356 = vmatprep.mubr.bf16.mxu0 %v2895_v30 }
  0x2f   :  { %v2659_v26 = vld [vmem:[%s3421_s5 + $0x4c] ss:$12 sps:$4 sm:$0xff]   ;;  %v2661_v27 = vld [vmem:[%s3421_s5 + $0x48] ss:$12 sps:$4 sm:$0xff]   ;;  %v2662_v28 = vld [vmem:[%s3421_s5 + $0x50] ss:$12 sps:$4 sm:$0xff]  }
  0x30   :  { %v98_v0 = vld [vmem:[%s3438_s28] sm:$0xff]  ;;  %v99_v2 = vld [vmem:[%s3438_s28 + $0x8] sm:$0xff]  ;;  %327 = vmatpush1.bf16.msra.mxu0 %v2649_v18  ;;  %vm2896_vm0 = vmmov 0   ;;  %v2665_v31 = vld [vmem:[%s3421_s5 + $0x30] ss:$12 sps:$4 sm:$0xff]   ;;  %v3122_v57 = vshrl.u32 %v181_v56, 7 }
  0x31   :  { %v101_v3 = vadd.f32 %v100_v1, %v98_v0  ;;  %v102_v4 = vadd.f32 %v100_v1, %v99_v2  ;;  %2483 = vmatpush3.bf16.msra.mxu1 %v2650_v19  ;;  %328 = vmatprep.subr.bf16.mxu0 %v2651_v20  ;;  %v2663_v29 = vld [vmem:[%s3421_s5 + $0x34] ss:$12 sps:$4 sm:$0xff]   ;;  %v2666_v32 = vld [vmem:[%s3421_s5 + $0x38] ss:$12 sps:$4 sm:$0xff]   ;;  %v2667_v33 = vld [vmem:[%s3421_s5 + $0x1c] ss:$12 sps:$4 sm:$0xff]  }
  0x32   :  { %2484 = vmatprep.subr.bf16.mxu1 %v2894_v7  ;;  %2496 = vmatprep.mubr.msk.bf16.mxu1 %vm2896_vm0, %v2894_v7  ;;  %v2669_v34 = vld [vmem:[%s3421_s5 + $0x18] ss:$12 sps:$4 sm:$0xff]   ;;  %v2670_v35 = vld [vmem:[%s3421_s5 + $0x20] ss:$12 sps:$4 sm:$0xff]   ;;  %v2674_v38 = vld [vmem:[%s3421_s5 + $0x8] ss:$12 sps:$4 sm:$0xff]  }
  0x33   :  { %105 = vadd.xlane.f32.xlu0 %v101_v3  ;;  %v2671_v36 = vld [vmem:[%s3421_s5 + $0x4] ss:$12 sps:$4 sm:$0xff]   ;;  %v2673_v37 = vld [vmem:[%s3421_s5] ss:$12 sps:$4 sm:$0xff]   ;;  %v187_v58 = vsub.s32 1, %v3122_v57  ;;  %v183_v59 = vsub.s32 0, %v3122_v57 }
  0x34   :  { %329 = vmatpush1.bf16.msra.mxu0 %v2653_v21  ;;  %v2264_v47 = vld [vmem:[%s3419_s3] ss:$0 sm:$0xff]  ;;  %v191_v61 = vsub.s32 2, %v3122_v57  ;;  %vm428_vm1 = vcmask 261120   ;;  %vm549_vm2 = vcmask 1043456   ;;  %s3439_s30 = sld [smem:[#allocation10_spill]] }
  0x35   :  { %2485 = vmatpush3.bf16.msra.mxu1 %v2654_v22  ;;  %330 = vmatprep.subr.bf16.mxu0 %v2655_v23  ;;  %v2265_v51 = vld [vmem:[%s3420_s4] ss:$0 sm:$0xff]  ;;  %vm521_vm3 = vcmask 64512   ;;  %s2897_s19 = smov 96   ;;  %s2898_s20 = smov 32   ;;  %vm1331_vm4 = vcmask 523264  }
  0x36   :  { %2486 = vmatprep.subr.bf16.mxu1 %v2894_v7  ;;  %v179_v60 = vld [vmem:[%s3422_s6] sm:$0x7]  ;;  %vm1334_vm5 = vcmask 785408  }
  0x37   :  { %107 = vadd.xlane.f32.xlu0 %v102_v4  ;;  %v188_v62 = vrot.slane %v179_v60, %v187_v58  ;;  %v184_v1 = vrot.slane %v179_v60, %v183_v59 }
  0x38   :  { %331 = vmatpush1.bf16.msra.mxu0 %v2657_v24 }
  0x39   :  { %2487 = vmatpush3.bf16.msra.mxu1 %v2658_v25  ;;  %332 = vmatprep.subr.bf16.mxu0 %v2659_v26 }
  0x3a   :  { %2488 = vmatprep.subr.bf16.mxu1 %v2894_v7  ;;  %v3168_v26 = vld [vmem:[%s3439_s30] ss:$0 sm:$0xff] }
  0x3c   :  { %333 = vmatpush1.bf16.msra.mxu0 %v2661_v27 }
  0x3d   :  { %2489 = vmatpush3.bf16.msra.mxu1 %v2662_v28  ;;  %334 = vmatprep.subr.bf16.mxu0 %v2663_v29 }
  0x3e   :  { %2490 = vmatprep.subr.bf16.mxu1 %v2894_v7 }
  0x40   :  { %335 = vmatpush1.bf16.msra.mxu0 %v2665_v31 }
  0x41   :  { %2491 = vmatpush3.bf16.msra.mxu1 %v2666_v32  ;;  %336 = vmatprep.subr.bf16.mxu0 %v2667_v33 }
  0x42   :  { %2492 = vmatprep.subr.bf16.mxu1 %v2894_v7 }
  0x44   :  { %337 = vmatpush1.bf16.msra.mxu0 %v2669_v34  ;;  %v3175_v34 = vld [vmem:[%s3439_s30 + $0x1] ss:$0 sm:$0xff] }
  0x45   :  { %2493 = vmatpush3.bf16.msra.mxu1 %v2670_v35  ;;  %338 = vmatprep.subr.bf16.mxu0 %v2671_v36 }
  0x46   :  { %2494 = vmatprep.subr.bf16.mxu1 %v2894_v7 }
  0x48   :  { %339 = vmatpush1.bf16.msra.mxu0 %v2673_v37 }
  0x49   :  { %2495 = vmatpush3.bf16.msra.mxu1 %v2674_v38  ;;  %2524 = vmatprep.subr.bf16.mxu0 %v2894_v7 }
  0x4a   :  { %2500 = vmatprep.subr.bf16.mxu1 %v2894_v7 }
  0xbc   :  { %v106_v9 = vpop.xlane.xlu0 %105 }
  0xbd   :  { %v110_v10 = vmul.f32 0.0078125, %v106_v9 }
  0xbf   :  { %v3022_v11 = vsub.f32 %v101_v3, %v110_v10 }
  0xc0   :  { %v108_v12 = vpop.xlane.xlu0 %107 }
  0xc1   :  { %v111_v13 = vmul.f32 0.0078125, %v108_v12  ;;  %v114_v14 = vmul.f32 %v3022_v11, %v3022_v11 }
  0xc3   :  { %v3026_v15 = vsub.f32 %v102_v4, %v111_v13  ;;  %116 = vadd.xlane.f32.xlu1 %v114_v14  ;;  %v192_v4 = vrot.slane %v179_v60, %v191_v61 }
  0xc5   :  { %v115_v16 = vmul.f32 %v3026_v15, %v3026_v15 }
  0xc7   :  { %118 = vadd.xlane.f32.xlu1 %v115_v16 }
 0x14c   :  { %v117_v39 = vpop.xlane.xlu1 %116 }
 0x14d   :  { %v120_v40 = vmul.f32 0.0078125, %v117_v39 }
 0x14f   :  { %v122_v41 = vadd.f32 1e-12, %v120_v40 }
 0x150   :  { %v119_v42 = vpop.xlane.xlu1 %118 }
 0x151   :  { %2763 = vrsqrt.f32 %v122_v41  ;;  %v121_v43 = vmul.f32 0.0078125, %v119_v42 }
 0x153   :  { %v123_v44 = vadd.f32 1e-12, %v121_v43 }
 0x155   :  { %2765 = vrsqrt.f32 %v123_v44 }
 0x15e   :  { %v2764_v45 = vpop.eup %2763 }
 0x15f   :  { %v126_v46 = vmul.f32 %v2764_v45, %v3022_v11 }
 0x161   :  { %v134_v50 = vmul.f32 %v2264_v47, %v126_v46 }
 0x162   :  { %v2766_v48 = vpop.eup %2765 }
 0x163   :  { %v127_v49 = vmul.f32 %v2766_v48, %v3026_v15  ;;  %v3112_v53 = vadd.f32 %v2265_v51, %v134_v50 }
 0x165   :  { %v135_v52 = vmul.f32 %v2264_v47, %v127_v49 }
 0x167   :  { %v3114_v54 = vadd.f32 %v2265_v51, %v135_v52 }
 0x169   :  { %v144_v55 = vpack.c.bf16 %v3114_v54, %v3112_v53 }
 0x16b   :  { %357 = vmatmul.mubr.bf16.vlgmr.msra.gmra.mxu0 %v144_v55  ;;  %2497 = vmatmul.mubr.bf16.vlgmr.msra.gmra.mxu1 %v144_v55 }
 0x16c   :  { %2502 = vmatprep.mubr.msk.bf16.mxu1 %vm2896_vm0, %v2894_v7  ;;  %2526 = vmatprep.mubr.msk.bf16.mxu0 %vm2896_vm0, %v2894_v7 }
 0x22b   :  { %v358_v63 = vpop.f32.mrf.mxu0  ;;  %v401_v0 = vpop.f32.mrf.mxu1 }
 0x22c   :  { %v359_v9 = vadd.f32 %v358_v63, %v184_v1  ;;  %v402_v20 = vadd.f32 %v401_v0, %v192_v4 }
 0x22d   :  { %v360_v2 = vpop.f32.mrf.mxu0  ;;  %v2498_v3 = vpop.f32.mrf.mxu1 }
 0x22e   :  { %v361_v5 = vadd.f32 %v360_v2, %v188_v62  ;;  %v408_v16 = vmul.f32 0.17677669, %v359_v9  ;;  %v3154_v23 = vpack.c.bf16 %v402_v20, %v402_v20 }
 0x22f   :  { %v362_v6 = vpop.f32.mrf.mxu0  ;;  %v404_v8 = vpop.f32.mrf.mxu1 }
 0x230   :  { %v3136_v10 = vpack.c.bf16 %v361_v5, %v361_v5  ;;  %v3138_v11 = vadd.f32 %v404_v8, %v192_v4  ;;  %v3145_v18 = vpack.c.bf16 %v408_v16, %v408_v16  ;;  %v363_v19 = vadd.f32 %v362_v6, %v184_v1 }
 0x231   :  { %v364_v12 = vpop.f32.mrf.mxu0  ;;  %v2499_v13 = vpop.f32.mrf.mxu1  ;;  %v551_v25 = vsel %vm549_vm2, %v3154_v23, 0 }
 0x232   :  { %v365_v14 = vadd.f32 %v364_v12, %v188_v62  ;;  %v433_v15 = vsel %vm428_vm1, %v3136_v10, 0  ;;  %v409_v22 = vmul.f32 0.17677669, %v363_v19  ;;  %v3196_v0 = vpack.c.bf16 %v3138_v11, %v3138_v11 }
 0x233   :  { %2501 = vmatpush3.bf16.xpose.msra.mxu1 %v433_v15 }
 0x234   :  { %2506 = vmatprep.subr.bf16.mxu1 %v2894_v7  ;;  %v3143_v17 = vpack.c.bf16 %v365_v14, %v365_v14  ;;  %v3156_v24 = vpack.c.bf16 %v409_v22, %v409_v22  ;;  %v597_v3 = vsel %vm549_vm2, %v3196_v0, 0 }
 0x236   :  { %v479_v21 = vsel %vm428_vm1, %v3143_v17, 0 }
 0x23a   :  { %2503 = vmatmul.mubr.msk.bf16.vlgmr.msra.gmra.mxu1 %vm428_vm1, %v3145_v18 }
 0x23b   :  { %2507 = vmatpush3.bf16.xpose.msra.mxu1 %v479_v21  ;;  %2508 = vmatprep.mubr.msk.bf16.mxu1 %vm2896_vm0, %v2894_v7 }
 0x23c   :  { %2512 = vmatprep.subr.bf16.mxu1 %v2894_v7 }
 0x242   :  { %2509 = vmatmul.mubr.msk.bf16.vlgmr.msra.gmra.mxu1 %vm428_vm1, %v3156_v24 }
 0x243   :  { %2513 = vmatpush3.bf16.msra.mxu1 %v551_v25  ;;  %2514 = vmatprep.mubr.msk.bf16.mxu1 %vm2896_vm0, %v2894_v7 }
 0x244   :  { %2518 = vmatprep.subr.bf16.mxu1 %v2894_v7 }
 0x2fa   :  { %v469_v27 = vpop.f32.mrf.mxu1 }
 0x2fb   :  { %v470_v28 = vadd.f32 %v3168_v26, %v469_v27 }
 0x2fc   :  { %v2504_v29 = vpop.f32.mrf.mxu1 }
 0x2fd   :  { %v522_v31 = vsel %vm521_vm3, %v470_v28, -inf }
 0x2fe   :  { %523 = vmax.xlane.f32.xlu0 %v522_v31  ;;  %v472_v32 = vpop.f32.mrf.mxu1 }
 0x300   :  { %v2505_v33 = vpop.f32.mrf.mxu1 }
 0x302   :  { %v515_v35 = vpop.f32.mrf.mxu1 }
 0x303   :  { %v516_v36 = vadd.f32 %v3175_v34, %v515_v35 }
 0x304   :  { %v2510_v37 = vpop.f32.mrf.mxu1 }
 0x305   :  { %v525_v38 = vsel %vm521_vm3, %v516_v36, -inf }
 0x306   :  { %526 = vmax.xlane.f32.xlu1 %v525_v38  ;;  %v518_v39 = vpop.f32.mrf.mxu1 }
 0x308   :  { %v2511_v40 = vpop.f32.mrf.mxu1 }
 0x317   :  { %695 = vrot.lane.b32.xlu1 %v3143_v17, %s2897_s19 }
 0x387   :  { %v524_v41 = vpop.xlane.xlu0 %523 }
 0x388   :  { %v528_v42 = vsub.f32 %v470_v28, %v524_v41 }
 0x38a   :  { %v530_v43 = vmul.f32 1.442695, %v528_v42 }
 0x38c   :  { %2767 = vpow2.f32 %v530_v43 }
 0x38f   :  { %v527_v44 = vpop.xlane.xlu1 %526 }
 0x390   :  { %v529_v45 = vsub.f32 %v516_v36, %v527_v44 }
 0x392   :  { %v532_v46 = vmul.f32 1.442695, %v529_v45 }
 0x393   :  { %v696_v52 = vpop.permute.xlu1 %695 }
 0x394   :  { %2769 = vpow2.f32 %v532_v46  ;;  %v701_v8 = vsel %vm428_vm1, %v696_v52, 0 }
 0x399   :  { %v2768_v47 = vpop.eup %2767 }
 0x39a   :  { %v534_v48 = vsel %vm521_vm3, %v2768_v47, 0.0 }
 0x39b   :  { %535 = vadd.xlane.f32.xlu0 %v534_v48 }
 0x3a1   :  { %v2770_v49 = vpop.eup %2769 }
 0x3a2   :  { %v537_v50 = vsel %vm521_vm3, %v2770_v49, 0.0 }
 0x3a3   :  { %538 = vadd.xlane.f32.xlu1 %v537_v50 }
 0x3b1   :  { %643 = vrot.lane.b32.xlu0 %v3136_v10, %s2897_s19 }
 0x3b4   :  { %640 = vrot.lane.b32.xlu1 %v3145_v18, %s2897_s19 }
 0x3b8   :  { %692 = vrot.lane.b32.xlu1 %v3156_v24, %s2897_s19 }
 0x424   :  { %v536_v51 = vpop.xlane.xlu0 %535 }
 0x425   :  { %2771 = vrcp.f32 %v536_v51 }
 0x428   :  { %v644_v55 = vpop.permute.xlu0 %643 }
 0x429   :  { %v649_v56 = vsel %vm428_vm1, %v644_v55, 0 }
 0x42a   :  { %2525 = vmatpush3.bf16.xpose.msra.mxu0 %v649_v56 }
 0x42b   :  { %2536 = vmatprep.subr.bf16.mxu0 %v2894_v7 }
 0x42c   :  { %v539_v60 = vpop.xlane.xlu1 %538 }
 0x42d   :  { %2773 = vrcp.f32 %v539_v60 }
 0x430   :  { %v641_v62 = vpop.permute.xlu1 %640 }
 0x431   :  { %2527 = vmatmul.mubr.msk.bf16.vlgmr.msra.gmra.mxu0 %vm428_vm1, %v641_v62 }
 0x432   :  { %v2772_v63 = vpop.eup %2771  ;;  %2538 = vmatprep.mubr.msk.bf16.mxu0 %vm2896_vm0, %v2894_v7 }
 0x433   :  { %v542_v1 = vmul.f32 %v2772_v63, %v2768_v47 }
 0x434   :  { %v693_v9 = vpop.permute.xlu1 %692 }
 0x435   :  { %v544_v2 = vpack.c.bf16 %v542_v1, %v542_v1 }
 0x437   :  { %2515 = vmatmul.mubr.msk.bf16.vlgmr.msra.gmra.mxu1 %vm521_vm3, %v544_v2 }
 0x438   :  { %2519 = vmatpush3.bf16.msra.mxu1 %v597_v3  ;;  %2520 = vmatprep.mubr.msk.bf16.mxu1 %vm2896_vm0, %v2894_v7 }
 0x439   :  { %2530 = vmatprep.subr.bf16.mxu1 %v2894_v7 }
 0x43a   :  { %v2774_v4 = vpop.eup %2773 }
 0x43b   :  { %v543_v5 = vmul.f32 %v2774_v4, %v2770_v49 }
 0x43d   :  { %v545_v6 = vpack.c.bf16 %v543_v5, %v543_v5 }
 0x43f   :  { %2521 = vmatmul.mubr.msk.bf16.vlgmr.msra.gmra.mxu1 %vm521_vm3, %v545_v6 }
 0x440   :  { %2531 = vmatpush3.bf16.xpose.msra.mxu1 %v701_v8  ;;  %2532 = vmatprep.mubr.msk.bf16.mxu1 %vm2896_vm0, %v2894_v7 }
 0x441   :  { %2542 = vmatprep.subr.bf16.mxu1 %v2894_v7 }
 0x447   :  { %2533 = vmatmul.mubr.msk.bf16.vlgmr.msra.gmra.mxu1 %vm428_vm1, %v693_v9 }
 0x448   :  { %2544 = vmatprep.mubr.msk.bf16.mxu1 %vm2896_vm0, %v2894_v7 }
 0x4f1   :  { %v685_v11 = vpop.f32.mrf.mxu0 }
 0x4f2   :  { %v686_v12 = vadd.f32 %v3168_v26, %v685_v11 }
 0x4f3   :  { %v2528_v13 = vpop.f32.mrf.mxu0 }
 0x4f4   :  { %v743_v14 = vsel %vm521_vm3, %v686_v12, -inf }
 0x4f5   :  { %744 = vmax.xlane.f32.xlu0 %v743_v14  ;;  %v688_v15 = vpop.f32.mrf.mxu0 }
 0x4f7   :  { %v3214_v16 = vpop.f32.mrf.mxu1  ;;  %v2529_v19 = vpop.f32.mrf.mxu0 }
 0x4f9   :  { %v2516_v20 = vpop.f32.mrf.mxu1 }
 0x4fb   :  { %v590_v21 = vpop.f32.mrf.mxu1 }
 0x4fd   :  { %v2517_v22 = vpop.f32.mrf.mxu1 }
 0x4ff   :  { %v3216_v25 = vpop.f32.mrf.mxu1 }
 0x501   :  { %v2522_v27 = vpop.f32.mrf.mxu1 }
 0x503   :  { %v636_v28 = vpop.f32.mrf.mxu1 }
 0x505   :  { %v2523_v29 = vpop.f32.mrf.mxu1 }
 0x507   :  { %v737_v31 = vpop.f32.mrf.mxu1 }
 0x508   :  { %v738_v32 = vadd.f32 %v3175_v34, %v737_v31 }
 0x509   :  { %v2534_v33 = vpop.f32.mrf.mxu1 }
 0x50a   :  { %v746_v35 = vsel %vm521_vm3, %v738_v32, -inf }
 0x50b   :  { %747 = vmax.xlane.f32.xlu1 %v746_v35  ;;  %v740_v36 = vpop.f32.mrf.mxu1 }
 0x50d   :  { %v2535_v37 = vpop.f32.mrf.mxu1 }
 0x51c   :  { %817 = vrot.lane.b32.xlu1 %v3196_v0, %s2897_s19 }
 0x520   :  { %867 = vrot.lane.b32.xlu1 %v3136_v10, %s2891_s1 }
 0x524   :  { %917 = vrot.lane.b32.xlu1 %v3143_v17, %s2891_s1 }
 0x528   :  { %915 = vrot.lane.b32.xlu1 %v3156_v24, %s2891_s1 }
 0x57e   :  { %v745_v38 = vpop.xlane.xlu0 %744 }
 0x57f   :  { %v749_v39 = vsub.f32 %v686_v12, %v745_v38 }
 0x581   :  { %v751_v40 = vmul.f32 1.442695, %v749_v39 }
 0x583   :  { %2775 = vpow2.f32 %v751_v40 }
 0x590   :  { %v2776_v41 = vpop.eup %2775 }
 0x591   :  { %v755_v42 = vsel %vm521_vm3, %v2776_v41, 0.0 }
 0x592   :  { %756 = vadd.xlane.f32.xlu0 %v755_v42 }
 0x594   :  { %v748_v43 = vpop.xlane.xlu1 %747 }
 0x595   :  { %v750_v44 = vsub.f32 %v738_v32, %v748_v43 }
 0x597   :  { %v753_v45 = vmul.f32 1.442695, %v750_v44 }
 0x598   :  { %v818_v46 = vpop.permute.xlu1 %817 }
 0x599   :  { %2777 = vpow2.f32 %v753_v45  ;;  %v823_v47 = vsel %vm549_vm2, %v818_v46, 0 }
 0x59a   :  { %2543 = vmatpush3.bf16.msra.mxu1 %v823_v47 }
 0x59b   :  { %2554 = vmatprep.subr.bf16.mxu1 %v2894_v7 }
 0x59c   :  { %v868_v62 = vpop.permute.xlu1 %867 }
 0x59d   :  { %v873_v1 = vsel %vm428_vm1, %v868_v62, 0 }
 0x5a0   :  { %v918_v4 = vpop.permute.xlu1 %917 }
 0x5a1   :  { %v923_v8 = vsel %vm428_vm1, %v918_v4, 0 }
 0x5a4   :  { %v916_v9 = vpop.permute.xlu1 %915 }
 0x5a6   :  { %v2778_v48 = vpop.eup %2777 }
 0x5a7   :  { %v758_v49 = vsel %vm521_vm3, %v2778_v48, 0.0 }
 0x5a8   :  { %759 = vadd.xlane.f32.xlu0 %v758_v49 }
 0x5be   :  { %768 = vrot.lane.b32.xlu0 %v3154_v23, %s2897_s19 }
 0x5c2   :  { %865 = vrot.lane.b32.xlu0 %v3145_v18, %s2891_s1 }
 0x61b   :  { %v757_v50 = vpop.xlane.xlu0 %756 }
 0x61c   :  { %2779 = vrcp.f32 %v757_v50 }
 0x629   :  { %v2780_v51 = vpop.eup %2779 }
 0x62a   :  { %v763_v55 = vmul.f32 %v2780_v51, %v2776_v41 }
 0x62c   :  { %v765_v63 = vpack.c.bf16 %v763_v55, %v763_v55 }
 0x631   :  { %v760_v52 = vpop.xlane.xlu0 %759 }
 0x632   :  { %2781 = vrcp.f32 %v760_v52 }
 0x635   :  { %v769_v56 = vpop.permute.xlu0 %768 }
 0x636   :  { %v774_v60 = vsel %vm549_vm2, %v769_v56, 0 }
 0x637   :  { %2537 = vmatpush3.bf16.msra.mxu0 %v774_v60 }
 0x638   :  { %2548 = vmatprep.subr.bf16.mxu0 %v2894_v7 }
 0x639   :  { %v866_v5 = vpop.permute.xlu0 %865 }
 0x63a   :  { %2539 = vmatmul.mubr.msk.bf16.vlgmr.msra.gmra.mxu0 %vm521_vm3, %v765_v63 }
 0x63b   :  { %2549 = vmatpush3.bf16.xpose.msra.mxu0 %v873_v1  ;;  %2550 = vmatprep.mubr.msk.bf16.mxu0 %vm2896_vm0, %v2894_v7 }
 0x63c   :  { %2560 = vmatprep.subr.bf16.mxu0 %v2894_v7 }
 0x63f   :  { %v2782_v2 = vpop.eup %2781 }
 0x640   :  { %v764_v3 = vmul.f32 %v2782_v2, %v2778_v48 }
 0x642   :  { %2551 = vmatmul.mubr.msk.bf16.vlgmr.msra.gmra.mxu0 %vm428_vm1, %v866_v5  ;;  %v766_v6 = vpack.c.bf16 %v764_v3, %v764_v3 }
 0x643   :  { %2562 = vmatprep.mubr.msk.bf16.mxu0 %vm2896_vm0, %v2894_v7 }
 0x644   :  { %2545 = vmatmul.mubr.msk.bf16.vlgmr.msra.gmra.mxu1 %vm521_vm3, %v766_v6 }
 0x645   :  { %2555 = vmatpush3.bf16.xpose.msra.mxu1 %v923_v8  ;;  %2556 = vmatprep.mubr.msk.bf16.mxu1 %vm2896_vm0, %v2894_v7 }
 0x646   :  { %2566 = vmatprep.subr.bf16.mxu1 %v2894_v7 }
 0x64c   :  { %2557 = vmatmul.mubr.msk.bf16.vlgmr.msra.gmra.mxu1 %vm428_vm1, %v916_v9 }
 0x64d   :  { %2568 = vmatprep.mubr.msk.bf16.mxu1 %vm2896_vm0, %v2894_v7 }
 0x6fa   :  { %v3254_v11 = vpop.f32.mrf.mxu0 }
 0x6fc   :  { %v2540_v12 = vpop.f32.mrf.mxu0 }
 0x6fe   :  { %v813_v13 = vpop.f32.mrf.mxu0 }
 0x700   :  { %v2541_v14 = vpop.f32.mrf.mxu0 }
 0x702   :  { %v909_v15 = vpop.f32.mrf.mxu0 }
 0x703   :  { %v910_v19 = vadd.f32 %v3168_v26, %v909_v15 }
 0x704   :  { %v3257_v20 = vpop.f32.mrf.mxu1  ;;  %v2552_v21 = vpop.f32.mrf.mxu0 }
 0x705   :  { %v2628_v22 = vpack.i.bf16 %v3257_v20, %v3254_v11  ;;  %v965_v27 = vsel %vm521_vm3, %v910_v19, -inf }
 0x706   :  { %966 = vmax.xlane.f32.xlu0 %v965_v27  ;;  %v2546_v28 = vpop.f32.mrf.mxu1  ;;  %v912_v29 = vpop.f32.mrf.mxu0 }
 0x708   :  { %v862_v31 = vpop.f32.mrf.mxu1  ;;  %v2553_v32 = vpop.f32.mrf.mxu0 }
 0x70a   :  { %v2547_v33 = vpop.f32.mrf.mxu1 }
 0x70c   :  { %v959_v35 = vpop.f32.mrf.mxu1 }
 0x70d   :  { %v960_v36 = vadd.f32 %v3175_v34, %v959_v35 }
 0x70e   :  { %v2558_v37 = vpop.f32.mrf.mxu1 }
 0x70f   :  { %v968_v38 = vsel %vm521_vm3, %v960_v36, -inf }
 0x710   :  { %969 = vmax.xlane.f32.xlu1 %v968_v38  ;;  %v962_v39 = vpop.f32.mrf.mxu1 }
 0x712   :  { %v2559_v40 = vpop.f32.mrf.mxu1 }
 0x721   :  { %1037 = vrot.lane.b32.xlu1 %v3196_v0, %s2891_s1 }
 0x725   :  { %1087 = vrot.lane.b32.xlu1 %v3136_v10, %s2898_s20 }
 0x729   :  { %1137 = vrot.lane.b32.xlu1 %v3143_v17, %s2898_s20 }
 0x72d   :  { %1135 = vrot.lane.b32.xlu1 %v3156_v24, %s2898_s20 }
 0x78f   :  { %v967_v41 = vpop.xlane.xlu0 %966 }
 0x790   :  { %v971_v42 = vsub.f32 %v910_v19, %v967_v41 }
 0x792   :  { %v973_v43 = vmul.f32 1.442695, %v971_v42 }
 0x794   :  { %2783 = vpow2.f32 %v973_v43 }
 0x799   :  { %v970_v44 = vpop.xlane.xlu1 %969 }
 0x79a   :  { %v972_v45 = vsub.f32 %v960_v36, %v970_v44 }
 0x79c   :  { %v975_v46 = vmul.f32 1.442695, %v972_v45 }
 0x79d   :  { %v1038_v47 = vpop.permute.xlu1 %1037 }
 0x79e   :  { %2785 = vpow2.f32 %v975_v46  ;;  %v1043_v48 = vsel %vm549_vm2, %v1038_v47, 0 }
 0x79f   :  { %2567 = vmatpush3.bf16.msra.mxu1 %v1043_v48 }
 0x7a0   :  { %2578 = vmatprep.subr.bf16.mxu1 %v2894_v7 }
 0x7a1   :  { %v2784_v10 = vpop.eup %2783  ;;  %v1088_v62 = vpop.permute.xlu1 %1087 }
 0x7a2   :  { %v977_v17 = vsel %vm521_vm3, %v2784_v10, 0.0  ;;  %v1093_v1 = vsel %vm428_vm1, %v1088_v62, 0  ;;  %v2676_v62 = vld [vmem:[#allocation2 + $0x30] sm:$0xff]  }
 0x7a3   :  { %978 = vadd.xlane.f32.xlu0 %v977_v17 }
 0x7a5   :  { %v1138_v3 = vpop.permute.xlu1 %1137 }
 0x7a6   :  { %v1143_v6 = vsel %vm428_vm1, %v1138_v3, 0  ;;  %v2681_v3 = vld [vmem:[#allocation2 + $0x8] sm:$0xff]  }
 0x7a9   :  { %v1136_v8 = vpop.permute.xlu1 %1135 }
 0x7ab   :  { %v2786_v49 = vpop.eup %2785 }
 0x7ac   :  { %v980_v24 = vsel %vm521_vm3, %v2786_v49, 0.0 }
 0x7ad   :  { %981 = vadd.xlane.f32.xlu0 %v980_v24 }
 0x7c3   :  { %989 = vrot.lane.b32.xlu0 %v3154_v23, %s2891_s1 }
 0x7c7   :  { %1085 = vrot.lane.b32.xlu0 %v3145_v18, %s2898_s20 }
 0x82c   :  { %v979_v50 = vpop.xlane.xlu0 %978 }
 0x82d   :  { %2787 = vrcp.f32 %v979_v50 }
 0x836   :  { %v982_v51 = vpop.xlane.xlu0 %981 }
 0x837   :  { %2789 = vrcp.f32 %v982_v51 }
 0x83a   :  { %v2788_v52 = vpop.eup %2787  ;;  %v990_v55 = vpop.permute.xlu0 %989 }
 0x83b   :  { %v995_v56 = vsel %vm549_vm2, %v990_v55, 0  ;;  %v985_v60 = vmul.f32 %v2788_v52, %v2784_v10 }
 0x83c   :  { %2561 = vmatpush3.bf16.msra.mxu0 %v995_v56 }
 0x83d   :  { %v987_v63 = vpack.c.bf16 %v985_v60, %v985_v60  ;;  %2572 = vmatprep.subr.bf16.mxu0 %v2894_v7  ;;  %v2675_v60 = vld [vmem:[#allocation2 + $0x38] sm:$0xff]  }
 0x83e   :  { %v1086_v4 = vpop.permute.xlu0 %1085 }
 0x83f   :  { %2563 = vmatmul.mubr.msk.bf16.vlgmr.msra.gmra.mxu0 %vm521_vm3, %v987_v63  ;;  %v2677_v63 = vld [vmem:[#allocation2 + $0x28] sm:$0xff]  }
 0x840   :  { %2573 = vmatpush3.bf16.xpose.msra.mxu0 %v1093_v1  ;;  %2574 = vmatprep.mubr.msk.bf16.mxu0 %vm2896_vm0, %v2894_v7  ;;  %v2678_v1 = vld [vmem:[#allocation2 + $0x20] sm:$0xff]  }
 0x841   :  { %2584 = vmatprep.subr.bf16.mxu0 %v2894_v7 }
 0x844   :  { %v2790_v18 = vpop.eup %2789 }
 0x845   :  { %v986_v2 = vmul.f32 %v2790_v18, %v2786_v49  ;;  %v2679_v18 = vld [vmem:[#allocation2 + $0x18] sm:$0xff]  }
 0x847   :  { %2575 = vmatmul.mubr.msk.bf16.vlgmr.msra.gmra.mxu0 %vm428_vm1, %v1086_v4  ;;  %v988_v5 = vpack.c.bf16 %v986_v2, %v986_v2  ;;  %v2680_v2 = vld [vmem:[#allocation2 + $0x10] sm:$0xff]  }
 0x848   :  { %2586 = vmatprep.mubr.msk.bf16.mxu0 %vm2896_vm0, %v2894_v7 }
 0x849   :  { %2569 = vmatmul.mubr.msk.bf16.vlgmr.msra.gmra.mxu1 %vm521_vm3, %v988_v5  ;;  %v2682_v5 = vld [vmem:[#allocation2] sm:$0xff]  }
 0x84a   :  { %2579 = vmatpush3.bf16.xpose.msra.mxu1 %v1143_v6  ;;  %2580 = vmatprep.mubr.msk.bf16.mxu1 %vm2896_vm0, %v2894_v7 }
 0x84b   :  { %2590 = vmatprep.subr.bf16.mxu1 %v2894_v7 }
 0x851   :  { %2581 = vmatmul.mubr.msk.bf16.vlgmr.msra.gmra.mxu1 %vm428_vm1, %v1136_v8 }
 0x852   :  { %2592 = vmatprep.mubr.msk.bf16.mxu1 %vm2896_vm0, %v2894_v7 }
 0x8ff   :  { %v1031_v9 = vpop.f32.mrf.mxu0 }
 0x901   :  { %v2564_v12 = vpop.f32.mrf.mxu0 }
 0x903   :  { %v1034_v13 = vpop.f32.mrf.mxu0 }
 0x905   :  { %v2565_v14 = vpop.f32.mrf.mxu0 }
 0x907   :  { %v1129_v15 = vpop.f32.mrf.mxu0 }
 0x908   :  { %v1130_v19 = vadd.f32 %v3168_v26, %v1129_v15 }
 0x909   :  { %v1079_v21 = vpop.f32.mrf.mxu1  ;;  %v2576_v27 = vpop.f32.mrf.mxu0 }
 0x90a   :  { %v1185_v28 = vsel %vm521_vm3, %v1130_v19, -inf  ;;  %v2633_v26 = vpack.i.bf16 %v1079_v21, %v1031_v9 }
 0x90b   :  { %1186 = vmax.xlane.f32.xlu0 %v1185_v28  ;;  %v2570_v29 = vpop.f32.mrf.mxu1  ;;  %v1132_v31 = vpop.f32.mrf.mxu0 }
 0x90d   :  { %v1082_v32 = vpop.f32.mrf.mxu1  ;;  %v2577_v33 = vpop.f32.mrf.mxu0 }
 0x90f   :  { %v2571_v35 = vpop.f32.mrf.mxu1 }
 0x911   :  { %v1179_v36 = vpop.f32.mrf.mxu1 }
 0x912   :  { %v1180_v37 = vadd.f32 %v3175_v34, %v1179_v36 }
 0x913   :  { %v2582_v38 = vpop.f32.mrf.mxu1 }
 0x914   :  { %v1188_v39 = vsel %vm521_vm3, %v1180_v37, -inf }
 0x915   :  { %1189 = vmax.xlane.f32.xlu1 %v1188_v39  ;;  %v1182_v40 = vpop.f32.mrf.mxu1 }
 0x917   :  { %v2583_v41 = vpop.f32.mrf.mxu1 }
 0x926   :  { %1257 = vrot.lane.b32.xlu1 %v3196_v0, %s2898_s20 }
 0x92a   :  { %2629 = vrot.lane.b32.xlu1 %v2628_v22, %s2898_s20 }
 0x92e   :  { %2634 = vrot.lane.b32.xlu1 %v2633_v26, %s2891_s1 }
 0x994   :  { %v1187_v42 = vpop.xlane.xlu0 %1186 }
 0x995   :  { %v1191_v43 = vsub.f32 %v1130_v19, %v1187_v42  ;;  %v2308_v42 = vld [vmem:[%s3424_s8] ss:$0 sm:$0xff] }
 0x997   :  { %v1193_v34 = vmul.f32 1.442695, %v1191_v43 }
 0x999   :  { %2791 = vpow2.f32 %v1193_v34 }
 0x99e   :  { %v1190_v44 = vpop.xlane.xlu1 %1189 }
 0x99f   :  { %v1192_v45 = vsub.f32 %v1180_v37, %v1190_v44 }
 0x9a1   :  { %v1195_v46 = vmul.f32 1.442695, %v1192_v45 }
 0x9a2   :  { %v1258_v47 = vpop.permute.xlu1 %1257 }
 0x9a3   :  { %2793 = vpow2.f32 %v1195_v46  ;;  %v1263_v48 = vsel %vm549_vm2, %v1258_v47, 0 }
 0x9a4   :  { %2591 = vmatpush3.bf16.msra.mxu1 %v1263_v48  ;;  %v2683_v48 = vld [vmem:[#allocation4 + $0xe0] ss:$16 sps:$4 sm:$0xff]  }
 0x9a6   :  { %v2792_v0 = vpop.eup %2791  ;;  %v2630_v21 = vpop.permute.xlu1 %2629 }
 0x9a7   :  { %v1197_v10 = vsel %vm521_vm3, %v2792_v0, 0.0  ;;  %v2632_v28 = vunpack.i.h.bf16 %v2630_v21  ;;  %v2631_v29 = vunpack.i.l.bf16 %v2630_v21  ;;  %v2722_v21 = vld [vmem:[#allocation4 + $0x28] ss:$16 sps:$4 sm:$0xff]  }
 0x9a8   :  { %1198 = vadd.xlane.f32.xlu0 %v1197_v10  ;;  %v2686_v10 = vld [vmem:[#allocation4 + $0xe8] ss:$16 sps:$4 sm:$0xff]  }
 0x9a9   :  { %v1330_v33 = vsel %vm428_vm1, %v3216_v25, %v2632_v28  ;;  %v1329_v35 = vsel %vm428_vm1, %v3214_v16, %v2631_v29  ;;  %v2730_v28 = vld [vmem:[#allocation4 + $0xc] ss:$16 sps:$4 sm:$0xff]   ;;  %v2725_v29 = vld [vmem:[#allocation4] ss:$16 sps:$4 sm:$0xff]  }
 0x9aa   :  { %v2635_v27 = vpop.permute.xlu1 %2634 }
 0x9ab   :  { %v2637_v31 = vunpack.i.h.bf16 %v2635_v27  ;;  %v2636_v32 = vunpack.i.l.bf16 %v2635_v27  ;;  %v2727_v27 = vld [vmem:[#allocation4 + $0x4] ss:$16 sps:$4 sm:$0xff]  }
 0x9ad   :  { %v1332_v38 = vsel %vm1331_vm4, %v1329_v35, %v2636_v32  ;;  %v1333_v39 = vsel %vm1331_vm4, %v1330_v33, %v2637_v31  ;;  %v2728_v31 = vld [vmem:[#allocation4 + $0x8] ss:$16 sps:$4 sm:$0xff]  }
 0x9b0   :  { %v2794_v11 = vpop.eup %2793 }
 0x9b1   :  { %v1200_v20 = vsel %vm521_vm3, %v2794_v11, 0.0 }
 0x9b2   :  { %1201 = vadd.xlane.f32.xlu0 %v1200_v20 }
 0x9c8   :  { %1209 = vrot.lane.b32.xlu0 %v3154_v23, %s2898_s20 }
 0xa31   :  { %v1199_v22 = vpop.xlane.xlu0 %1198 }
 0xa32   :  { %2795 = vrcp.f32 %v1199_v22 }
 0xa3b   :  { %v1202_v17 = vpop.xlane.xlu0 %1201 }
 0xa3c   :  { %2797 = vrcp.f32 %v1202_v17 }
 0xa3f   :  { %v2796_v49 = vpop.eup %2795  ;;  %v1210_v24 = vpop.permute.xlu0 %1209 }
 0xa40   :  { %v1215_v50 = vsel %vm549_vm2, %v1210_v24, 0  ;;  %v1205_v51 = vmul.f32 %v2796_v49, %v2792_v0  ;;  %v2685_v0 = vld [vmem:[#allocation4 + $0xe4] ss:$16 sps:$4 sm:$0xff]  }
 0xa41   :  { %2585 = vmatpush3.bf16.msra.mxu0 %v1215_v50  ;;  %1707 = vmatprep.subr.bf16.mxu1 %v2685_v0  ;;  %v2691_v50 = vld [vmem:[#allocation4 + $0xc4] ss:$16 sps:$4 sm:$0xff]  }
 0xa42   :  { %v1207_v52 = vpack.c.bf16 %v1205_v51, %v1205_v51  ;;  %2596 = vmatprep.subr.bf16.mxu0 %v2894_v7  ;;  %v2694_v51 = vld [vmem:[#allocation4 + $0xcc] ss:$16 sps:$4 sm:$0xff]   ;;  %v2735_v0 = vld [vmem:[#allocation6 + $0x70] sm:$0xff]  }
 0xa44   :  { %2587 = vmatmul.mubr.msk.bf16.vlgmr.msra.gmra.mxu0 %vm521_vm3, %v1207_v52  ;;  %v2689_v52 = vld [vmem:[#allocation4 + $0xc0] ss:$16 sps:$4 sm:$0xff]  }
 0xa45   :  { %2612 = vmatprep.mubr.msk.bf16.mxu0 %vm2896_vm0, %v2894_v7  ;;  %2597 = vmatpush3.bf16.msra.mxu0 %v2675_v60  ;;  %v2695_v60 = vld [vmem:[#allocation4 + $0xa0] ss:$16 sps:$4 sm:$0xff]  }
 0xa46   :  { %2598 = vmatprep.subr.bf16.mxu0 %v2894_v7 }
 0xa49   :  { %v2798_v55 = vpop.eup %2797  ;;  %2599 = vmatpush3.bf16.msra.mxu0 %v2676_v62  ;;  %v2698_v62 = vld [vmem:[#allocation4 + $0xa8] ss:$16 sps:$4 sm:$0xff]  }
 0xa4a   :  { %v1206_v23 = vmul.f32 %v2798_v55, %v2794_v11  ;;  %2600 = vmatprep.subr.bf16.mxu0 %v2894_v7  ;;  %v2692_v55 = vld [vmem:[#allocation4 + $0xc8] ss:$16 sps:$4 sm:$0xff]  }
 0xa4c   :  { %v1208_v56 = vpack.c.bf16 %v1206_v23, %v1206_v23  ;;  %v2697_v23 = vld [vmem:[#allocation4 + $0xa4] ss:$16 sps:$4 sm:$0xff]  }
 0xa4d   :  { %2601 = vmatpush3.bf16.msra.mxu0 %v2677_v63  ;;  %v2701_v63 = vld [vmem:[#allocation4 + $0x80] ss:$16 sps:$4 sm:$0xff]  }
 0xa4e   :  { %2593 = vmatmul.mubr.msk.bf16.vlgmr.msra.gmra.mxu1 %vm521_vm3, %v1208_v56  ;;  %2602 = vmatprep.subr.bf16.mxu0 %v2894_v7  ;;  %v2700_v56 = vld [vmem:[#allocation4 + $0xac] ss:$16 sps:$4 sm:$0xff]  }
 0xa4f   :  { %1739 = vmatprep.mubr.bf16.mxu1 %v2895_v30  ;;  %1708 = vmatpush1.bf16.msra.mxu1 %v2683_v48  ;;  %v2734_v48 = vld [vmem:[#allocation6 + $0xb8] sm:$0xff]  }
 0xa50   :  { %1709 = vmatprep.subr.bf16.mxu1 %v2691_v50  ;;  %v2746_v50 = vld [vmem:[#allocation6 + $0xa0] sm:$0xff]  }
 0xa51   :  { %2603 = vmatpush3.bf16.msra.mxu0 %v2678_v1  ;;  %v2703_v1 = vld [vmem:[#allocation4 + $0x84] ss:$16 sps:$4 sm:$0xff]  }
 0xa52   :  { %2604 = vmatprep.subr.bf16.mxu0 %v2894_v7 }
 0xa53   :  { %1710 = vmatpush1.bf16.msra.mxu1 %v2689_v52  ;;  %v2748_v52 = vld [vmem:[#allocation6 + $0xd8] sm:$0xff]  }
 0xa54   :  { %1711 = vmatprep.subr.bf16.mxu1 %v2697_v23  ;;  %v2750_v23 = vld [vmem:[#allocation6 + $0x98] sm:$0xff]  }
 0xa55   :  { %2605 = vmatpush3.bf16.msra.mxu0 %v2679_v18  ;;  %v2704_v18 = vld [vmem:[#allocation4 + $0x88] ss:$16 sps:$4 sm:$0xff]  }
 0xa56   :  { %2606 = vmatprep.subr.bf16.mxu0 %v2894_v7 }
 0xa57   :  { %1712 = vmatpush1.bf16.msra.mxu1 %v2695_v60  ;;  %v2752_v60 = vld [vmem:[#allocation6 + $0xd0] sm:$0xff]  }
 0xa58   :  { %1713 = vmatprep.subr.bf16.mxu1 %v2703_v1  ;;  %v2755_v1 = vld [vmem:[#allocation6 + $0x48] sm:$0xff]  }
 0xa59   :  { %2607 = vmatpush3.bf16.msra.mxu0 %v2680_v2  ;;  %v2706_v2 = vld [vmem:[#allocation4 + $0x8c] ss:$16 sps:$4 sm:$0xff]  }
 0xa5a   :  { %2608 = vmatprep.subr.bf16.mxu0 %v2894_v7 }
 0xa5b   :  { %1714 = vmatpush1.bf16.msra.mxu1 %v2701_v63  ;;  %v2754_v63 = vld [vmem:[#allocation6 + $0x90] sm:$0xff]  }
 0xa5d   :  { %2609 = vmatpush3.bf16.msra.mxu0 %v2681_v3  ;;  %v2709_v3 = vld [vmem:[#allocation4 + $0x64] ss:$16 sps:$4 sm:$0xff]  }
 0xa5e   :  { %2610 = vmatprep.subr.bf16.mxu0 %v2894_v7  ;;  %1715 = vmatprep.subr.bf16.mxu1 %v2709_v3  ;;  %v2758_v3 = vld [vmem:[#allocation6 + $0x88] sm:$0xff]  }
 0xa61   :  { %2611 = vmatpush3.bf16.msra.mxu0 %v2682_v5  ;;  %v2707_v5 = vld [vmem:[#allocation4 + $0x60] ss:$16 sps:$4 sm:$0xff]  }
 0xa62   :  { %1716 = vmatpush1.bf16.msra.mxu1 %v2707_v5  ;;  %v2760_v5 = vld [vmem:[#allocation6 + $0xc0] sm:$0xff]  }
 0xb04   :  { %v1251_v4 = vpop.f32.mrf.mxu0 }
 0xb06   :  { %v2588_v6 = vpop.f32.mrf.mxu0 }
 0xb07   :  { %v2710_v6 = vld [vmem:[#allocation4 + $0x68] ss:$16 sps:$4 sm:$0xff]  }
 0xb08   :  { %v1254_v8 = vpop.f32.mrf.mxu0 }
 0xb09   :  { %v2715_v8 = vld [vmem:[#allocation4 + $0x44] ss:$16 sps:$4 sm:$0xff]  }
 0xb0a   :  { %v2589_v9 = vpop.f32.mrf.mxu0  ;;  %1717 = vmatprep.subr.bf16.mxu1 %v2715_v8  ;;  %v2762_v8 = vld [vmem:[#allocation6 + $0x80] sm:$0xff]  }
 0xb0b   :  { %v2718_v9 = vld [vmem:[#allocation4 + $0x4c] ss:$16 sps:$4 sm:$0xff]  }
 0xb0e   :  { %v1299_v12 = vpop.f32.mrf.mxu1 }
 0xb0f   :  { %v2638_v13 = vpack.i.bf16 %v1299_v12, %v1251_v4  ;;  %v2712_v4 = vld [vmem:[#allocation4 + $0x6c] ss:$16 sps:$4 sm:$0xff]   ;;  %v2713_v12 = vld [vmem:[#allocation4 + $0x40] ss:$16 sps:$4 sm:$0xff]  }
 0xb10   :  { %v2594_v14 = vpop.f32.mrf.mxu1  ;;  %1718 = vmatpush1.bf16.msra.mxu1 %v2713_v12  ;;  %v1541_v12 = vsub.s32 3, %v3122_v57 }
 0xb11   :  { %2639 = vrot.lane.b32.xlu0 %v2638_v13, %s2897_s19  ;;  %v2716_v13 = vld [vmem:[#allocation4 + $0x48] ss:$16 sps:$4 sm:$0xff]   ;;  %v2721_v14 = vld [vmem:[#allocation4 + $0x24] ss:$16 sps:$4 sm:$0xff]  }
 0xb12   :  { %v1302_v15 = vpop.f32.mrf.mxu1  ;;  %1719 = vmatprep.subr.bf16.mxu1 %v2721_v14 }
 0xb13   :  { %v2724_v15 = vld [vmem:[#allocation4 + $0x2c] ss:$16 sps:$4 sm:$0xff]  }
 0xb14   :  { %v2595_v19 = vpop.f32.mrf.mxu1 }
 0xb15   :  { %v2719_v19 = vld [vmem:[#allocation4 + $0x20] ss:$16 sps:$4 sm:$0xff]  }
 0xb16   :  { %1720 = vmatpush1.bf16.msra.mxu1 %v2719_v19 }
 0xb17   :  { %1721 = vmatprep.subr.bf16.mxu1 %v2727_v27 }
 0xb1a   :  { %1722 = vmatpush1.bf16.msra.mxu1 %v2725_v29 }
 0xb83   :  { %v2640_v7 = vpop.permute.xlu0 %2639 }
 0xb84   :  { %v2642_v36 = vunpack.i.h.bf16 %v2640_v7  ;;  %v2641_v37 = vunpack.i.l.bf16 %v2640_v7 }
 0xb86   :  { %v1336_v40 = vsel %vm1334_vm5, %v1333_v39, %v2642_v36  ;;  %v1335_v41 = vsel %vm1334_vm5, %v1332_v38, %v2641_v37 }
 0xb87   :  { %v1337_v26 = vpack.c.bf16 %v1336_v40, %v1335_v41  ;;  %v2317_v40 = vld [vmem:[%s3425_s9] ss:$0 sm:$0xff] }
 0xb89   :  { %2613 = vmatmul.mubr.bf16.vlgmr.msra.gmra.mxu0 %v1337_v26 }
 0xb8a   :  { %1782 = vmatprep.mubr.bf16.mxu0 %v2895_v30  ;;  %v2688_v30 = vld [vmem:[#allocation4 + $0xec] ss:$16 sps:$4 sm:$0xff]  }
 0xb8b   :  { %1750 = vmatprep.subr.bf16.mxu0 %v2688_v30  ;;  %v2737_v30 = vld [vmem:[#allocation6 + $0x30] sm:$0xff]  }
 0xb8c   :  { %1751 = vmatpush1.bf16.msra.mxu0 %v2686_v10  ;;  %v2736_v10 = vld [vmem:[#allocation6 + $0xf0] sm:$0xff]  }
 0xb8d   :  { %1752 = vmatprep.subr.bf16.mxu0 %v2694_v51  ;;  %v2747_v51 = vld [vmem:[#allocation6 + $0x58] sm:$0xff]  }
 0xb90   :  { %1753 = vmatpush1.bf16.msra.mxu0 %v2692_v55  ;;  %v2749_v55 = vld [vmem:[#allocation6 + $0x18] sm:$0xff]  }
 0xb91   :  { %1754 = vmatprep.subr.bf16.mxu0 %v2700_v56  ;;  %v2751_v56 = vld [vmem:[#allocation6 + $0x50] sm:$0xff]  }
 0xb94   :  { %1755 = vmatpush1.bf16.msra.mxu0 %v2698_v62  ;;  %v2753_v62 = vld [vmem:[#allocation6 + $0x10] sm:$0xff]  }
 0xb95   :  { %1756 = vmatprep.subr.bf16.mxu0 %v2706_v2  ;;  %v2757_v2 = vld [vmem:[#allocation6 + $0x8] sm:$0xff]  }
 0xb98   :  { %1757 = vmatpush1.bf16.msra.mxu0 %v2704_v18  ;;  %v2756_v18 = vld [vmem:[#allocation6 + $0xc8] sm:$0xff]  }
 0xb99   :  { %1758 = vmatprep.subr.bf16.mxu0 %v2712_v4  ;;  %v2759_v4 = vld [vmem:[#allocation6 + $0x40] sm:$0xff]  }
 0xb9c   :  { %1759 = vmatpush1.bf16.msra.mxu0 %v2710_v6  ;;  %v2761_v6 = vld [vmem:[#allocation6] sm:$0xff]  }
 0xb9d   :  { %1760 = vmatprep.subr.bf16.mxu0 %v2718_v9  ;;  %v1525_v9 = vld [vmem:[%s3428_s12] sm:$0xf] }
 0xb9e   :  { %v1538_v14 = vrot.slane %v1525_v9, %v191_v61  ;;  %v1542_v19 = vrot.slane %v1525_v9, %v1541_v12 }
 0xba0   :  { %1761 = vmatpush1.bf16.msra.mxu0 %v2716_v13  ;;  %v1530_v13 = vrot.slane %v1525_v9, %v183_v59 }
 0xba1   :  { %1762 = vmatprep.subr.bf16.mxu0 %v2724_v15  ;;  %v1534_v15 = vrot.slane %v1525_v9, %v187_v58 }
 0xba4   :  { %1763 = vmatpush1.bf16.msra.mxu0 %v2722_v21 }
 0xba5   :  { %1764 = vmatprep.subr.bf16.mxu0 %v2730_v28 }
 0xba8   :  { %1765 = vmatpush1.bf16.msra.mxu0 %v2728_v31 }
 0xc49   :  { %v1443_v43 = vpop.f32.mrf.mxu0 }
 0xc4a   :  { %v1444_v34 = vadd.f32 %v2308_v42, %v1443_v43  ;;  %v2318_v43 = vld [vmem:[%s3426_s10] ss:$0 sm:$0xff] }
 0xc4b   :  { %v2614_v25 = vpop.f32.mrf.mxu0 }
 0xc4c   :  { %v1450_v44 = vadd.f32 %v1444_v34, %v3112_v53 }
 0xc4d   :  { %v1446_v16 = vpop.f32.mrf.mxu0 }
 0xc4e   :  { %v1447_v45 = vadd.f32 %v2308_v42, %v1446_v16  ;;  %1454 = vadd.xlane.f32.xlu1 %v1450_v44 }
 0xc4f   :  { %v2615_v46 = vpop.f32.mrf.mxu0 }
 0xc50   :  { %v1451_v47 = vadd.f32 %v1447_v45, %v3114_v54  ;;  %v2731_v45 = vld [vmem:[#allocation6 + $0x78] sm:$0xff]  }
 0xc51   :  { %v2732_v46 = vld [vmem:[#allocation6 + $0xf8] sm:$0xff]   ;;  %2436 = vmatprep.subr.bf16.mxu1 %v2731_v45 }
 0xc52   :  { %1456 = vadd.xlane.f32.xlu0 %v1451_v47  ;;  %2458 = vmatprep.subr.bf16.mxu0 %v2732_v46 }
 0xcd7   :  { %v1455_v11 = vpop.xlane.xlu1 %1454 }
 0xcd8   :  { %v1458_v20 = vmul.f32 0.0078125, %v1455_v11  ;;  %v2738_v11 = vld [vmem:[#allocation6 + $0xb0] sm:$0xff]  }
 0xcda   :  { %v3339_v22 = vsub.f32 %v1450_v44, %v1458_v20  ;;  %v2739_v20 = vld [vmem:[#allocation6 + $0x68] sm:$0xff]  }
 0xcdb   :  { %v1457_v53 = vpop.xlane.xlu0 %1456 }
 0xcdc   :  { %v1459_v17 = vmul.f32 0.0078125, %v1457_v53  ;;  %v1462_v49 = vmul.f32 %v3339_v22, %v3339_v22  ;;  %v2741_v53 = vld [vmem:[#allocation6 + $0x28] sm:$0xff]  }
 0xcde   :  { %v3343_v24 = vsub.f32 %v1451_v47, %v1459_v17  ;;  %1464 = vadd.xlane.f32.xlu0 %v1462_v49  ;;  %v2733_v47 = vld [vmem:[#allocation6 + $0x38] sm:$0xff]   ;;  %v2742_v17 = vld [vmem:[#allocation6 + $0xa8] sm:$0xff]   ;;  %v2743_v49 = vld [vmem:[#allocation6 + $0x60] sm:$0xff]  }
 0xce0   :  { %v1463_v54 = vmul.f32 %v3343_v24, %v3343_v24 }
 0xce2   :  { %1466 = vadd.xlane.f32.xlu0 %v1463_v54  ;;  %v2745_v54 = vld [vmem:[#allocation6 + $0x20] sm:$0xff]  }
 0xd67   :  { %v1465_v32 = vpop.xlane.xlu0 %1464 }
 0xd68   :  { %v1468_v7 = vmul.f32 0.0078125, %v1465_v32 }
 0xd6a   :  { %v1470_v33 = vadd.f32 1e-12, %v1468_v7 }
 0xd6b   :  { %v1467_v35 = vpop.xlane.xlu0 %1466 }
 0xd6c   :  { %2799 = vrsqrt.f32 %v1470_v33  ;;  %v1469_v36 = vmul.f32 0.0078125, %v1467_v35 }
 0xd6e   :  { %v1471_v37 = vadd.f32 1e-12, %v1469_v36 }
 0xd70   :  { %2801 = vrsqrt.f32 %v1471_v37 }
 0xd79   :  { %v2800_v38 = vpop.eup %2799 }
 0xd7a   :  { %v1474_v39 = vmul.f32 %v2800_v38, %v3339_v22  ;;  %v2740_v22 = vld [vmem:[#allocation6 + $0xe8] sm:$0xff]  }
 0xd7c   :  { %v1482_v42 = vmul.f32 %v2317_v40, %v1474_v39 }
 0xd7d   :  { %v2802_v41 = vpop.eup %2801 }
 0xd7e   :  { %v1475_v26 = vmul.f32 %v2802_v41, %v3343_v24  ;;  %v3355_v25 = vadd.f32 %v2318_v43, %v1482_v42  ;;  %v2744_v24 = vld [vmem:[#allocation6 + $0xe0] sm:$0xff]  }
 0xd80   :  { %v1483_v34 = vmul.f32 %v2317_v40, %v1475_v26 }
 0xd82   :  { %v3357_v44 = vadd.f32 %v2318_v43, %v1483_v34 }
 0xd84   :  { %v1492_v16 = vpack.c.bf16 %v3357_v44, %v3355_v25 }
 0xd86   :  { %1740 = vmatmul.mubr.bf16.vlgmr.msra.gmra.mxu1 %v1492_v16  ;;  %1783 = vmatmul.mubr.bf16.vlgmr.msra.gmra.mxu0 %v1492_v16 }
 0xd87   :  { %2437 = vmatpush3.bf16.msra.mxu1 %v2733_v47  ;;  %2459 = vmatpush3.bf16.msra.mxu0 %v2734_v48 }
 0xd88   :  { %2438 = vmatprep.subr.bf16.mxu1 %v2735_v0  ;;  %2460 = vmatprep.subr.bf16.mxu0 %v2736_v10 }
 0xd8b   :  { %2439 = vmatpush3.bf16.msra.mxu1 %v2737_v30  ;;  %2461 = vmatpush3.bf16.msra.mxu0 %v2738_v11 }
 0xd8c   :  { %2440 = vmatprep.subr.bf16.mxu1 %v2739_v20  ;;  %2462 = vmatprep.subr.bf16.mxu0 %v2740_v22 }
 0xd8f   :  { %2441 = vmatpush3.bf16.msra.mxu1 %v2741_v53  ;;  %2463 = vmatpush3.bf16.msra.mxu0 %v2742_v17 }
 0xd90   :  { %2442 = vmatprep.subr.bf16.mxu1 %v2743_v49  ;;  %2464 = vmatprep.subr.bf16.mxu0 %v2744_v24 }
 0xd93   :  { %2443 = vmatpush3.bf16.msra.mxu1 %v2745_v54  ;;  %2465 = vmatpush3.bf16.msra.mxu0 %v2746_v50 }
 0xd94   :  { %2444 = vmatprep.subr.bf16.mxu1 %v2747_v51  ;;  %2466 = vmatprep.subr.bf16.mxu0 %v2748_v52 }
 0xd97   :  { %2445 = vmatpush3.bf16.msra.mxu1 %v2749_v55  ;;  %2467 = vmatpush3.bf16.msra.mxu0 %v2750_v23 }
 0xd98   :  { %2446 = vmatprep.subr.bf16.mxu1 %v2751_v56  ;;  %2468 = vmatprep.subr.bf16.mxu0 %v2752_v60 }
 0xd9b   :  { %2447 = vmatpush3.bf16.msra.mxu1 %v2753_v62  ;;  %2469 = vmatpush3.bf16.msra.mxu0 %v2754_v63 }
 0xd9c   :  { %2448 = vmatprep.subr.bf16.mxu1 %v2755_v1  ;;  %2470 = vmatprep.subr.bf16.mxu0 %v2756_v18 }
 0xd9f   :  { %2449 = vmatpush3.bf16.msra.mxu1 %v2757_v2  ;;  %2471 = vmatpush3.bf16.msra.mxu0 %v2758_v3 }
 0xda0   :  { %2450 = vmatprep.subr.bf16.mxu1 %v2759_v4  ;;  %2472 = vmatprep.subr.bf16.mxu0 %v2760_v5 }
 0xda3   :  { %2451 = vmatpush3.bf16.msra.mxu1 %v2761_v6  ;;  %2473 = vmatpush3.bf16.msra.mxu0 %v2762_v8 }
 0xe46   :  { %v1741_v21 = vpop.f32.mrf.mxu1  ;;  %v1784_v27 = vpop.f32.mrf.mxu0 }
 0xe47   :  { %v3371_v28 = vadd.f32 %v1741_v21, %v1530_v13  ;;  %v3373_v29 = vadd.f32 %v1784_v27, %v1538_v14 }
 0xe48   :  { %v1743_v31 = vpop.f32.mrf.mxu1  ;;  %v1786_v32 = vpop.f32.mrf.mxu0 }
 0xe49   :  { %v1801_v7 = vmul.f32 0.044715, %v3371_v28  ;;  %v1803_v33 = vmul.f32 0.044715, %v3373_v29  ;;  %v1744_v59 = vadd.f32 %v1743_v31, %v1534_v15  ;;  %v3377_v35 = vadd.f32 %v1786_v32, %v1542_v19 }
 0xe4a   :  { %v1745_v61 = vpop.f32.mrf.mxu1  ;;  %v1788_v36 = vpop.f32.mrf.mxu0  ;;  %v1793_v31 = vmul.f32 0.5, %v3371_v28 }
 0xe4b   :  { %v1809_v57 = vmul.f32 %v1801_v7, %v3371_v28  ;;  %v1811_v58 = vmul.f32 %v1803_v33, %v3373_v29  ;;  %v1802_v37 = vmul.f32 0.044715, %v1744_v59  ;;  %v1804_v38 = vmul.f32 0.044715, %v3377_v35 }
 0xe4c   :  { %v1746_v39 = vadd.f32 %v1745_v61, %v1530_v13  ;;  %v3382_v40 = vadd.f32 %v1788_v36, %v1538_v14  ;;  %v1747_v41 = vpop.f32.mrf.mxu1  ;;  %v1790_v26 = vpop.f32.mrf.mxu0  ;;  %v1794_v21 = vmul.f32 0.5, %v1744_v59 }
 0xe4d   :  { %v1817_v42 = vmul.f32 %v1809_v57, %v3371_v28  ;;  %v1819_v43 = vmul.f32 %v1811_v58, %v3373_v29  ;;  %v1810_v34 = vmul.f32 %v1802_v37, %v1744_v59  ;;  %v1812_v16 = vmul.f32 %v1804_v38, %v3377_v35 }
 0xe4e   :  { %v1805_v45 = vmul.f32 0.044715, %v1746_v39  ;;  %v1807_v46 = vmul.f32 0.044715, %v3382_v40  ;;  %v1748_v47 = vadd.f32 %v1747_v41, %v1534_v15  ;;  %v1791_v48 = vadd.f32 %v1790_v26, %v1542_v19 }
 0xe4f   :  { %v1825_v0 = vadd.f32 %v1817_v42, %v3371_v28  ;;  %v1827_v10 = vadd.f32 %v1819_v43, %v3373_v29  ;;  %v1818_v30 = vmul.f32 %v1810_v34, %v1744_v59  ;;  %v1820_v11 = vmul.f32 %v1812_v16, %v3377_v35 }
 0xe50   :  { %v1813_v20 = vmul.f32 %v1805_v45, %v1746_v39  ;;  %v1815_v22 = vmul.f32 %v1807_v46, %v3382_v40  ;;  %v1806_v53 = vmul.f32 0.044715, %v1748_v47  ;;  %v1808_v17 = vmul.f32 0.044715, %v1791_v48 }
 0xe51   :  { %v1833_v49 = vmul.f32 0.7978846, %v1825_v0  ;;  %v1835_v24 = vmul.f32 0.7978846, %v1827_v10  ;;  %v1826_v54 = vadd.f32 %v1818_v30, %v1744_v59  ;;  %v1828_v56 = vadd.f32 %v1820_v11, %v3377_v35 }
 0xe52   :  { %v1821_v50 = vmul.f32 %v1813_v20, %v1746_v39  ;;  %v1823_v51 = vmul.f32 %v1815_v22, %v3382_v40  ;;  %v1814_v52 = vmul.f32 %v1806_v53, %v1748_v47  ;;  %v1816_v55 = vmul.f32 %v1808_v17, %v1791_v48  ;;  %v2351_v22 = vld [vmem:[%s3430_s14] ss:$0 sm:$0xff] }
 0xe53   :  { %v1834_v23 = vmul.f32 0.7978846, %v1826_v54  ;;  %2803 = vtanh.f32 %v1833_v49  ;;  %v1836_v18 = vmul.f32 0.7978846, %v1828_v56  ;;  %v1797_v61 = vmul.f32 0.5, %v1746_v39 }
 0xe54   :  { %v1829_v60 = vadd.f32 %v1821_v50, %v1746_v39  ;;  %v1831_v62 = vadd.f32 %v1823_v51, %v3382_v40  ;;  %v1822_v63 = vmul.f32 %v1814_v52, %v1748_v47  ;;  %2805 = vtanh.f32 %v1835_v24 }
 0xe55   :  { %v1824_v1 = vmul.f32 %v1816_v55, %v1791_v48  ;;  %2807 = vtanh.f32 %v1834_v23  ;;  %v1798_v37 = vmul.f32 0.5, %v1748_v47  ;;  %v1799_v41 = vmul.f32 0.5, %v3382_v40 }
 0xe56   :  { %v1837_v2 = vmul.f32 0.7978846, %v1829_v60  ;;  %v1839_v3 = vmul.f32 0.7978846, %v1831_v62  ;;  %v1830_v4 = vadd.f32 %v1822_v63, %v1748_v47  ;;  %2809 = vtanh.f32 %v1836_v18 }
 0xe57   :  { %v1832_v5 = vadd.f32 %v1824_v1, %v1791_v48  ;;  %v1796_v42 = vmul.f32 0.5, %v3377_v35  ;;  %v1800_v43 = vmul.f32 0.5, %v1791_v48  ;;  %v1795_v28 = vmul.f32 0.5, %v3373_v29 }
 0xe58   :  { %2811 = vtanh.f32 %v1837_v2  ;;  %v1838_v6 = vmul.f32 0.7978846, %v1830_v4 }
 0xe59   :  { %2813 = vtanh.f32 %v1839_v3  ;;  %v1840_v8 = vmul.f32 0.7978846, %v1832_v5 }
 0xe5a   :  { %2815 = vtanh.f32 %v1838_v6 }
 0xe5b   :  { %2817 = vtanh.f32 %v1840_v8 }
 0xe60   :  { %v2804_v9 = vpop.eup %2803 }
 0xe61   :  { %v2806_v12 = vpop.eup %2805  ;;  %v1849_v36 = vadd.f32 1.0, %v2804_v9 }
 0xe62   :  { %v2808_v13 = vpop.eup %2807  ;;  %v1851_v26 = vadd.f32 1.0, %v2806_v12 }
 0xe63   :  { %v2810_v14 = vpop.eup %2809  ;;  %v1850_v27 = vadd.f32 1.0, %v2808_v13  ;;  %v1857_v10 = vmul.f32 %v1849_v36, %v1793_v31  ;;  %v2385_v31 = vld [vmem:[%s3432_s16] ss:$0 sm:$0xff] }
 0xe64   :  { %v1852_v33 = vadd.f32 1.0, %v2810_v14  ;;  %v1859_v11 = vmul.f32 %v1851_v26, %v1795_v28 }
 0xe65   :  { %v2812_v15 = vpop.eup %2811  ;;  %v1858_v16 = vmul.f32 %v1850_v27, %v1794_v21  ;;  %v2384_v21 = vld [vmem:[%s3431_s15] ss:$0 sm:$0xff] }
 0xe66   :  { %v2814_v19 = vpop.eup %2813  ;;  %v1853_v32 = vadd.f32 1.0, %v2812_v15  ;;  %v1860_v0 = vmul.f32 %v1852_v33, %v1796_v42 }
 0xe67   :  { %v2816_v7 = vpop.eup %2815  ;;  %v1855_v57 = vadd.f32 1.0, %v2814_v19 }
 0xe68   :  { %v2818_v58 = vpop.eup %2817  ;;  %v1854_v38 = vadd.f32 1.0, %v2816_v7  ;;  %v1861_v59 = vmul.f32 %v1853_v32, %v1797_v61 }
 0xe69   :  { %v1856_v34 = vadd.f32 1.0, %v2818_v58  ;;  %v1863_v46 = vmul.f32 %v1855_v57, %v1799_v41 }
 0xe6a   :  { %v1862_v45 = vmul.f32 %v1854_v38, %v1798_v37  ;;  %v1865_v20 = vpack.c.bf16 %v1861_v59, %v1857_v10 }
 0xe6b   :  { %v1864_v39 = vmul.f32 %v1856_v34, %v1800_v43  ;;  %v1867_v40 = vpack.c.bf16 %v1863_v46, %v1859_v11 }
 0xe6c   :  { %v1866_v30 = vpack.c.bf16 %v1862_v45, %v1858_v16 }
 0xe6d   :  { %v1868_v47 = vpack.c.bf16 %v1864_v39, %v1860_v0 }
 0xe6e   :  { %2164 = vmatprep.mubr.bf16.mxu1 %v1866_v30 }
 0xe6f   :  { %2205 = vmatprep.mubr.bf16.mxu0 %v1868_v47  ;;  %2165 = vmatmul.mubr.bf16.vlgmr.msra.gmra.mxu1 %v1865_v20 }
 0xe70   :  { %2206 = vmatmul.mubr.bf16.vlgmr.msra.gmra.mxu0 %v1867_v40 }
 0xf2f   :  { %v2452_v35 = vpop.f32.mrf.mxu1 }
 0xf30   :  { %v2474_v48 = vpop.f32.mrf.mxu0 }
 0xf31   :  { %v2453_v29 = vpop.f32.mrf.mxu1 }
 0xf32   :  { %v2454_v53 = vadd.f32 %v2453_v29, %v2452_v35  ;;  %v2475_v17 = vpop.f32.mrf.mxu0 }
 0xf33   :  { %v2455_v49 = vpop.f32.mrf.mxu1  ;;  %v2476_v54 = vadd.f32 %v2475_v17, %v2474_v48 }
 0xf34   :  { %v2167_v24 = vadd.f32 %v2454_v53, %v2351_v22  ;;  %v2477_v50 = vpop.f32.mrf.mxu0 }
 0xf35   :  { %v2456_v51 = vpop.f32.mrf.mxu1 }
 0xf36   :  { %v2208_v52 = vadd.f32 %v2476_v54, %v2167_v24  ;;  %v2457_v55 = vadd.f32 %v2456_v51, %v2455_v49  ;;  %v2478_v23 = vpop.f32.mrf.mxu0 }
 0xf37   :  { %v2479_v60 = vadd.f32 %v2478_v23, %v2477_v50 }
 0xf38   :  { %v2170_v56 = vadd.f32 %v2457_v55, %v2351_v22  ;;  %v2214_v62 = vadd.f32 %v2208_v52, %v3355_v25 }
 0xf3a   :  { %v2211_v63 = vadd.f32 %v2479_v60, %v2170_v56  ;;  %2218 = vadd.xlane.f32.xlu1 %v2214_v62 }
 0xf3c   :  { %v2215_v1 = vadd.f32 %v2211_v63, %v3357_v44 }
 0xf3e   :  { %2220 = vadd.xlane.f32.xlu0 %v2215_v1 }
 0xfc3   :  { %v2219_v18 = vpop.xlane.xlu1 %2218 }
 0xfc4   :  { %v2222_v2 = vmul.f32 0.0078125, %v2219_v18 }
 0xfc6   :  { %v2224_v3 = vsub.f32 %v2214_v62, %v2222_v2 }
 0xfc7   :  { %v2221_v4 = vpop.xlane.xlu0 %2220 }
 0xfc8   :  { %v2223_v5 = vmul.f32 0.0078125, %v2221_v4  ;;  %v2226_v6 = vmul.f32 %v2224_v3, %v2224_v3 }
 0xfca   :  { %v2225_v8 = vsub.f32 %v2215_v1, %v2223_v5  ;;  %2228 = vadd.xlane.f32.xlu1 %v2226_v6 }
 0xfcc   :  { %v2227_v9 = vmul.f32 %v2225_v8, %v2225_v8 }
 0xfce   :  { %2230 = vadd.xlane.f32.xlu0 %v2227_v9 }
0x1053   :  { %v2229_v12 = vpop.xlane.xlu1 %2228 }
0x1054   :  { %v2232_v13 = vmul.f32 0.0078125, %v2229_v12 }
0x1056   :  { %v2234_v14 = vadd.f32 1e-12, %v2232_v13 }
0x1057   :  { %v2231_v15 = vpop.xlane.xlu0 %2230 }
0x1058   :  { %2819 = vrsqrt.f32 %v2234_v14  ;;  %v2233_v25 = vmul.f32 0.0078125, %v2231_v15 }
0x105a   :  { %v2235_v19 = vadd.f32 1e-12, %v2233_v25 }
0x105c   :  { %2821 = vrsqrt.f32 %v2235_v19 }
0x1065   :  { %v2820_v44 = vpop.eup %2819 }
0x1066   :  { %v2238_v27 = vmul.f32 %v2820_v44, %v2224_v3 }
0x1068   :  { %v2246_v32 = vmul.f32 %v2384_v21, %v2238_v27 }
0x1069   :  { %v2822_v7 = vpop.eup %2821 }
0x106a   :  { %v2254_v33 = vadd.f32 %v2385_v31, %v2246_v32  ;;  %v2239_v61 = vmul.f32 %v2822_v7, %v2225_v8 }
0x106c   :  { %2256 = vst [vmem:[%s3433_s17] sm:$0xff] %v2254_v33  ;;  %v2247_v36 = vmul.f32 %v2384_v21, %v2239_v61 }
0x106e   :  { %v2255_v57 = vadd.f32 %v2385_v31, %v2247_v36 }
0x1070   :  { %2257 = vst [vmem:[%s3433_s17 + $0x8] sm:$0xff] %v2255_v57 }
0x1071   :  { %2262 = vsyncpa [#allocation3], 1 }
0x1072   :  { %2263 = vsyncpa [#allocation5], 1 }

// kernel: bert_crf_forward.3
= control target key start
LH: loop header
LB: loop body
LE: loop exit
PB: predicated region body
PF: predicated region fallthrough
CT: control target
= control target key end

     0   :  { %v2881_v1 = vmov 0   ;;  %v2882_v2 = vmov 0.0   ;;  %vm2883_vm0 = vmmov 0   ;;  %v93_v29 = vlaneseq  ;;  %s2886_s21 = smov 32   ;;  %s3616_s2 = inlined_call_operand.vmem [shape: bf16[128,384], index: 2, kind: input, shape index: {}]   ;;  %s3617_s0 = inlined_call_operand.vmem [shape: f32[2,8,128], index: 0, kind: input, shape index: {}]   ;;  %s3618_s3 = inlined_call_operand.vmem [shape: f32[1,384], index: 3, kind: input, shape index: {}]   ;;  %s3619_s1 = inlined_call_operand.vmem [shape: f32[2,1,8], index: 1, kind: input, shape index: {}]   ;;  %s3620_s4 = inlined_call_operand.vmem [shape: bf16[128,128], index: 4, kind: input, shape index: {}]   ;;  %s3621_s5 = inlined_call_operand.vmem [shape: f32[1,128], index: 5, kind: input, shape index: {}]   ;;  %s3622_s8 = inlined_call_operand.vmem [shape: bf16[128,512], index: 8, kind: input, shape index: {}]   ;;  %s3623_s6 = inlined_call_operand.vmem [shape: f32[1,128], index: 6, kind: input, shape index: {}]   ;;  %s3624_s7 = inlined_call_operand.vmem [shape: f32[1,128], index: 7, kind: input, shape index: {}]   ;;  %s3625_s10 = inlined_call_operand.vmem [shape: bf16[512,128], index: 10, kind: input, shape index: {}]   ;;  %s3626_s9 = inlined_call_operand.vmem [shape: f32[1,512], index: 9, kind: input, shape index: {}]   ;;  %s3627_s11 = inlined_call_operand.vmem [shape: f32[1,128], index: 11, kind: input, shape index: {}]   ;;  %s3628_s14 = inlined_call_operand.vmem [shape: bf16[128,128], index: 14, kind: input, shape index: {}]   ;;  %s3629_s12 = inlined_call_operand.vmem [shape: f32[1,128], index: 12, kind: input, shape index: {}]   ;;  %s3630_s13 = inlined_call_operand.vmem [shape: f32[1,128], index: 13, kind: input, shape index: {}]   ;;  %s3631_s15 = inlined_call_operand.vmem [shape: f32[1,128], index: 15, kind: input, shape index: {}]   ;;  %s3632_s16 = inlined_call_operand.vmem [shape: f32[2,8,128], index: 16, kind: output, shape index: {}]  }
   0x1   :  { %3634 = sst [smem:[#allocation2_spill]] %s3616_s2  ;;  %268 = vmatprep.mubr.bf16.mxu0 %v2881_v1  ;;  %2520 = vmatprep.subr.bf16.mxu1 %v2882_v2  ;;  %v3043_v23 = vld [vmem:[%s3617_s0] sm:$0xff]  ;;  %v3048_v24 = vld [vmem:[%s3617_s0 + $0x8] sm:$0xff]  ;;  %vm340_vm1 = vcmask 261120   ;;  %vm461_vm2 = vcmask 1043456   ;;  %vm433_vm3 = vcmask 64512  }
   0x2   :  { %s3635_s23 = sld [smem:[#allocation2_spill]]  ;;  %v56_v25 = vpack.c.bf16 %v3048_v24, %v3043_v23  ;;  %2536 = vmatprep.mubr.msk.bf16.mxu1 %vm2883_vm0, %v2882_v2  ;;  %v3073_v30 = vshrl.u32 %v93_v29, 7  ;;  %v91_v33 = vld [vmem:[%s3618_s3] sm:$0x7]  ;;  %s2884_s3 = smov 96   ;;  %vm1243_vm4 = vcmask 523264  }
   0x3   :  { %vm1246_vm5 = vcmask 785408  }
   0x4   :  { %v99_v31 = vsub.s32 1, %v3073_v30  ;;  %v95_v32 = vsub.s32 0, %v3073_v30  ;;  %v103_v52 = vsub.s32 2, %v3073_v30 }
   0x6   :  { %v100_v34 = vrot.slane %v91_v33, %v99_v31  ;;  %v96_v36 = vrot.slane %v91_v33, %v95_v32  ;;  %v104_v53 = vrot.slane %v91_v33, %v103_v52 }
   0x8   :  { %v2697_v0 = vld [vmem:[%s3635_s23 + $0xac] ss:$12 sps:$4 sm:$0xff]   ;;  %v2699_v3 = vld [vmem:[%s3635_s23 + $0xa8] ss:$12 sps:$4 sm:$0xff]   ;;  %v2702_v5 = vld [vmem:[%s3635_s23 + $0x90] ss:$12 sps:$4 sm:$0xff]  }
   0x9   :  { %236 = vmatprep.subr.bf16.mxu0 %v2697_v0  ;;  %v2700_v4 = vld [vmem:[%s3635_s23 + $0x94] ss:$12 sps:$4 sm:$0xff]   ;;  %v2703_v6 = vld [vmem:[%s3635_s23 + $0x7c] ss:$12 sps:$4 sm:$0xff]   ;;  %v2705_v7 = vld [vmem:[%s3635_s23 + $0x78] ss:$12 sps:$4 sm:$0xff]  }
   0xa   :  { %237 = vmatpush1.bf16.msra.mxu0 %v2699_v3  ;;  %v2706_v8 = vld [vmem:[%s3635_s23 + $0x64] ss:$12 sps:$4 sm:$0xff]   ;;  %v2708_v9 = vld [vmem:[%s3635_s23 + $0x60] ss:$12 sps:$4 sm:$0xff]   ;;  %v2711_v13 = vld [vmem:[%s3635_s23 + $0x48] ss:$12 sps:$4 sm:$0xff]  }
   0xb   :  { %238 = vmatprep.subr.bf16.mxu0 %v2700_v4  ;;  %v2709_v10 = vld [vmem:[%s3635_s23 + $0x4c] ss:$12 sps:$4 sm:$0xff]   ;;  %v2721_v11 = vld [vmem:[%s3635_s23 + $0xb0] ss:$12 sps:$4 sm:$0xff]   ;;  %v2712_v14 = vld [vmem:[%s3635_s23 + $0x34] ss:$12 sps:$4 sm:$0xff]  }
   0xc   :  { %2521 = vmatpush3.bf16.msra.mxu1 %v2721_v11  ;;  %v2722_v12 = vld [vmem:[%s3635_s23 + $0x98] ss:$12 sps:$4 sm:$0xff]   ;;  %v2723_v15 = vld [vmem:[%s3635_s23 + $0x80] ss:$12 sps:$4 sm:$0xff]   ;;  %v2714_v16 = vld [vmem:[%s3635_s23 + $0x30] ss:$12 sps:$4 sm:$0xff]  }
   0xd   :  { %2522 = vmatprep.subr.bf16.mxu1 %v2882_v2  ;;  %v2715_v17 = vld [vmem:[%s3635_s23 + $0x1c] ss:$12 sps:$4 sm:$0xff]   ;;  %v2717_v19 = vld [vmem:[%s3635_s23 + $0x18] ss:$12 sps:$4 sm:$0xff]   ;;  %v2720_v22 = vld [vmem:[%s3635_s23] ss:$12 sps:$4 sm:$0xff]  }
   0xe   :  { %239 = vmatpush1.bf16.msra.mxu0 %v2702_v5  ;;  %v2724_v18 = vld [vmem:[%s3635_s23 + $0x68] ss:$12 sps:$4 sm:$0xff]   ;;  %v2718_v20 = vld [vmem:[%s3635_s23 + $0x4] ss:$12 sps:$4 sm:$0xff]   ;;  %v2727_v27 = vld [vmem:[%s3635_s23 + $0x20] ss:$12 sps:$4 sm:$0xff]  }
   0xf   :  { %240 = vmatprep.subr.bf16.mxu0 %v2703_v6  ;;  %v2725_v21 = vld [vmem:[%s3635_s23 + $0x50] ss:$12 sps:$4 sm:$0xff]   ;;  %v2726_v26 = vld [vmem:[%s3635_s23 + $0x38] ss:$12 sps:$4 sm:$0xff]   ;;  %v2728_v28 = vld [vmem:[%s3635_s23 + $0x8] ss:$12 sps:$4 sm:$0xff]  }
  0x10   :  { %2523 = vmatpush3.bf16.msra.mxu1 %v2722_v12  ;;  %v3124_v0 = vld [vmem:[%s3619_s1] ss:$0 sm:$0xff]  ;;  %v3130_v6 = vld [vmem:[%s3619_s1 + $0x1] ss:$0 sm:$0xff]  ;;  %s2885_s1 = smov 64  }
  0x11   :  { %2524 = vmatprep.subr.bf16.mxu1 %v2882_v2 }
  0x12   :  { %241 = vmatpush1.bf16.msra.mxu0 %v2705_v7 }
  0x13   :  { %242 = vmatprep.subr.bf16.mxu0 %v2706_v8 }
  0x14   :  { %2525 = vmatpush3.bf16.msra.mxu1 %v2723_v15 }
  0x15   :  { %2526 = vmatprep.subr.bf16.mxu1 %v2882_v2 }
  0x16   :  { %243 = vmatpush1.bf16.msra.mxu0 %v2708_v9 }
  0x17   :  { %244 = vmatprep.subr.bf16.mxu0 %v2709_v10 }
  0x18   :  { %2527 = vmatpush3.bf16.msra.mxu1 %v2724_v18 }
  0x19   :  { %2528 = vmatprep.subr.bf16.mxu1 %v2882_v2 }
  0x1a   :  { %245 = vmatpush1.bf16.msra.mxu0 %v2711_v13 }
  0x1b   :  { %246 = vmatprep.subr.bf16.mxu0 %v2712_v14 }
  0x1c   :  { %2529 = vmatpush3.bf16.msra.mxu1 %v2725_v21 }
  0x1d   :  { %2530 = vmatprep.subr.bf16.mxu1 %v2882_v2 }
  0x1e   :  { %247 = vmatpush1.bf16.msra.mxu0 %v2714_v16 }
  0x1f   :  { %248 = vmatprep.subr.bf16.mxu0 %v2715_v17 }
  0x20   :  { %2531 = vmatpush3.bf16.msra.mxu1 %v2726_v26 }
  0x21   :  { %2532 = vmatprep.subr.bf16.mxu1 %v2882_v2 }
  0x22   :  { %249 = vmatpush1.bf16.msra.mxu0 %v2717_v19 }
  0x23   :  { %250 = vmatprep.subr.bf16.mxu0 %v2718_v20 }
  0x24   :  { %2533 = vmatpush3.bf16.msra.mxu1 %v2727_v27 }
  0x25   :  { %2534 = vmatprep.subr.bf16.mxu1 %v2882_v2 }
  0x26   :  { %251 = vmatpush1.bf16.msra.mxu0 %v2720_v22 }
  0x27   :  { %2540 = vmatprep.subr.bf16.mxu0 %v2882_v2 }
  0x28   :  { %2535 = vmatpush3.bf16.msra.mxu1 %v2728_v28 }
  0x29   :  { %269 = vmatmul.mubr.bf16.vlgmr.msra.gmra.mxu0 %v56_v25  ;;  %2546 = vmatprep.subr.bf16.mxu1 %v2882_v2 }
  0x2a   :  { %2542 = vmatprep.mubr.msk.bf16.mxu0 %vm2883_vm0, %v2882_v2 }
  0x2b   :  { %2537 = vmatmul.mubr.bf16.vlgmr.msra.gmra.mxu1 %v56_v25 }
  0x2c   :  { %2548 = vmatprep.mubr.msk.bf16.mxu1 %vm2883_vm0, %v2882_v2 }
  0xe9   :  { %v270_v35 = vpop.f32.mrf.mxu0 }
  0xea   :  { %v271_v40 = vadd.f32 %v270_v35, %v96_v36 }
  0xeb   :  { %v272_v37 = vpop.f32.mrf.mxu0  ;;  %v313_v54 = vpop.f32.mrf.mxu1 }
  0xec   :  { %v273_v38 = vadd.f32 %v272_v37, %v100_v34  ;;  %v320_v45 = vmul.f32 0.17677669, %v271_v40  ;;  %v314_v56 = vadd.f32 %v313_v54, %v104_v53 }
  0xed   :  { %v274_v39 = vpop.f32.mrf.mxu0  ;;  %v2538_v55 = vpop.f32.mrf.mxu1 }
  0xee   :  { %v3084_v41 = vpack.c.bf16 %v273_v38, %v273_v38  ;;  %v275_v46 = vadd.f32 %v274_v39, %v96_v36  ;;  %v3095_v49 = vpack.c.bf16 %v320_v45, %v320_v45  ;;  %v3111_v60 = vpack.c.bf16 %v314_v56, %v314_v56 }
  0xef   :  { %v276_v42 = vpop.f32.mrf.mxu0  ;;  %v316_v57 = vpop.f32.mrf.mxu1 }
  0xf0   :  { %v277_v43 = vadd.f32 %v276_v42, %v100_v34  ;;  %v345_v44 = vsel %vm340_vm1, %v3084_v41, 0  ;;  %v321_v50 = vmul.f32 0.17677669, %v275_v46  ;;  %v317_v58 = vadd.f32 %v316_v57, %v104_v53 }
  0xf1   :  { %2541 = vmatpush3.bf16.xpose.msra.mxu0 %v345_v44  ;;  %v2539_v59 = vpop.f32.mrf.mxu1  ;;  %v463_v62 = vsel %vm461_vm2, %v3111_v60, 0 }
  0xf2   :  { %v3088_v47 = vpack.c.bf16 %v277_v43, %v277_v43  ;;  %2552 = vmatprep.subr.bf16.mxu0 %v2882_v2  ;;  %v3102_v51 = vpack.c.bf16 %v321_v50, %v321_v50  ;;  %v3113_v61 = vpack.c.bf16 %v317_v58, %v317_v58 }
  0xf4   :  { %607 = vrot.lane.b32.xlu1 %v3088_v47, %s2884_s3  ;;  %v391_v48 = vsel %vm340_vm1, %v3088_v47, 0  ;;  %v509_v63 = vsel %vm461_vm2, %v3113_v61, 0 }
  0xf5   :  { %2547 = vmatpush3.bf16.xpose.msra.mxu1 %v391_v48 }
  0xf6   :  { %2558 = vmatprep.subr.bf16.mxu1 %v2882_v2 }
  0xf8   :  { %2543 = vmatmul.mubr.msk.bf16.vlgmr.msra.gmra.mxu0 %vm340_vm1, %v3095_v49 }
  0xf9   :  { %2554 = vmatprep.mubr.msk.bf16.mxu0 %vm2883_vm0, %v2882_v2  ;;  %2553 = vmatpush3.bf16.msra.mxu0 %v463_v62 }
  0xfa   :  { %2564 = vmatprep.subr.bf16.mxu0 %v2882_v2 }
  0xfc   :  { %2549 = vmatmul.mubr.msk.bf16.vlgmr.msra.gmra.mxu1 %vm340_vm1, %v3102_v51 }
  0xfd   :  { %2560 = vmatprep.mubr.msk.bf16.mxu1 %vm2883_vm0, %v2882_v2  ;;  %2559 = vmatpush3.bf16.msra.mxu1 %v509_v63 }
  0xfe   :  { %2570 = vmatprep.subr.bf16.mxu1 %v2882_v2 }
 0x166   :  { %v608_v28 = vpop.permute.xlu1 %607 }
 0x167   :  { %v613_v43 = vsel %vm340_vm1, %v608_v28, 0 }
 0x1b8   :  { %v381_v3 = vpop.f32.mrf.mxu0 }
 0x1b9   :  { %v382_v4 = vadd.f32 %v3124_v0, %v381_v3 }
 0x1ba   :  { %v2544_v5 = vpop.f32.mrf.mxu0 }
 0x1bb   :  { %v434_v7 = vsel %vm433_vm3, %v382_v4, -inf }
 0x1bc   :  { %v427_v8 = vpop.f32.mrf.mxu1  ;;  %435 = vmax.xlane.f32.xlu0 %v434_v7  ;;  %v384_v9 = vpop.f32.mrf.mxu0 }
 0x1bd   :  { %v428_v10 = vadd.f32 %v3130_v6, %v427_v8 }
 0x1be   :  { %v2545_v11 = vpop.f32.mrf.mxu0  ;;  %v2550_v12 = vpop.f32.mrf.mxu1 }
 0x1bf   :  { %v437_v13 = vsel %vm433_vm3, %v428_v10, -inf }
 0x1c0   :  { %v430_v14 = vpop.f32.mrf.mxu1  ;;  %438 = vmax.xlane.f32.xlu0 %v437_v13 }
 0x1c2   :  { %v2551_v15 = vpop.f32.mrf.mxu1 }
 0x1d6   :  { %555 = vrot.lane.b32.xlu0 %v3084_v41, %s2884_s3 }
 0x245   :  { %v436_v16 = vpop.xlane.xlu0 %435 }
 0x246   :  { %v440_v17 = vsub.f32 %v382_v4, %v436_v16 }
 0x248   :  { %v442_v18 = vmul.f32 1.442695, %v440_v17 }
 0x249   :  { %v439_v19 = vpop.xlane.xlu0 %438 }
 0x24a   :  { %2825 = vpow2.f32 %v442_v18  ;;  %v441_v20 = vsub.f32 %v428_v10, %v439_v19 }
 0x24c   :  { %v444_v21 = vmul.f32 1.442695, %v441_v20 }
 0x24d   :  { %v556_v36 = vpop.permute.xlu0 %555 }
 0x24e   :  { %2827 = vpow2.f32 %v444_v21  ;;  %v561_v39 = vsel %vm340_vm1, %v556_v36, 0 }
 0x257   :  { %v2826_v22 = vpop.eup %2825 }
 0x258   :  { %v446_v25 = vsel %vm433_vm3, %v2826_v22, 0.0 }
 0x259   :  { %447 = vadd.xlane.f32.xlu1 %v446_v25 }
 0x25b   :  { %v2828_v26 = vpop.eup %2827 }
 0x25c   :  { %v449_v27 = vsel %vm433_vm3, %v2828_v26, 0.0 }
 0x25d   :  { %450 = vadd.xlane.f32.xlu1 %v449_v27 }
 0x26e   :  { %552 = vrot.lane.b32.xlu1 %v3095_v49, %s2884_s3 }
 0x272   :  { %604 = vrot.lane.b32.xlu1 %v3102_v51, %s2884_s3 }
 0x2e2   :  { %v448_v29 = vpop.xlane.xlu1 %447 }
 0x2e3   :  { %2829 = vrcp.f32 %v448_v29 }
 0x2e6   :  { %v451_v33 = vpop.xlane.xlu1 %450 }
 0x2e7   :  { %2831 = vrcp.f32 %v451_v33 }
 0x2ea   :  { %v553_v44 = vpop.permute.xlu1 %552 }
 0x2ee   :  { %v605_v45 = vpop.permute.xlu1 %604 }
 0x2f0   :  { %v2830_v34 = vpop.eup %2829 }
 0x2f1   :  { %v454_v35 = vmul.f32 %v2830_v34, %v2826_v22 }
 0x2f3   :  { %v456_v37 = vpack.c.bf16 %v454_v35, %v454_v35 }
 0x2f4   :  { %v2832_v38 = vpop.eup %2831 }
 0x2f5   :  { %2555 = vmatmul.mubr.msk.bf16.vlgmr.msra.gmra.mxu0 %vm433_vm3, %v456_v37  ;;  %v455_v40 = vmul.f32 %v2832_v38, %v2828_v26 }
 0x2f6   :  { %2565 = vmatpush3.bf16.xpose.msra.mxu0 %v561_v39  ;;  %2566 = vmatprep.mubr.msk.bf16.mxu0 %vm2883_vm0, %v2882_v2 }
 0x2f7   :  { %v457_v42 = vpack.c.bf16 %v455_v40, %v455_v40  ;;  %2576 = vmatprep.subr.bf16.mxu0 %v2882_v2 }
 0x2f9   :  { %2561 = vmatmul.mubr.msk.bf16.vlgmr.msra.gmra.mxu1 %vm433_vm3, %v457_v42 }
 0x2fa   :  { %2571 = vmatpush3.bf16.xpose.msra.mxu1 %v613_v43  ;;  %2572 = vmatprep.mubr.msk.bf16.mxu1 %vm2883_vm0, %v2882_v2 }
 0x2fb   :  { %2582 = vmatprep.subr.bf16.mxu1 %v2882_v2 }
 0x2fd   :  { %2567 = vmatmul.mubr.msk.bf16.vlgmr.msra.gmra.mxu0 %vm340_vm1, %v553_v44 }
 0x2fe   :  { %2578 = vmatprep.mubr.msk.bf16.mxu0 %vm2883_vm0, %v2882_v2 }
 0x301   :  { %2573 = vmatmul.mubr.msk.bf16.vlgmr.msra.gmra.mxu1 %vm340_vm1, %v605_v45 }
 0x302   :  { %2584 = vmatprep.mubr.msk.bf16.mxu1 %vm2883_vm0, %v2882_v2 }
 0x3b5   :  { %v3159_v46 = vpop.f32.mrf.mxu0 }
 0x3b7   :  { %v2556_v48 = vpop.f32.mrf.mxu0 }
 0x3b9   :  { %v502_v50 = vpop.f32.mrf.mxu0  ;;  %v3161_v53 = vpop.f32.mrf.mxu1 }
 0x3bb   :  { %v2557_v54 = vpop.f32.mrf.mxu0  ;;  %v2562_v55 = vpop.f32.mrf.mxu1 }
 0x3bd   :  { %v548_v56 = vpop.f32.mrf.mxu1  ;;  %v597_v57 = vpop.f32.mrf.mxu0 }
 0x3be   :  { %v598_v58 = vadd.f32 %v3124_v0, %v597_v57 }
 0x3bf   :  { %v2563_v59 = vpop.f32.mrf.mxu1  ;;  %v2568_v62 = vpop.f32.mrf.mxu0 }
 0x3c0   :  { %v655_v63 = vsel %vm433_vm3, %v598_v58, -inf }
 0x3c1   :  { %v649_v3 = vpop.f32.mrf.mxu1  ;;  %656 = vmax.xlane.f32.xlu0 %v655_v63  ;;  %v600_v4 = vpop.f32.mrf.mxu0 }
 0x3c2   :  { %v650_v5 = vadd.f32 %v3130_v6, %v649_v3 }
 0x3c3   :  { %v2569_v7 = vpop.f32.mrf.mxu0  ;;  %v2574_v8 = vpop.f32.mrf.mxu1 }
 0x3c4   :  { %v658_v9 = vsel %vm433_vm3, %v650_v5, -inf }
 0x3c5   :  { %659 = vmax.xlane.f32.xlu1 %v658_v9  ;;  %v652_v10 = vpop.f32.mrf.mxu1 }
 0x3c7   :  { %v2575_v11 = vpop.f32.mrf.mxu1 }
 0x3d6   :  { %729 = vrot.lane.b32.xlu1 %v3113_v61, %s2884_s3 }
 0x3da   :  { %779 = vrot.lane.b32.xlu1 %v3084_v41, %s2885_s1 }
 0x3de   :  { %829 = vrot.lane.b32.xlu1 %v3088_v47, %s2885_s1 }
 0x3e2   :  { %827 = vrot.lane.b32.xlu1 %v3102_v51, %s2885_s1 }
 0x44a   :  { %v657_v12 = vpop.xlane.xlu0 %656 }
 0x44b   :  { %v661_v13 = vsub.f32 %v598_v58, %v657_v12 }
 0x44d   :  { %v663_v14 = vmul.f32 1.442695, %v661_v13 }
 0x44e   :  { %v660_v15 = vpop.xlane.xlu1 %659 }
 0x44f   :  { %2833 = vpow2.f32 %v663_v14  ;;  %v662_v16 = vsub.f32 %v650_v5, %v660_v15 }
 0x451   :  { %v665_v17 = vmul.f32 1.442695, %v662_v16 }
 0x452   :  { %v730_v18 = vpop.permute.xlu1 %729 }
 0x453   :  { %2835 = vpow2.f32 %v665_v17  ;;  %v735_v19 = vsel %vm461_vm2, %v730_v18, 0 }
 0x454   :  { %2583 = vmatpush3.bf16.msra.mxu1 %v735_v19 }
 0x455   :  { %2594 = vmatprep.subr.bf16.mxu1 %v2882_v2 }
 0x456   :  { %v780_v34 = vpop.permute.xlu1 %779 }
 0x457   :  { %v785_v38 = vsel %vm340_vm1, %v780_v34, 0 }
 0x45a   :  { %v830_v40 = vpop.permute.xlu1 %829 }
 0x45b   :  { %v835_v43 = vsel %vm340_vm1, %v830_v40, 0 }
 0x45c   :  { %v2834_v20 = vpop.eup %2833 }
 0x45d   :  { %v667_v21 = vsel %vm433_vm3, %v2834_v20, 0.0 }
 0x45e   :  { %668 = vadd.xlane.f32.xlu0 %v667_v21  ;;  %v828_v45 = vpop.permute.xlu1 %827 }
 0x460   :  { %v2836_v22 = vpop.eup %2835 }
 0x461   :  { %v670_v25 = vsel %vm433_vm3, %v2836_v22, 0.0 }
 0x462   :  { %671 = vadd.xlane.f32.xlu0 %v670_v25 }
 0x478   :  { %680 = vrot.lane.b32.xlu0 %v3111_v60, %s2884_s3 }
 0x47c   :  { %777 = vrot.lane.b32.xlu0 %v3095_v49, %s2885_s1 }
 0x4e7   :  { %v669_v26 = vpop.xlane.xlu0 %668 }
 0x4e8   :  { %2837 = vrcp.f32 %v669_v26 }
 0x4eb   :  { %v672_v27 = vpop.xlane.xlu0 %671 }
 0x4ec   :  { %2839 = vrcp.f32 %v672_v27 }
 0x4ef   :  { %v681_v28 = vpop.permute.xlu0 %680 }
 0x4f0   :  { %v686_v29 = vsel %vm461_vm2, %v681_v28, 0 }
 0x4f1   :  { %2577 = vmatpush3.bf16.msra.mxu0 %v686_v29 }
 0x4f2   :  { %2588 = vmatprep.subr.bf16.mxu0 %v2882_v2 }
 0x4f3   :  { %v778_v44 = vpop.permute.xlu0 %777 }
 0x4f5   :  { %v2838_v33 = vpop.eup %2837 }
 0x4f6   :  { %v675_v35 = vmul.f32 %v2838_v33, %v2834_v20 }
 0x4f8   :  { %v677_v36 = vpack.c.bf16 %v675_v35, %v675_v35 }
 0x4f9   :  { %v2840_v37 = vpop.eup %2839 }
 0x4fa   :  { %2579 = vmatmul.mubr.msk.bf16.vlgmr.msra.gmra.mxu0 %vm433_vm3, %v677_v36  ;;  %v676_v39 = vmul.f32 %v2840_v37, %v2836_v22 }
 0x4fb   :  { %2589 = vmatpush3.bf16.xpose.msra.mxu0 %v785_v38  ;;  %2590 = vmatprep.mubr.msk.bf16.mxu0 %vm2883_vm0, %v2882_v2 }
 0x4fc   :  { %v678_v42 = vpack.c.bf16 %v676_v39, %v676_v39  ;;  %2600 = vmatprep.subr.bf16.mxu0 %v2882_v2 }
 0x4fe   :  { %2585 = vmatmul.mubr.msk.bf16.vlgmr.msra.gmra.mxu1 %vm433_vm3, %v678_v42 }
 0x4ff   :  { %2595 = vmatpush3.bf16.xpose.msra.mxu1 %v835_v43  ;;  %2596 = vmatprep.mubr.msk.bf16.mxu1 %vm2883_vm0, %v2882_v2 }
 0x500   :  { %2606 = vmatprep.subr.bf16.mxu1 %v2882_v2 }
 0x502   :  { %2591 = vmatmul.mubr.msk.bf16.vlgmr.msra.gmra.mxu0 %vm340_vm1, %v778_v44 }
 0x503   :  { %2602 = vmatprep.mubr.msk.bf16.mxu0 %vm2883_vm0, %v2882_v2 }
 0x506   :  { %2597 = vmatmul.mubr.msk.bf16.vlgmr.msra.gmra.mxu1 %vm340_vm1, %v828_v45 }
 0x507   :  { %2608 = vmatprep.mubr.msk.bf16.mxu1 %vm2883_vm0, %v2882_v2 }
 0x5ba   :  { %v3201_v48 = vpop.f32.mrf.mxu0 }
 0x5bc   :  { %v2580_v50 = vpop.f32.mrf.mxu0 }
 0x5be   :  { %v725_v54 = vpop.f32.mrf.mxu0  ;;  %v3203_v55 = vpop.f32.mrf.mxu1 }
 0x5bf   :  { %v2682_v56 = vpack.i.bf16 %v3203_v55, %v3201_v48 }
 0x5c0   :  { %v2581_v57 = vpop.f32.mrf.mxu0  ;;  %v2586_v58 = vpop.f32.mrf.mxu1 }
 0x5c2   :  { %v774_v59 = vpop.f32.mrf.mxu1  ;;  %v821_v62 = vpop.f32.mrf.mxu0 }
 0x5c3   :  { %v822_v63 = vadd.f32 %v3124_v0, %v821_v62 }
 0x5c4   :  { %v2587_v3 = vpop.f32.mrf.mxu1  ;;  %v2592_v4 = vpop.f32.mrf.mxu0 }
 0x5c5   :  { %v877_v5 = vsel %vm433_vm3, %v822_v63, -inf }
 0x5c6   :  { %v871_v7 = vpop.f32.mrf.mxu1  ;;  %878 = vmax.xlane.f32.xlu0 %v877_v5  ;;  %v824_v8 = vpop.f32.mrf.mxu0 }
 0x5c7   :  { %v872_v9 = vadd.f32 %v3130_v6, %v871_v7 }
 0x5c8   :  { %v2593_v10 = vpop.f32.mrf.mxu0  ;;  %v2598_v11 = vpop.f32.mrf.mxu1 }
 0x5c9   :  { %v880_v12 = vsel %vm433_vm3, %v872_v9, -inf }
 0x5ca   :  { %881 = vmax.xlane.f32.xlu1 %v880_v12  ;;  %v874_v13 = vpop.f32.mrf.mxu1 }
 0x5cc   :  { %v2599_v14 = vpop.f32.mrf.mxu1 }
 0x5db   :  { %949 = vrot.lane.b32.xlu1 %v3113_v61, %s2885_s1 }
 0x5df   :  { %999 = vrot.lane.b32.xlu1 %v3084_v41, %s2886_s21 }
 0x5e3   :  { %1049 = vrot.lane.b32.xlu1 %v3088_v47, %s2886_s21 }
 0x5e7   :  { %1047 = vrot.lane.b32.xlu1 %v3102_v51, %s2886_s21 }
 0x64f   :  { %v879_v15 = vpop.xlane.xlu0 %878 }
 0x650   :  { %v883_v16 = vsub.f32 %v822_v63, %v879_v15 }
 0x652   :  { %v885_v17 = vmul.f32 1.442695, %v883_v16 }
 0x653   :  { %v882_v18 = vpop.xlane.xlu1 %881 }
 0x654   :  { %2841 = vpow2.f32 %v885_v17  ;;  %v884_v19 = vsub.f32 %v872_v9, %v882_v18 }
 0x656   :  { %v887_v20 = vmul.f32 1.442695, %v884_v19 }
 0x657   :  { %v950_v21 = vpop.permute.xlu1 %949 }
 0x658   :  { %2843 = vpow2.f32 %v887_v20  ;;  %v955_v22 = vsel %vm461_vm2, %v950_v21, 0 }
 0x659   :  { %2607 = vmatpush3.bf16.msra.mxu1 %v955_v22 }
 0x65a   :  { %2618 = vmatprep.subr.bf16.mxu1 %v2882_v2 }
 0x65b   :  { %v1000_v34 = vpop.permute.xlu1 %999 }
 0x65c   :  { %v1005_v38 = vsel %vm340_vm1, %v1000_v34, 0  ;;  %v2729_v34 = vld [vmem:[%s3620_s4 + $0x38] sm:$0xff]  }
 0x65f   :  { %v1050_v39 = vpop.permute.xlu1 %1049 }
 0x660   :  { %v1055_v42 = vsel %vm340_vm1, %v1050_v39, 0  ;;  %v2735_v39 = vld [vmem:[%s3620_s4 + $0x8] sm:$0xff]  }
 0x661   :  { %v2842_v41 = vpop.eup %2841 }
 0x662   :  { %v889_v47 = vsel %vm433_vm3, %v2842_v41, 0.0 }
 0x663   :  { %890 = vadd.xlane.f32.xlu0 %v889_v47  ;;  %v1048_v44 = vpop.permute.xlu1 %1047 }
 0x665   :  { %v2844_v25 = vpop.eup %2843 }
 0x666   :  { %v892_v51 = vsel %vm433_vm3, %v2844_v25, 0.0 }
 0x667   :  { %893 = vadd.xlane.f32.xlu0 %v892_v51 }
 0x67d   :  { %901 = vrot.lane.b32.xlu0 %v3111_v60, %s2885_s1 }
 0x681   :  { %997 = vrot.lane.b32.xlu0 %v3095_v49, %s2886_s21 }
 0x6ec   :  { %v891_v26 = vpop.xlane.xlu0 %890 }
 0x6ed   :  { %2845 = vrcp.f32 %v891_v26 }
 0x6f0   :  { %v894_v27 = vpop.xlane.xlu0 %893 }
 0x6f1   :  { %2847 = vrcp.f32 %v894_v27 }
 0x6f4   :  { %v902_v28 = vpop.permute.xlu0 %901 }
 0x6f5   :  { %v907_v29 = vsel %vm461_vm2, %v902_v28, 0 }
 0x6f6   :  { %2601 = vmatpush3.bf16.msra.mxu0 %v907_v29 }
 0x6f7   :  { %2612 = vmatprep.subr.bf16.mxu0 %v2882_v2 }
 0x6f8   :  { %v998_v43 = vpop.permute.xlu0 %997 }
 0x6fa   :  { %v2846_v33 = vpop.eup %2845 }
 0x6fb   :  { %v897_v35 = vmul.f32 %v2846_v33, %v2842_v41 }
 0x6fd   :  { %v899_v36 = vpack.c.bf16 %v897_v35, %v897_v35  ;;  %v2730_v35 = vld [vmem:[%s3620_s4 + $0x30] sm:$0xff]  }
 0x6fe   :  { %v2848_v37 = vpop.eup %2847 }
 0x6ff   :  { %2603 = vmatmul.mubr.msk.bf16.vlgmr.msra.gmra.mxu0 %vm433_vm3, %v899_v36  ;;  %v898_v49 = vmul.f32 %v2848_v37, %v2844_v25  ;;  %v2731_v36 = vld [vmem:[%s3620_s4 + $0x28] sm:$0xff]   ;;  %v2732_v37 = vld [vmem:[%s3620_s4 + $0x20] sm:$0xff]  }
 0x700   :  { %2613 = vmatpush3.bf16.xpose.msra.mxu0 %v1005_v38  ;;  %2614 = vmatprep.mubr.msk.bf16.mxu0 %vm2883_vm0, %v2882_v2  ;;  %v2733_v38 = vld [vmem:[%s3620_s4 + $0x18] sm:$0xff]  }
 0x701   :  { %v900_v40 = vpack.c.bf16 %v898_v49, %v898_v49  ;;  %2624 = vmatprep.subr.bf16.mxu0 %v2882_v2  ;;  %v2734_v49 = vld [vmem:[%s3620_s4 + $0x10] sm:$0xff]  }
 0x703   :  { %2609 = vmatmul.mubr.msk.bf16.vlgmr.msra.gmra.mxu1 %vm433_vm3, %v900_v40  ;;  %v2736_v40 = vld [vmem:[%s3620_s4] sm:$0xff]  }
 0x704   :  { %2619 = vmatpush3.bf16.xpose.msra.mxu1 %v1055_v42  ;;  %2620 = vmatprep.mubr.msk.bf16.mxu1 %vm2883_vm0, %v2882_v2 }
 0x705   :  { %2630 = vmatprep.subr.bf16.mxu1 %v2882_v2 }
 0x707   :  { %2615 = vmatmul.mubr.msk.bf16.vlgmr.msra.gmra.mxu0 %vm340_vm1, %v998_v43 }
 0x708   :  { %2626 = vmatprep.mubr.msk.bf16.mxu0 %vm2883_vm0, %v2882_v2 }
 0x70b   :  { %2621 = vmatmul.mubr.msk.bf16.vlgmr.msra.gmra.mxu1 %vm340_vm1, %v1048_v44 }
 0x70c   :  { %2632 = vmatprep.mubr.msk.bf16.mxu1 %vm2883_vm0, %v2882_v2 }
 0x7bf   :  { %v943_v45 = vpop.f32.mrf.mxu0 }
 0x7c1   :  { %v2604_v50 = vpop.f32.mrf.mxu0 }
 0x7c3   :  { %v946_v54 = vpop.f32.mrf.mxu0  ;;  %v991_v57 = vpop.f32.mrf.mxu1 }
 0x7c5   :  { %v2605_v58 = vpop.f32.mrf.mxu0  ;;  %v2610_v59 = vpop.f32.mrf.mxu1 }
 0x7c7   :  { %v994_v62 = vpop.f32.mrf.mxu1  ;;  %v1041_v63 = vpop.f32.mrf.mxu0 }
 0x7c8   :  { %v1042_v3 = vadd.f32 %v3124_v0, %v1041_v63  ;;  %v2687_v0 = vpack.i.bf16 %v991_v57, %v943_v45 }
 0x7c9   :  { %v2611_v4 = vpop.f32.mrf.mxu1  ;;  %v2616_v5 = vpop.f32.mrf.mxu0 }
 0x7ca   :  { %v1097_v7 = vsel %vm433_vm3, %v1042_v3, -inf }
 0x7cb   :  { %v1091_v8 = vpop.f32.mrf.mxu1  ;;  %1098 = vmax.xlane.f32.xlu0 %v1097_v7  ;;  %v1044_v9 = vpop.f32.mrf.mxu0 }
 0x7cc   :  { %v1092_v10 = vadd.f32 %v3130_v6, %v1091_v8 }
 0x7cd   :  { %v2617_v11 = vpop.f32.mrf.mxu0  ;;  %v2622_v12 = vpop.f32.mrf.mxu1 }
 0x7ce   :  { %v1100_v13 = vsel %vm433_vm3, %v1092_v10, -inf }
 0x7cf   :  { %1101 = vmax.xlane.f32.xlu1 %v1100_v13  ;;  %v1094_v14 = vpop.f32.mrf.mxu1 }
 0x7d1   :  { %v2623_v15 = vpop.f32.mrf.mxu1 }
 0x7e0   :  { %1169 = vrot.lane.b32.xlu1 %v3113_v61, %s2886_s21 }
 0x7e4   :  { %2683 = vrot.lane.b32.xlu1 %v2682_v56, %s2886_s21 }
 0x7e8   :  { %2688 = vrot.lane.b32.xlu1 %v2687_v0, %s2885_s1 }
 0x854   :  { %v1099_v16 = vpop.xlane.xlu0 %1098 }
 0x855   :  { %v1103_v6 = vsub.f32 %v1042_v3, %v1099_v16 }
 0x857   :  { %v1105_v17 = vmul.f32 1.442695, %v1103_v6  ;;  %v2330_v6 = vld [vmem:[%s3621_s5] ss:$0 sm:$0xff] }
 0x858   :  { %v1102_v18 = vpop.xlane.xlu1 %1101 }
 0x859   :  { %2849 = vpow2.f32 %v1105_v17  ;;  %v1104_v19 = vsub.f32 %v1092_v10, %v1102_v18 }
 0x85b   :  { %v1107_v20 = vmul.f32 1.442695, %v1104_v19 }
 0x85c   :  { %v1170_v21 = vpop.permute.xlu1 %1169 }
 0x85d   :  { %2851 = vpow2.f32 %v1107_v20  ;;  %v1175_v22 = vsel %vm461_vm2, %v1170_v21, 0 }
 0x85e   :  { %2631 = vmatpush3.bf16.msra.mxu1 %v1175_v22 }
 0x860   :  { %v2684_v62 = vpop.permute.xlu1 %2683 }
 0x861   :  { %v2686_v3 = vunpack.i.h.bf16 %v2684_v62  ;;  %v2685_v4 = vunpack.i.l.bf16 %v2684_v62  ;;  %v2773_v62 = vld [vmem:[%s3622_s8 + $0x20] ss:$16 sps:$4 sm:$0xff]  }
 0x863   :  { %v1242_v9 = vsel %vm340_vm1, %v3161_v53, %v2686_v3  ;;  %v1241_v10 = vsel %vm340_vm1, %v3159_v46, %v2685_v4  ;;  %v2781_v3 = vld [vmem:[%s3622_s8 + $0x4] ss:$16 sps:$4 sm:$0xff]   ;;  %v2784_v4 = vld [vmem:[%s3622_s8 + $0xc] ss:$16 sps:$4 sm:$0xff]  }
 0x864   :  { %v2689_v63 = vpop.permute.xlu1 %2688 }
 0x865   :  { %v2691_v5 = vunpack.i.h.bf16 %v2689_v63  ;;  %v2690_v7 = vunpack.i.l.bf16 %v2689_v63  ;;  %v2776_v63 = vld [vmem:[%s3622_s8 + $0x28] ss:$16 sps:$4 sm:$0xff]  }
 0x866   :  { %v2850_v61 = vpop.eup %2849 }
 0x867   :  { %v1109_v41 = vsel %vm433_vm3, %v2850_v61, 0.0  ;;  %v1245_v13 = vsel %vm1243_vm4, %v1242_v9, %v2691_v5  ;;  %v1244_v14 = vsel %vm1243_vm4, %v1241_v10, %v2690_v7  ;;  %v2779_v5 = vld [vmem:[%s3622_s8] ss:$16 sps:$4 sm:$0xff]   ;;  %v2782_v7 = vld [vmem:[%s3622_s8 + $0x8] ss:$16 sps:$4 sm:$0xff]  }
 0x868   :  { %1110 = vadd.xlane.f32.xlu0 %v1109_v41  ;;  %v2740_v41 = vld [vmem:[%s3622_s8 + $0xe8] ss:$16 sps:$4 sm:$0xff]  }
 0x86a   :  { %v2852_v48 = vpop.eup %2851 }
 0x86b   :  { %v1112_v55 = vsel %vm433_vm3, %v2852_v48, 0.0 }
 0x86c   :  { %1113 = vadd.xlane.f32.xlu0 %v1112_v55 }
 0x882   :  { %1121 = vrot.lane.b32.xlu0 %v3111_v60, %s2886_s21 }
 0x8f1   :  { %v1111_v56 = vpop.xlane.xlu0 %1110 }
 0x8f2   :  { %2853 = vrcp.f32 %v1111_v56 }
 0x8f5   :  { %v1114_v47 = vpop.xlane.xlu0 %1113 }
 0x8f6   :  { %2855 = vrcp.f32 %v1114_v47 }
 0x8f9   :  { %v1122_v25 = vpop.permute.xlu0 %1121 }
 0x8fa   :  { %v1127_v51 = vsel %vm461_vm2, %v1122_v25, 0 }
 0x8fb   :  { %2625 = vmatpush3.bf16.msra.mxu0 %v1127_v51 }
 0x8fc   :  { %2636 = vmatprep.subr.bf16.mxu0 %v2882_v2 }
 0x8ff   :  { %v2854_v26 = vpop.eup %2853 }
 0x900   :  { %v1117_v27 = vmul.f32 %v2854_v26, %v2850_v61  ;;  %v2739_v61 = vld [vmem:[%s3622_s8 + $0xe4] ss:$16 sps:$4 sm:$0xff]  }
 0x901   :  { %1620 = vmatprep.subr.bf16.mxu1 %v2739_v61  ;;  %v2788_v61 = vld [vmem:[%s3625_s10 + $0xb8] sm:$0xff]  }
 0x902   :  { %v1119_v28 = vpack.c.bf16 %v1117_v27, %v1117_v27  ;;  %v2745_v27 = vld [vmem:[%s3622_s8 + $0xc4] ss:$16 sps:$4 sm:$0xff]  }
 0x903   :  { %v2856_v29 = vpop.eup %2855 }
 0x904   :  { %2627 = vmatmul.mubr.msk.bf16.vlgmr.msra.gmra.mxu0 %vm433_vm3, %v1119_v28  ;;  %v1118_v33 = vmul.f32 %v2856_v29, %v2852_v48  ;;  %v2748_v28 = vld [vmem:[%s3622_s8 + $0xcc] ss:$16 sps:$4 sm:$0xff]   ;;  %v2743_v29 = vld [vmem:[%s3622_s8 + $0xc0] ss:$16 sps:$4 sm:$0xff]  }
 0x905   :  { %2652 = vmatprep.mubr.msk.bf16.mxu0 %vm2883_vm0, %v2882_v2  ;;  %2637 = vmatpush3.bf16.msra.mxu0 %v2729_v34  ;;  %v2754_v34 = vld [vmem:[%s3622_s8 + $0xac] ss:$16 sps:$4 sm:$0xff]  }
 0x906   :  { %v1120_v60 = vpack.c.bf16 %v1118_v33, %v1118_v33  ;;  %2638 = vmatprep.subr.bf16.mxu0 %v2882_v2  ;;  %v2746_v33 = vld [vmem:[%s3622_s8 + $0xc8] ss:$16 sps:$4 sm:$0xff]  }
 0x908   :  { %2633 = vmatmul.mubr.msk.bf16.vlgmr.msra.gmra.mxu1 %vm433_vm3, %v1120_v60  ;;  %v2751_v60 = vld [vmem:[%s3622_s8 + $0xa4] ss:$16 sps:$4 sm:$0xff]  }
 0x909   :  { %1652 = vmatprep.mubr.bf16.mxu1 %v2881_v1  ;;  %2639 = vmatpush3.bf16.msra.mxu0 %v2730_v35  ;;  %v2749_v35 = vld [vmem:[%s3622_s8 + $0xa0] ss:$16 sps:$4 sm:$0xff]  }
 0x90a   :  { %2640 = vmatprep.subr.bf16.mxu0 %v2882_v2 }
 0x90d   :  { %2641 = vmatpush3.bf16.msra.mxu0 %v2731_v36  ;;  %v2752_v36 = vld [vmem:[%s3622_s8 + $0xa8] ss:$16 sps:$4 sm:$0xff]  }
 0x90e   :  { %2642 = vmatprep.subr.bf16.mxu0 %v2882_v2 }
 0x911   :  { %2643 = vmatpush3.bf16.msra.mxu0 %v2732_v37  ;;  %v2755_v37 = vld [vmem:[%s3622_s8 + $0x80] ss:$16 sps:$4 sm:$0xff]  }
 0x912   :  { %2644 = vmatprep.subr.bf16.mxu0 %v2882_v2 }
 0x915   :  { %2645 = vmatpush3.bf16.msra.mxu0 %v2733_v38  ;;  %v2757_v38 = vld [vmem:[%s3622_s8 + $0x84] ss:$16 sps:$4 sm:$0xff]  }
 0x916   :  { %2646 = vmatprep.subr.bf16.mxu0 %v2882_v2 }
 0x919   :  { %2647 = vmatpush3.bf16.msra.mxu0 %v2734_v49  ;;  %v2758_v49 = vld [vmem:[%s3622_s8 + $0x88] ss:$16 sps:$4 sm:$0xff]  }
 0x91a   :  { %2648 = vmatprep.subr.bf16.mxu0 %v2882_v2 }
 0x91d   :  { %2649 = vmatpush3.bf16.msra.mxu0 %v2735_v39  ;;  %v2760_v39 = vld [vmem:[%s3622_s8 + $0x8c] ss:$16 sps:$4 sm:$0xff]  }
 0x91e   :  { %2650 = vmatprep.subr.bf16.mxu0 %v2882_v2 }
 0x921   :  { %2651 = vmatpush3.bf16.msra.mxu0 %v2736_v40  ;;  %v2763_v40 = vld [vmem:[%s3622_s8 + $0x64] ss:$16 sps:$4 sm:$0xff]  }
 0x9c4   :  { %v1163_v42 = vpop.f32.mrf.mxu0 }
 0x9c6   :  { %v2628_v43 = vpop.f32.mrf.mxu0 }
 0x9c7   :  { %v2761_v43 = vld [vmem:[%s3622_s8 + $0x60] ss:$16 sps:$4 sm:$0xff]  }
 0x9c8   :  { %v1166_v44 = vpop.f32.mrf.mxu0  ;;  %v1211_v45 = vpop.f32.mrf.mxu1 }
 0x9c9   :  { %v2692_v50 = vpack.i.bf16 %v1211_v45, %v1163_v42  ;;  %v2766_v42 = vld [vmem:[%s3622_s8 + $0x6c] ss:$16 sps:$4 sm:$0xff]   ;;  %v2764_v44 = vld [vmem:[%s3622_s8 + $0x68] ss:$16 sps:$4 sm:$0xff]   ;;  %v2769_v45 = vld [vmem:[%s3622_s8 + $0x44] ss:$16 sps:$4 sm:$0xff]  }
 0x9ca   :  { %v2629_v54 = vpop.f32.mrf.mxu0  ;;  %v2634_v57 = vpop.f32.mrf.mxu1 }
 0x9cb   :  { %2693 = vrot.lane.b32.xlu0 %v2692_v50, %s2884_s3  ;;  %v2772_v50 = vld [vmem:[%s3622_s8 + $0x4c] ss:$16 sps:$4 sm:$0xff]   ;;  %v2767_v54 = vld [vmem:[%s3622_s8 + $0x40] ss:$16 sps:$4 sm:$0xff]   ;;  %v2770_v57 = vld [vmem:[%s3622_s8 + $0x48] ss:$16 sps:$4 sm:$0xff]  }
 0x9cc   :  { %v1214_v58 = vpop.f32.mrf.mxu1 }
 0x9cd   :  { %v2775_v58 = vld [vmem:[%s3622_s8 + $0x24] ss:$16 sps:$4 sm:$0xff]  }
 0x9ce   :  { %v2635_v59 = vpop.f32.mrf.mxu1 }
 0x9cf   :  { %v2778_v59 = vld [vmem:[%s3622_s8 + $0x2c] ss:$16 sps:$4 sm:$0xff]  }
 0xa3d   :  { %v2694_v8 = vpop.permute.xlu0 %2693 }
 0xa3e   :  { %v2696_v11 = vunpack.i.h.bf16 %v2694_v8  ;;  %v2695_v12 = vunpack.i.l.bf16 %v2694_v8 }
 0xa40   :  { %v1248_v15 = vsel %vm1246_vm5, %v1245_v13, %v2696_v11  ;;  %v1247_v0 = vsel %vm1246_vm5, %v1244_v14, %v2695_v12 }
 0xa41   :  { %v1249_v16 = vpack.c.bf16 %v1248_v15, %v1247_v0  ;;  %v2339_v0 = vld [vmem:[%s3623_s6] ss:$0 sm:$0xff] }
 0xa43   :  { %2653 = vmatmul.mubr.bf16.vlgmr.msra.gmra.mxu0 %v1249_v16 }
 0xa44   :  { %1695 = vmatprep.mubr.bf16.mxu0 %v2881_v1  ;;  %v2737_v1 = vld [vmem:[%s3622_s8 + $0xe0] ss:$16 sps:$4 sm:$0xff]  }
 0xa45   :  { %1621 = vmatpush1.bf16.msra.mxu1 %v2737_v1  ;;  %v2787_v1 = vld [vmem:[%s3625_s10 + $0x38] sm:$0xff]  }
 0xa46   :  { %1622 = vmatprep.subr.bf16.mxu1 %v2745_v27  ;;  %v2799_v27 = vld [vmem:[%s3625_s10 + $0x20] sm:$0xff]  }
 0xa49   :  { %1623 = vmatpush1.bf16.msra.mxu1 %v2743_v29  ;;  %v2801_v29 = vld [vmem:[%s3625_s10 + $0x58] sm:$0xff]  }
 0xa4a   :  { %1624 = vmatprep.subr.bf16.mxu1 %v2751_v60  ;;  %v2803_v60 = vld [vmem:[%s3625_s10 + $0x18] sm:$0xff]  }
 0xa4d   :  { %1625 = vmatpush1.bf16.msra.mxu1 %v2749_v35  ;;  %v2805_v35 = vld [vmem:[%s3625_s10 + $0x50] sm:$0xff]  }
 0xa4e   :  { %1626 = vmatprep.subr.bf16.mxu1 %v2757_v38  ;;  %v2808_v38 = vld [vmem:[%s3625_s10 + $0x90] sm:$0xff]  }
 0xa51   :  { %1627 = vmatpush1.bf16.msra.mxu1 %v2755_v37  ;;  %v2807_v37 = vld [vmem:[%s3625_s10 + $0x10] sm:$0xff]  }
 0xa52   :  { %1628 = vmatprep.subr.bf16.mxu1 %v2763_v40  ;;  %v2811_v40 = vld [vmem:[%s3625_s10 + $0x8] sm:$0xff]  }
 0xa55   :  { %1629 = vmatpush1.bf16.msra.mxu1 %v2761_v43  ;;  %v2813_v43 = vld [vmem:[%s3625_s10 + $0x40] sm:$0xff]  }
 0xa56   :  { %1630 = vmatprep.subr.bf16.mxu1 %v2769_v45  ;;  %v2815_v45 = vld [vmem:[%s3625_s10] sm:$0xff]  }
 0xa59   :  { %1631 = vmatpush1.bf16.msra.mxu1 %v2767_v54  ;;  %v1438_v54 = vld [vmem:[%s3626_s9] sm:$0xf] }
 0xa5a   :  { %1632 = vmatprep.subr.bf16.mxu1 %v2775_v58  ;;  %v1443_v58 = vrot.slane %v1438_v54, %v95_v32 }
 0xa5d   :  { %1633 = vmatpush1.bf16.msra.mxu1 %v2773_v62  ;;  %v1447_v62 = vrot.slane %v1438_v54, %v99_v31 }
 0xa5e   :  { %1634 = vmatprep.subr.bf16.mxu1 %v2781_v3 }
 0xa61   :  { %1635 = vmatpush1.bf16.msra.mxu1 %v2779_v5 }
 0xb03   :  { %v1355_v17 = vpop.f32.mrf.mxu0 }
 0xb04   :  { %v1356_v18 = vadd.f32 %v2330_v6, %v1355_v17 }
 0xb05   :  { %v2654_v53 = vpop.f32.mrf.mxu0 }
 0xb06   :  { %v1362_v19 = vadd.f32 %v1356_v18, %v3043_v23  ;;  %v2742_v23 = vld [vmem:[%s3622_s8 + $0xec] ss:$16 sps:$4 sm:$0xff]   ;;  %v2340_v18 = vld [vmem:[%s3624_s7] ss:$0 sm:$0xff] }
 0xb07   :  { %v1358_v46 = vpop.f32.mrf.mxu0  ;;  %1663 = vmatprep.subr.bf16.mxu0 %v2742_v23  ;;  %v2790_v23 = vld [vmem:[%s3625_s10 + $0xf0] sm:$0xff]  }
 0xb08   :  { %v1359_v20 = vadd.f32 %v2330_v6, %v1358_v46  ;;  %1366 = vadd.xlane.f32.xlu1 %v1362_v19  ;;  %1664 = vmatpush1.bf16.msra.mxu0 %v2740_v41  ;;  %v2789_v41 = vld [vmem:[%s3625_s10 + $0x70] sm:$0xff]  }
 0xb09   :  { %v2655_v21 = vpop.f32.mrf.mxu0  ;;  %1665 = vmatprep.subr.bf16.mxu0 %v2748_v28  ;;  %v2800_v28 = vld [vmem:[%s3625_s10 + $0xa0] sm:$0xff]  }
 0xb0a   :  { %v1363_v22 = vadd.f32 %v1359_v20, %v3048_v24  ;;  %v2785_v21 = vld [vmem:[%s3625_s10 + $0x78] sm:$0xff]  }
 0xb0b   :  { %2467 = vmatprep.subr.bf16.mxu1 %v2785_v21 }
 0xb0c   :  { %1368 = vadd.xlane.f32.xlu0 %v1363_v22  ;;  %1666 = vmatpush1.bf16.msra.mxu0 %v2746_v33  ;;  %v2802_v33 = vld [vmem:[%s3625_s10 + $0xd8] sm:$0xff]  }
 0xb0d   :  { %1667 = vmatprep.subr.bf16.mxu0 %v2754_v34  ;;  %v2804_v34 = vld [vmem:[%s3625_s10 + $0x98] sm:$0xff]  }
 0xb10   :  { %1668 = vmatpush1.bf16.msra.mxu0 %v2752_v36  ;;  %v2806_v36 = vld [vmem:[%s3625_s10 + $0xd0] sm:$0xff]  }
 0xb11   :  { %1669 = vmatprep.subr.bf16.mxu0 %v2760_v39  ;;  %v2810_v39 = vld [vmem:[%s3625_s10 + $0xc8] sm:$0xff]  }
 0xb14   :  { %1670 = vmatpush1.bf16.msra.mxu0 %v2758_v49  ;;  %v2809_v49 = vld [vmem:[%s3625_s10 + $0x48] sm:$0xff]  }
 0xb15   :  { %1671 = vmatprep.subr.bf16.mxu0 %v2766_v42  ;;  %v2812_v42 = vld [vmem:[%s3625_s10 + $0x88] sm:$0xff]  }
 0xb18   :  { %1672 = vmatpush1.bf16.msra.mxu0 %v2764_v44  ;;  %v2814_v44 = vld [vmem:[%s3625_s10 + $0xc0] sm:$0xff]  }
 0xb19   :  { %1673 = vmatprep.subr.bf16.mxu0 %v2772_v50  ;;  %v2816_v50 = vld [vmem:[%s3625_s10 + $0x80] sm:$0xff]  }
 0xb1c   :  { %1674 = vmatpush1.bf16.msra.mxu0 %v2770_v57  ;;  %v1454_v57 = vsub.s32 3, %v3073_v30 }
 0xb1d   :  { %1675 = vmatprep.subr.bf16.mxu0 %v2778_v59  ;;  %v1451_v59 = vrot.slane %v1438_v54, %v103_v52 }
 0xb20   :  { %1676 = vmatpush1.bf16.msra.mxu0 %v2776_v63  ;;  %v1455_v63 = vrot.slane %v1438_v54, %v1454_v57 }
 0xb21   :  { %1677 = vmatprep.subr.bf16.mxu0 %v2784_v4 }
 0xb24   :  { %1678 = vmatpush1.bf16.msra.mxu0 %v2782_v7 }
 0xb91   :  { %v1367_v24 = vpop.xlane.xlu1 %1366 }
 0xb92   :  { %v1371_v48 = vmul.f32 0.0078125, %v1367_v24  ;;  %v2791_v24 = vld [vmem:[%s3625_s10 + $0x30] sm:$0xff]  }
 0xb94   :  { %v3322_v55 = vsub.f32 %v1362_v19, %v1371_v48  ;;  %v2792_v48 = vld [vmem:[%s3625_s10 + $0xb0] sm:$0xff]  }
 0xb95   :  { %v1369_v56 = vpop.xlane.xlu0 %1368 }
 0xb96   :  { %v1372_v47 = vmul.f32 0.0078125, %v1369_v56  ;;  %v1375_v25 = vmul.f32 %v3322_v55, %v3322_v55  ;;  %v2794_v56 = vld [vmem:[%s3625_s10 + $0xe8] sm:$0xff]  }
 0xb98   :  { %v3326_v51 = vsub.f32 %v1363_v22, %v1372_v47  ;;  %1377 = vadd.xlane.f32.xlu0 %v1375_v25  ;;  %v2786_v22 = vld [vmem:[%s3625_s10 + $0xf8] sm:$0xff]   ;;  %v2795_v47 = vld [vmem:[%s3625_s10 + $0x28] sm:$0xff]  }
 0xb99   :  { %2489 = vmatprep.subr.bf16.mxu0 %v2786_v22  ;;  %v2796_v25 = vld [vmem:[%s3625_s10 + $0xa8] sm:$0xff]  }
 0xb9a   :  { %v1376_v26 = vmul.f32 %v3326_v51, %v3326_v51 }
 0xb9c   :  { %1379 = vadd.xlane.f32.xlu0 %v1376_v26  ;;  %v2798_v26 = vld [vmem:[%s3625_s10 + $0xe0] sm:$0xff]  }
 0xc21   :  { %v1378_v8 = vpop.xlane.xlu0 %1377 }
 0xc22   :  { %v1381_v9 = vmul.f32 0.0078125, %v1378_v8 }
 0xc24   :  { %v1383_v10 = vadd.f32 1e-12, %v1381_v9 }
 0xc25   :  { %v1380_v11 = vpop.xlane.xlu0 %1379 }
 0xc26   :  { %2857 = vrsqrt.f32 %v1383_v10  ;;  %v1382_v12 = vmul.f32 0.0078125, %v1380_v11 }
 0xc28   :  { %v1384_v13 = vadd.f32 1e-12, %v1382_v12 }
 0xc2a   :  { %2859 = vrsqrt.f32 %v1384_v13 }
 0xc33   :  { %v2858_v14 = vpop.eup %2857 }
 0xc34   :  { %v1387_v15 = vmul.f32 %v2858_v14, %v3322_v55  ;;  %v2793_v55 = vld [vmem:[%s3625_s10 + $0x68] sm:$0xff]  }
 0xc36   :  { %v1395_v17 = vmul.f32 %v2339_v0, %v1387_v15 }
 0xc37   :  { %v2860_v16 = vpop.eup %2859 }
 0xc38   :  { %v1388_v6 = vmul.f32 %v2860_v16, %v3326_v51  ;;  %v3422_v19 = vadd.f32 %v2340_v18, %v1395_v17  ;;  %v2797_v51 = vld [vmem:[%s3625_s10 + $0x60] sm:$0xff]  }
 0xc3a   :  { %v1396_v53 = vmul.f32 %v2339_v0, %v1388_v6 }
 0xc3c   :  { %v3424_v46 = vadd.f32 %v2340_v18, %v1396_v53 }
 0xc3e   :  { %v1405_v20 = vpack.c.bf16 %v3424_v46, %v3422_v19 }
 0xc40   :  { %1653 = vmatmul.mubr.bf16.vlgmr.msra.gmra.mxu1 %v1405_v20  ;;  %1696 = vmatmul.mubr.bf16.vlgmr.msra.gmra.mxu0 %v1405_v20 }
 0xc41   :  { %2468 = vmatpush3.bf16.msra.mxu1 %v2787_v1  ;;  %2490 = vmatpush3.bf16.msra.mxu0 %v2788_v61 }
 0xc42   :  { %2469 = vmatprep.subr.bf16.mxu1 %v2789_v41  ;;  %2491 = vmatprep.subr.bf16.mxu0 %v2790_v23 }
 0xc45   :  { %2470 = vmatpush3.bf16.msra.mxu1 %v2791_v24  ;;  %2492 = vmatpush3.bf16.msra.mxu0 %v2792_v48 }
 0xc46   :  { %2471 = vmatprep.subr.bf16.mxu1 %v2793_v55  ;;  %2493 = vmatprep.subr.bf16.mxu0 %v2794_v56 }
 0xc49   :  { %2472 = vmatpush3.bf16.msra.mxu1 %v2795_v47  ;;  %2494 = vmatpush3.bf16.msra.mxu0 %v2796_v25 }
 0xc4a   :  { %2473 = vmatprep.subr.bf16.mxu1 %v2797_v51  ;;  %2495 = vmatprep.subr.bf16.mxu0 %v2798_v26 }
 0xc4d   :  { %2474 = vmatpush3.bf16.msra.mxu1 %v2799_v27  ;;  %2496 = vmatpush3.bf16.msra.mxu0 %v2800_v28 }
 0xc4e   :  { %2475 = vmatprep.subr.bf16.mxu1 %v2801_v29  ;;  %2497 = vmatprep.subr.bf16.mxu0 %v2802_v33 }
 0xc51   :  { %2476 = vmatpush3.bf16.msra.mxu1 %v2803_v60  ;;  %2498 = vmatpush3.bf16.msra.mxu0 %v2804_v34 }
 0xc52   :  { %2477 = vmatprep.subr.bf16.mxu1 %v2805_v35  ;;  %2499 = vmatprep.subr.bf16.mxu0 %v2806_v36 }
 0xc55   :  { %2478 = vmatpush3.bf16.msra.mxu1 %v2807_v37  ;;  %2500 = vmatpush3.bf16.msra.mxu0 %v2808_v38 }
 0xc56   :  { %2479 = vmatprep.subr.bf16.mxu1 %v2809_v49  ;;  %2501 = vmatprep.subr.bf16.mxu0 %v2810_v39 }
 0xc59   :  { %2480 = vmatpush3.bf16.msra.mxu1 %v2811_v40  ;;  %2502 = vmatpush3.bf16.msra.mxu0 %v2812_v42 }
 0xc5a   :  { %2481 = vmatprep.subr.bf16.mxu1 %v2813_v43  ;;  %2503 = vmatprep.subr.bf16.mxu0 %v2814_v44 }
 0xc5d   :  { %2482 = vmatpush3.bf16.msra.mxu1 %v2815_v45  ;;  %2504 = vmatpush3.bf16.msra.mxu0 %v2816_v50 }
 0xc5e   :  { %2656 = vmatprep.subr.bf16.mxu1 %v2882_v2 }
 0xd00   :  { %v1654_v3 = vpop.f32.mrf.mxu1  ;;  %v1697_v4 = vpop.f32.mrf.mxu0 }
 0xd01   :  { %v3535_v5 = vadd.f32 %v1654_v3, %v1443_v58  ;;  %v3537_v7 = vadd.f32 %v1697_v4, %v1451_v59 }
 0xd02   :  { %v1656_v8 = vpop.f32.mrf.mxu1  ;;  %v1699_v9 = vpop.f32.mrf.mxu0 }
 0xd03   :  { %v1714_v10 = vmul.f32 0.044715, %v3535_v5  ;;  %v1716_v11 = vmul.f32 0.044715, %v3537_v7  ;;  %v1657_v32 = vadd.f32 %v1656_v8, %v1447_v62  ;;  %v3541_v12 = vadd.f32 %v1699_v9, %v1455_v63 }
 0xd04   :  { %v1658_v52 = vpop.f32.mrf.mxu1  ;;  %v1701_v13 = vpop.f32.mrf.mxu0  ;;  %v1706_v9 = vmul.f32 0.5, %v3535_v5 }
 0xd05   :  { %v1722_v30 = vmul.f32 %v1714_v10, %v3535_v5  ;;  %v1724_v31 = vmul.f32 %v1716_v11, %v3537_v7  ;;  %v1715_v14 = vmul.f32 0.044715, %v1657_v32  ;;  %v1717_v15 = vmul.f32 0.044715, %v3541_v12 }
 0xd06   :  { %v1659_v0 = vadd.f32 %v1658_v52, %v1443_v58  ;;  %v3546_v16 = vadd.f32 %v1701_v13, %v1451_v59  ;;  %v1660_v6 = vpop.f32.mrf.mxu1  ;;  %v1703_v17 = vpop.f32.mrf.mxu0  ;;  %v1707_v4 = vmul.f32 0.5, %v1657_v32 }
 0xd07   :  { %v1730_v18 = vmul.f32 %v1722_v30, %v3535_v5  ;;  %v1732_v53 = vmul.f32 %v1724_v31, %v3537_v7  ;;  %v1723_v20 = vmul.f32 %v1715_v14, %v1657_v32  ;;  %v1725_v21 = vmul.f32 %v1717_v15, %v3541_v12 }
 0xd08   :  { %v1718_v22 = vmul.f32 0.044715, %v1659_v0  ;;  %v1720_v1 = vmul.f32 0.044715, %v3546_v16  ;;  %v1661_v61 = vadd.f32 %v1660_v6, %v1447_v62  ;;  %v1704_v41 = vadd.f32 %v1703_v17, %v1455_v63 }
 0xd09   :  { %v1738_v23 = vadd.f32 %v1730_v18, %v3535_v5  ;;  %v1740_v24 = vadd.f32 %v1732_v53, %v3537_v7  ;;  %v1731_v48 = vmul.f32 %v1723_v20, %v1657_v32  ;;  %v1733_v55 = vmul.f32 %v1725_v21, %v3541_v12 }
 0xd0a   :  { %v1726_v56 = vmul.f32 %v1718_v22, %v1659_v0  ;;  %v1728_v47 = vmul.f32 %v1720_v1, %v3546_v16  ;;  %v1719_v25 = vmul.f32 0.044715, %v1661_v61  ;;  %v1721_v51 = vmul.f32 0.044715, %v1704_v41 }
 0xd0b   :  { %v1746_v26 = vmul.f32 0.7978846, %v1738_v23  ;;  %v1748_v27 = vmul.f32 0.7978846, %v1740_v24  ;;  %v1739_v28 = vadd.f32 %v1731_v48, %v1657_v32  ;;  %v1741_v36 = vadd.f32 %v1733_v55, %v3541_v12 }
 0xd0c   :  { %v1734_v29 = vmul.f32 %v1726_v56, %v1659_v0  ;;  %v1736_v33 = vmul.f32 %v1728_v47, %v3546_v16  ;;  %v1727_v60 = vmul.f32 %v1719_v25, %v1661_v61  ;;  %v1729_v34 = vmul.f32 %v1721_v51, %v1704_v41 }
 0xd0d   :  { %v1747_v35 = vmul.f32 0.7978846, %v1739_v28  ;;  %2861 = vtanh.f32 %v1746_v26  ;;  %v1749_v40 = vmul.f32 0.7978846, %v1741_v36  ;;  %v1710_v13 = vmul.f32 0.5, %v1659_v0 }
 0xd0e   :  { %v1742_v37 = vadd.f32 %v1734_v29, %v1659_v0  ;;  %v1744_v38 = vadd.f32 %v1736_v33, %v3546_v16  ;;  %v1735_v49 = vmul.f32 %v1727_v60, %v1661_v61  ;;  %2863 = vtanh.f32 %v1748_v27 }
 0xd0f   :  { %v1737_v39 = vmul.f32 %v1729_v34, %v1704_v41  ;;  %2865 = vtanh.f32 %v1747_v35  ;;  %v1711_v15 = vmul.f32 0.5, %v1661_v61  ;;  %v1712_v17 = vmul.f32 0.5, %v3546_v16 }
 0xd10   :  { %v1750_v42 = vmul.f32 0.7978846, %v1742_v37  ;;  %v1752_v43 = vmul.f32 0.7978846, %v1744_v38  ;;  %v1743_v44 = vadd.f32 %v1735_v49, %v1661_v61  ;;  %2867 = vtanh.f32 %v1749_v40 }
 0xd11   :  { %v1745_v45 = vadd.f32 %v1737_v39, %v1704_v41  ;;  %v1709_v53 = vmul.f32 0.5, %v3541_v12  ;;  %v1713_v20 = vmul.f32 0.5, %v1704_v41  ;;  %v1708_v5 = vmul.f32 0.5, %v3537_v7  ;;  %v2373_v7 = vld [vmem:[%s3627_s11] ss:$0 sm:$0xff] }
 0xd12   :  { %2869 = vtanh.f32 %v1750_v42  ;;  %v1751_v50 = vmul.f32 0.7978846, %v1743_v44  ;;  %v2817_v42 = vld [vmem:[%s3628_s14 + $0x38] sm:$0xff]  }
 0xd13   :  { %2871 = vtanh.f32 %v1752_v43  ;;  %v1753_v54 = vmul.f32 0.7978846, %v1745_v45 }
 0xd14   :  { %2873 = vtanh.f32 %v1751_v50 }
 0xd15   :  { %2875 = vtanh.f32 %v1753_v54 }
 0xd1a   :  { %v2862_v57 = vpop.eup %2861 }
 0xd1b   :  { %v2864_v58 = vpop.eup %2863  ;;  %v1762_v30 = vadd.f32 1.0, %v2862_v57 }
 0xd1c   :  { %v2866_v59 = vpop.eup %2865  ;;  %v1764_v18 = vadd.f32 1.0, %v2864_v58 }
 0xd1d   :  { %v2868_v62 = vpop.eup %2867  ;;  %v1763_v8 = vadd.f32 1.0, %v2866_v59  ;;  %v1770_v48 = vmul.f32 %v1762_v30, %v1706_v9  ;;  %v2819_v59 = vld [vmem:[%s3628_s14 + $0x28] sm:$0xff]  }
 0xd1e   :  { %v1765_v52 = vadd.f32 1.0, %v2868_v62  ;;  %v1772_v56 = vmul.f32 %v1764_v18, %v1708_v5  ;;  %v2820_v62 = vld [vmem:[%s3628_s14 + $0x20] sm:$0xff]  }
 0xd1f   :  { %v2870_v63 = vpop.eup %2869  ;;  %v1771_v22 = vmul.f32 %v1763_v8, %v1707_v4  ;;  %v2823_v4 = vld [vmem:[%s3628_s14 + $0x8] sm:$0xff]   ;;  %v2824_v8 = vld [vmem:[%s3628_s14] sm:$0xff]  }
 0xd20   :  { %v2872_v3 = vpop.eup %2871  ;;  %v1766_v10 = vadd.f32 1.0, %v2870_v63  ;;  %v1773_v24 = vmul.f32 %v1765_v52, %v1709_v53  ;;  %v2821_v63 = vld [vmem:[%s3628_s14 + $0x18] sm:$0xff]  }
 0xd21   :  { %v2874_v11 = vpop.eup %2873  ;;  %v1768_v31 = vadd.f32 1.0, %v2872_v3  ;;  %v2822_v3 = vld [vmem:[%s3628_s14 + $0x10] sm:$0xff]  }
 0xd22   :  { %v2876_v14 = vpop.eup %2875  ;;  %v1767_v6 = vadd.f32 1.0, %v2874_v11  ;;  %v1774_v32 = vmul.f32 %v1766_v10, %v1710_v13 }
 0xd23   :  { %v1769_v21 = vadd.f32 1.0, %v2876_v14  ;;  %v1776_v23 = vmul.f32 %v1768_v31, %v1712_v17 }
 0xd24   :  { %v1775_v1 = vmul.f32 %v1767_v6, %v1711_v15  ;;  %v1778_v47 = vpack.c.bf16 %v1774_v32, %v1770_v48  ;;  %v2406_v15 = vld [vmem:[%s3629_s12] ss:$0 sm:$0xff] }
 0xd25   :  { %v1777_v0 = vmul.f32 %v1769_v21, %v1713_v20  ;;  %v1780_v16 = vpack.c.bf16 %v1776_v23, %v1772_v56 }
 0xd26   :  { %v1779_v55 = vpack.c.bf16 %v1775_v1, %v1771_v22  ;;  %v2408_v22 = vld [vmem:[%s3631_s15] ss:$0 sm:$0xff] }
 0xd27   :  { %v1781_v61 = vpack.c.bf16 %v1777_v0, %v1773_v24 }
 0xd28   :  { %2077 = vmatprep.mubr.bf16.mxu1 %v1779_v55 }
 0xd29   :  { %2118 = vmatprep.mubr.bf16.mxu0 %v1781_v61  ;;  %2078 = vmatmul.mubr.bf16.vlgmr.msra.gmra.mxu1 %v1778_v47 }
 0xd2a   :  { %2119 = vmatmul.mubr.bf16.vlgmr.msra.gmra.mxu0 %v1780_v16  ;;  %2672 = vmatprep.mubr.msk.bf16.mxu1 %vm2883_vm0, %v2882_v2 }
 0xd2b   :  { %2657 = vmatpush3.bf16.msra.mxu1 %v2817_v42 }
 0xd2c   :  { %2658 = vmatprep.subr.bf16.mxu1 %v2882_v2 }
 0xde9   :  { %v2483_v12 = vpop.f32.mrf.mxu1 }
 0xdea   :  { %v2505_v41 = vpop.f32.mrf.mxu0 }
 0xdeb   :  { %v2484_v25 = vpop.f32.mrf.mxu1 }
 0xdec   :  { %v2485_v51 = vadd.f32 %v2484_v25, %v2483_v12  ;;  %v2506_v26 = vpop.f32.mrf.mxu0 }
 0xded   :  { %v2486_v27 = vpop.f32.mrf.mxu1  ;;  %v2507_v29 = vadd.f32 %v2506_v26, %v2505_v41 }
 0xdee   :  { %v2080_v28 = vadd.f32 %v2485_v51, %v2373_v7  ;;  %v2508_v33 = vpop.f32.mrf.mxu0 }
 0xdef   :  { %v2487_v60 = vpop.f32.mrf.mxu1 }
 0xdf0   :  { %v2121_v34 = vadd.f32 %v2507_v29, %v2080_v28  ;;  %v2488_v35 = vadd.f32 %v2487_v60, %v2486_v27  ;;  %v2509_v36 = vpop.f32.mrf.mxu0 }
 0xdf1   :  { %v2510_v38 = vadd.f32 %v2509_v36, %v2508_v33 }
 0xdf2   :  { %v2083_v37 = vadd.f32 %v2488_v35, %v2373_v7  ;;  %v2127_v49 = vadd.f32 %v2121_v34, %v3422_v19 }
 0xdf4   :  { %v2124_v39 = vadd.f32 %v2510_v38, %v2083_v37  ;;  %2131 = vadd.xlane.f32.xlu1 %v2127_v49 }
 0xdf6   :  { %v2128_v40 = vadd.f32 %v2124_v39, %v3424_v46  ;;  %v2818_v46 = vld [vmem:[%s3628_s14 + $0x30] sm:$0xff]  }
 0xdf7   :  { %2659 = vmatpush3.bf16.msra.mxu1 %v2818_v46 }
 0xdf8   :  { %2133 = vadd.xlane.f32.xlu0 %v2128_v40  ;;  %2660 = vmatprep.subr.bf16.mxu1 %v2882_v2 }
 0xdfb   :  { %2661 = vmatpush3.bf16.msra.mxu1 %v2819_v59 }
 0xdfc   :  { %2662 = vmatprep.subr.bf16.mxu1 %v2882_v2 }
 0xdff   :  { %2663 = vmatpush3.bf16.msra.mxu1 %v2820_v62 }
 0xe00   :  { %2664 = vmatprep.subr.bf16.mxu1 %v2882_v2 }
 0xe03   :  { %2665 = vmatpush3.bf16.msra.mxu1 %v2821_v63 }
 0xe04   :  { %2666 = vmatprep.subr.bf16.mxu1 %v2882_v2 }
 0xe07   :  { %2667 = vmatpush3.bf16.msra.mxu1 %v2822_v3 }
 0xe08   :  { %2668 = vmatprep.subr.bf16.mxu1 %v2882_v2 }
 0xe0b   :  { %2669 = vmatpush3.bf16.msra.mxu1 %v2823_v4 }
 0xe0c   :  { %2670 = vmatprep.subr.bf16.mxu1 %v2882_v2  ;;  %v2407_v2 = vld [vmem:[%s3630_s13] ss:$0 sm:$0xff] }
 0xe0f   :  { %2671 = vmatpush3.bf16.msra.mxu1 %v2824_v8 }
 0xe7d   :  { %v2132_v43 = vpop.xlane.xlu1 %2131 }
 0xe7e   :  { %v2135_v44 = vmul.f32 0.0078125, %v2132_v43 }
 0xe80   :  { %v2137_v45 = vsub.f32 %v2127_v49, %v2135_v44 }
 0xe81   :  { %v2134_v50 = vpop.xlane.xlu0 %2133 }
 0xe82   :  { %v2136_v54 = vmul.f32 0.0078125, %v2134_v50  ;;  %v2139_v57 = vmul.f32 %v2137_v45, %v2137_v45 }
 0xe84   :  { %v2138_v58 = vsub.f32 %v2128_v40, %v2136_v54  ;;  %2141 = vadd.xlane.f32.xlu1 %v2139_v57 }
 0xe86   :  { %v2140_v19 = vmul.f32 %v2138_v58, %v2138_v58 }
 0xe88   :  { %2143 = vadd.xlane.f32.xlu0 %v2140_v19 }
 0xf0d   :  { %v2142_v9 = vpop.xlane.xlu1 %2141 }
 0xf0e   :  { %v2145_v10 = vmul.f32 0.0078125, %v2142_v9 }
 0xf10   :  { %v2147_v11 = vadd.f32 1e-12, %v2145_v10 }
 0xf11   :  { %v2144_v52 = vpop.xlane.xlu0 %2143 }
 0xf12   :  { %2877 = vrsqrt.f32 %v2147_v11  ;;  %v2146_v13 = vmul.f32 0.0078125, %v2144_v52 }
 0xf14   :  { %v2148_v30 = vadd.f32 1e-12, %v2146_v13 }
 0xf16   :  { %2879 = vrsqrt.f32 %v2148_v30 }
 0xf1f   :  { %v2878_v31 = vpop.eup %2877 }
 0xf20   :  { %v2151_v14 = vmul.f32 %v2878_v31, %v2137_v45 }
 0xf22   :  { %v2159_v18 = vmul.f32 %v2406_v15, %v2151_v14 }
 0xf23   :  { %v2880_v6 = vpop.eup %2879 }
 0xf24   :  { %v2152_v17 = vmul.f32 %v2880_v6, %v2138_v58  ;;  %v2167_v20 = vadd.f32 %v2407_v2, %v2159_v18 }
 0xf26   :  { %v2160_v53 = vmul.f32 %v2406_v15, %v2152_v17 }
 0xf28   :  { %v2168_v21 = vadd.f32 %v2407_v2, %v2160_v53 }
 0xf2a   :  { %v2169_v32 = vpack.c.bf16 %v2168_v21, %v2167_v20 }
 0xf2c   :  { %2673 = vmatmul.mubr.bf16.vlgmr.msra.gmra.mxu1 %v2169_v32 }
 0xfec   :  { %v2275_v1 = vpop.f32.mrf.mxu1 }
 0xfed   :  { %v2276_v5 = vadd.f32 %v2408_v22, %v2275_v1 }
 0xfee   :  { %v2674_v23 = vpop.f32.mrf.mxu1 }
 0xfef   :  { %2282 = vst [vmem:[%s3632_s16] sm:$0xff] %v2276_v5 }
 0xff0   :  { %v2278_v24 = vpop.f32.mrf.mxu1 }
 0xff1   :  { %v2279_v0 = vadd.f32 %v2408_v22, %v2278_v24 }
 0xff2   :  { %v2675_v48 = vpop.f32.mrf.mxu1 }
 0xff3   :  { %2283 = vst [vmem:[%s3632_s16 + $0x8] sm:$0xff] %v2279_v0 }

</bundles_post_ra>
